<compile_context>
chip_gen: v6e
topology: v6e:2x2x1
jax: 0.10.0
libtpu: 0.0.40
codegen_flags: <defaults>
</compile_context>

<pallas_src>
import math

import jax
import jax.numpy as jnp
from jax.experimental import pallas as pl
from jax.experimental.pallas import tpu as pltpu


# ----------------------------- config (small) -------------------------------
IMG = 16          # img_size
PATCH = 4         # patch_size
IN_CHANS = 4      # in_chans
HIDDEN = 32       # hidden_size
NUM_HEADS = 4
HEAD_DIM = HIDDEN // NUM_HEADS
MLP_RATIO = 4
DEPTH = 2
NUM_CLASSES = 10
LN_EPS = 1e-6
BATCH = 2

N_PATCHES = (IMG // PATCH) ** 2          # 16
SEQ = N_PATCHES + 1                      # 17 (CLS token prepended)
SEQ_PAD = 24                             # sequence padded to a multiple of 8
CPP = IN_CHANS * PATCH * PATCH           # 64 = Conv2d(k=s=P) patch feature size
HEAD_PAD = 128                           # classifier columns padded lane-dense
OUT_SUB = 8                              # output sublane padding
BV_LANES = MLP_RATIO * HIDDEN            # 128: lane width of the packed-bias array
assert BV_LANES >= 3 * HIDDEN and BV_LANES % 128 == 0


# ----------------------------- fused kernel ---------------------------------
def _ln(x, g, b, eps):
    mean = jnp.mean(x, axis=-1, keepdims=True)
    var = jnp.mean(jnp.square(x - mean), axis=-1, keepdims=True)
    return (x - mean) * jax.lax.rsqrt(var + eps) * g + b


def _vit_kernel(patches_ref, patch_w_ref, pos_ref,
                qkv_w_ref, proj_w_ref, fc1_w_ref, fc2_w_ref,
                blk_vec_ref, head_w_ref, final_vec_ref,
                out_ref):
    S, D, H, hd = SEQ_PAD, HIDDEN, NUM_HEADS, HEAD_DIM

    # ---- ViTEmbedding: patch matmul (== Conv2d k=s=P) + folded CLS/pos/bias ----
    # pos_ref row 0 = cls_token + pos[0]; rows 1..N = pos[i] + patch_b; rest 0.
    pp = patches_ref[0]                                            # (S, CPP)
    h = jnp.dot(pp, patch_w_ref[...],
                preferred_element_type=jnp.float32) + pos_ref[...]  # (S, D)

    # attention mask: padded key positions (>= SEQ) get -inf scores
    col = jax.lax.broadcasted_iota(jnp.int32, (1, S), 1)
    key_mask = jnp.where(col < SEQ, 0.0, -1e30).astype(jnp.float32)

    # ---- transformer blocks (pre-norm), fully unrolled over DEPTH ----
    for d in range(DEPTH):
        bv = blk_vec_ref[d]                                        # (8, 128)
        ln1_g = bv[0:1, 0:D]
        ln1_b = bv[1:2, 0:D]
        ln2_g = bv[2:3, 0:D]
        ln2_b = bv[3:4, 0:D]
        proj_b = bv[4:5, 0:D]
        fc2_b = bv[5:6, 0:D]
        qkv_b = bv[6:7, 0:3 * D]
        fc1_b = bv[7:8, :]

        # attention sub-block (Q columns of qkv_w/qkv_b pre-scaled by 1/sqrt(hd))
        y = _ln(h, ln1_g, ln1_b, LN_EPS)
        qkv = jnp.dot(y, qkv_w_ref[d],
                      preferred_element_type=jnp.float32) + qkv_b  # (S, 3D)
        q = qkv[:, 0:D]                                            # [Q | K | V] layout
        k = qkv[:, D:2 * D]
        v = qkv[:, 2 * D:3 * D]
        heads = []
        for hh in range(H):
            qh = q[:, hh * hd:(hh + 1) * hd]
            kh = k[:, hh * hd:(hh + 1) * hd]
            vh = v[:, hh * hd:(hh + 1) * hd]
            s = jax.lax.dot_general(qh, kh, (((1,), (1,)), ((), ())),
                                    preferred_element_type=jnp.float32)   # (S, S)
            s = s + key_mask
            s = s - jnp.max(s, axis=-1, keepdims=True)
            p = jnp.exp(s)
            p = p * pl.reciprocal(jnp.sum(p, axis=-1, keepdims=True), approx=True)
            heads.append(jnp.dot(p, vh, preferred_element_type=jnp.float32))
        o_cat = jnp.concatenate(heads, axis=-1)                    # (S, D)
        attn = jnp.dot(o_cat, proj_w_ref[d],
                       preferred_element_type=jnp.float32)         # single proj matmul
        h = h + attn + proj_b

        # MLP sub-block
        y = _ln(h, ln2_g, ln2_b, LN_EPS)
        y = jnp.dot(y, fc1_w_ref[d],
                    preferred_element_type=jnp.float32) + fc1_b
        # TODO(synk): tanh-approx GELU; torch F.gelu default is erf-based.
        y = jax.nn.gelu(y, approximate=True)
        y = jnp.dot(y, fc2_w_ref[d],
                    preferred_element_type=jnp.float32) + fc2_b
        h = h + y

    # ---- final LayerNorm + classifier head on the CLS token ----
    fv = final_vec_ref[...]
    norm_g = fv[0:1, 0:D]
    norm_b = fv[1:2, 0:D]
    head_b = fv[2:3, :]
    h = _ln(h, norm_g, norm_b, LN_EPS)
    logits = jnp.dot(h[0:1, :], head_w_ref[...],
                     preferred_element_type=jnp.float32) + head_b   # (1, HEAD_PAD)
    out_ref[0] = jnp.broadcast_to(logits, (OUT_SUB, HEAD_PAD)).astype(out_ref.dtype)


# ----------------------------- parameters -----------------------------------
def init_params(key):
    """Raw (PyTorch-layout) parameters."""
    def nrm(k, shape, std=0.02):
        return std * jax.random.normal(k, shape, dtype=jnp.float32)

    keys = iter(jax.random.split(key, 16))
    D = HIDDEN
    return {
        "patch_w": nrm(next(keys), (CPP, D)),          # Conv2d weight, (C,ph,pw)-flattened
        "patch_b": jnp.zeros((1, D), jnp.float32),
        "cls_token": nrm(next(keys), (1, D)),
        "pos_embed": nrm(next(keys), (SEQ, D)),
        "norm_g": jnp.ones((1, D), jnp.float32),
        "norm_b": jnp.zeros((1, D), jnp.float32),
        "head_w": nrm(next(keys), (D, NUM_CLASSES)),
        "head_b": jnp.zeros((NUM_CLASSES,), jnp.float32),
        # Per-block weights stacked along a leading DEPTH axis. QKV columns
        # use the standard torch fused-linear layout [Q(D) | K(D) | V(D)].
        "ln1_g": jnp.ones((DEPTH, 1, D), jnp.float32),
        "ln1_b": jnp.zeros((DEPTH, 1, D), jnp.float32),
        "qkv_w": nrm(next(keys), (DEPTH, D, 3 * D)),
        "qkv_b": jnp.zeros((DEPTH, 1, 3 * D), jnp.float32),
        "proj_w": nrm(next(keys), (DEPTH, D, D)),
        "proj_b": jnp.zeros((DEPTH, 1, D), jnp.float32),
        "ln2_g": jnp.ones((DEPTH, 1, D), jnp.float32),
        "ln2_b": jnp.zeros((DEPTH, 1, D), jnp.float32),
        "fc1_w": nrm(next(keys), (DEPTH, D, MLP_RATIO * D)),
        "fc1_b": jnp.zeros((DEPTH, 1, MLP_RATIO * D), jnp.float32),
        "fc2_w": nrm(next(keys), (DEPTH, MLP_RATIO * D, D)),
        "fc2_b": jnp.zeros((DEPTH, 1, D), jnp.float32),
    }


def prepare_params(p):
    """One-time host-side parameter transform (called once, outside the jitted
    forward): fold CLS/pos/patch_b/scale, pad the head lane-dense, and pack all
    1-row vectors so the kernel takes 10 operands."""
    D = HIDDEN
    scale = 1.0 / math.sqrt(HEAD_DIM)

    # pos table: row 0 = cls + pos[0]; rows 1..N = pos[i] + patch_b; rest 0.
    pos_full = jnp.zeros((SEQ_PAD, D), jnp.float32)
    pos_full = pos_full.at[1:SEQ, :].set(p["pos_embed"][1:SEQ] + p["patch_b"][0])
    pos_full = pos_full.at[0, :].set(p["cls_token"][0] + p["pos_embed"][0])

    # Fold 1/sqrt(head_dim) into the Q columns of the fused qkv weight/bias.
    qkv_w = p["qkv_w"].at[:, :, 0:D].multiply(scale)
    qkv_b = p["qkv_b"].at[:, :, 0:D].multiply(scale)

    # Pack per-block 1-row vectors into a single (DEPTH, 8, 128) array.
    blk_vec = jnp.zeros((DEPTH, 8, BV_LANES), jnp.float32)
    blk_vec = blk_vec.at[:, 0, 0:D].set(p["ln1_g"][:, 0, :])
    blk_vec = blk_vec.at[:, 1, 0:D].set(p["ln1_b"][:, 0, :])
    blk_vec = blk_vec.at[:, 2, 0:D].set(p["ln2_g"][:, 0, :])
    blk_vec = blk_vec.at[:, 3, 0:D].set(p["ln2_b"][:, 0, :])
    blk_vec = blk_vec.at[:, 4, 0:D].set(p["proj_b"][:, 0, :])
    blk_vec = blk_vec.at[:, 5, 0:D].set(p["fc2_b"][:, 0, :])
    blk_vec = blk_vec.at[:, 6, 0:3 * D].set(qkv_b[:, 0, :])
    blk_vec = blk_vec.at[:, 7, 0:MLP_RATIO * D].set(p["fc1_b"][:, 0, :])

    # Lane-dense classifier head: zero-pad to 128 output columns.
    head_w_pad = jnp.zeros((D, HEAD_PAD), jnp.float32)
    head_w_pad = head_w_pad.at[:, :NUM_CLASSES].set(p["head_w"])

    # Final-norm gains + head bias packed into one (8, 128) array.
    final_vec = jnp.zeros((8, HEAD_PAD), jnp.float32)
    final_vec = final_vec.at[0, 0:D].set(p["norm_g"][0])
    final_vec = final_vec.at[1, 0:D].set(p["norm_b"][0])
    final_vec = final_vec.at[2, 0:NUM_CLASSES].set(p["head_b"])

    return (p["patch_w"], pos_full, qkv_w, p["proj_w"], p["fc1_w"],
            p["fc2_w"], blk_vec, head_w_pad, final_vec)


# ----------------------------- forward pass ----------------------------------
def _full_spec(a):
    n = a.ndim
    return pl.BlockSpec(a.shape, lambda b, n=n: (0,) * n)


@jax.jit
def vit_forward(x, prep):
    """x: (B, C, H, W) NCHW float32, prep: prepare_params(...) output
    -> logits (B, NUM_CLASSES)."""
    B, C, Himg, Wimg = x.shape
    P = PATCH
    nH, nW = Himg // P, Wimg // P
    N = nH * nW

    # Patchify with Conv2d(k=s=P) weight-flattening order (C, ph, pw).
    patches = (x.reshape(B, C, nH, P, nW, P)
                 .transpose(0, 2, 4, 1, 3, 5)
                 .reshape(B, N, CPP)).astype(jnp.float32)
    # rows: 0 = CLS slot (zeros), 1..N = patches, N+1.. = sequence padding.
    patches_pad = jnp.pad(patches, ((0, 0), (1, SEQ_PAD - SEQ), (0, 0)))

    inputs = (patches_pad,) + tuple(prep)
    in_specs = [pl.BlockSpec((1, SEQ_PAD, CPP), lambda b: (b, 0, 0))]
    in_specs += [_full_spec(a) for a in prep]

    out = pl.pallas_call(
        _vit_kernel,
        out_shape=jax.ShapeDtypeStruct((B, OUT_SUB, HEAD_PAD), jnp.float32),
        grid=(B,),
        in_specs=in_specs,
        out_specs=pl.BlockSpec((1, OUT_SUB, HEAD_PAD), lambda b: (b, 0, 0)),
        compiler_params=pltpu.CompilerParams(
            dimension_semantics=("parallel",)),   # batch images are independent
    )(*inputs)
    return out[:, 0, :NUM_CLASSES]


# ----------------------------- main ------------------------------------------
if __name__ == "__main__":
    key = jax.random.PRNGKey(0)
    kx, kp = jax.random.split(key)
    x = jax.random.normal(kx, (BATCH, IN_CHANS, IMG, IMG), dtype=jnp.float32)
    params = init_params(kp)
    prep = prepare_params(params)          # one-time host-side constant folding
    prep = jax.block_until_ready(prep)

    logits = vit_forward(x, prep)
    logits = jax.block_until_ready(logits)
    assert logits.shape == (BATCH, NUM_CLASSES)
    assert bool(jnp.all(jnp.isfinite(logits)))
    print("KERNEL_OK")
</pallas_src>

<mosaic_0001>
module attributes {stable_mosaic.version = 11 : i64} {
  func.func @_vit_kernel(%arg0: i32, %arg1: memref<1x24x64xf32, #tpu.memory_space<vmem>>, %arg2: memref<64x32xf32, #tpu.memory_space<vmem>>, %arg3: memref<24x32xf32, #tpu.memory_space<vmem>>, %arg4: memref<2x32x96xf32, #tpu.memory_space<vmem>>, %arg5: memref<2x32x32xf32, #tpu.memory_space<vmem>>, %arg6: memref<2x32x128xf32, #tpu.memory_space<vmem>>, %arg7: memref<2x128x32xf32, #tpu.memory_space<vmem>>, %arg8: memref<2x8x128xf32, #tpu.memory_space<vmem>>, %arg9: memref<32x128xf32, #tpu.memory_space<vmem>>, %arg10: memref<8x128xf32, #tpu.memory_space<vmem>>, %arg11: memref<1x8x128xf32, #tpu.memory_space<vmem>>) attributes {dimension_semantics = [#tpu.dimension_semantics<parallel>], iteration_bounds = array<i64: 2>, scalar_prefetch = 0 : i64, scratch_operands = 0 : i64, tpu.core_type = #tpu.core_type<tc>, window_params = [{transform_indices = @transform_0, window_bounds = array<i64: 1, 24, 64>}, {pipeline_mode = #tpu.pipeline_mode<synchronous>, transform_indices = @transform_1, window_bounds = array<i64: 64, 32>}, {pipeline_mode = #tpu.pipeline_mode<synchronous>, transform_indices = @transform_2, window_bounds = array<i64: 24, 32>}, {pipeline_mode = #tpu.pipeline_mode<synchronous>, transform_indices = @transform_3, window_bounds = array<i64: 2, 32, 96>}, {pipeline_mode = #tpu.pipeline_mode<synchronous>, transform_indices = @transform_4, window_bounds = array<i64: 2, 32, 32>}, {pipeline_mode = #tpu.pipeline_mode<synchronous>, transform_indices = @transform_5, window_bounds = array<i64: 2, 32, 128>}, {pipeline_mode = #tpu.pipeline_mode<synchronous>, transform_indices = @transform_6, window_bounds = array<i64: 2, 128, 32>}, {pipeline_mode = #tpu.pipeline_mode<synchronous>, transform_indices = @transform_7, window_bounds = array<i64: 2, 8, 128>}, {pipeline_mode = #tpu.pipeline_mode<synchronous>, transform_indices = @transform_8, window_bounds = array<i64: 32, 128>}, {pipeline_mode = #tpu.pipeline_mode<synchronous>, transform_indices = @transform_9, window_bounds = array<i64: 8, 128>}, {transform_indices = @transform_10, window_bounds = array<i64: 1, 8, 128>}]} {
    %c0 = arith.constant 0 : index
    %c0_0 = arith.constant 0 : index
    %c0_1 = arith.constant 0 : index
    %0 = vector.load %arg1[%c0, %c0_0, %c0_1] : memref<1x24x64xf32, #tpu.memory_space<vmem>>, vector<1x24x64xf32>
    %1 = vector.shape_cast %0 : vector<1x24x64xf32> to vector<24x64xf32>
    %c0_2 = arith.constant 0 : index
    %c0_3 = arith.constant 0 : index
    %2 = vector.load %arg2[%c0_2, %c0_3] : memref<64x32xf32, #tpu.memory_space<vmem>>, vector<64x32xf32>
    %cst = arith.constant dense<0.000000e+00> : vector<24x32xf32>
    %3 = tpu.matmul %1, %2, %cst {dimension_numbers = #tpu.dot_dimension_numbers<[1], [0], [0], [1], [0, 0, 1, 1], [], []>} : vector<24x64xf32>, vector<64x32xf32>, vector<24x32xf32> -> vector<24x32xf32>
    %c0_4 = arith.constant 0 : index
    %c0_5 = arith.constant 0 : index
    %4 = vector.load %arg3[%c0_4, %c0_5] : memref<24x32xf32, #tpu.memory_space<vmem>>, vector<24x32xf32>
    %5 = arith.addf %3, %4 : vector<24x32xf32>
    %6 = tpu.iota {dimensions = array<i32: 1>} : vector<1x24xi32>
    %c17_i32 = arith.constant 17 : i32
    %7 = vector.broadcast %c17_i32 : i32 to vector<1x24xi32>
    %8 = arith.cmpi slt, %6, %7 : vector<1x24xi32>
    %cst_6 = arith.constant 0.000000e+00 : f32
    %cst_7 = arith.constant -1.000000e+30 : f32
    %9 = vector.broadcast %cst_6 : f32 to vector<1x24xf32>
    %10 = vector.broadcast %cst_7 : f32 to vector<1x24xf32>
    %11 = arith.select %8, %9, %10 : vector<1x24xi1>, vector<1x24xf32>
    %c0_8 = arith.constant 0 : index
    %c0_9 = arith.constant 0 : index
    %c0_10 = arith.constant 0 : index
    %12 = vector.load %arg8[%c0_8, %c0_9, %c0_10] : memref<2x8x128xf32, #tpu.memory_space<vmem>>, vector<1x8x128xf32>
    %13 = vector.shape_cast %12 : vector<1x8x128xf32> to vector<8x128xf32>
    %14 = vector.extract_strided_slice %13 {offsets = [0, 0], sizes = [1, 32], strides = [1, 1]} : vector<8x128xf32> to vector<1x32xf32>
    %15 = vector.extract_strided_slice %13 {offsets = [1, 0], sizes = [1, 32], strides = [1, 1]} : vector<8x128xf32> to vector<1x32xf32>
    %16 = vector.extract_strided_slice %13 {offsets = [2, 0], sizes = [1, 32], strides = [1, 1]} : vector<8x128xf32> to vector<1x32xf32>
    %17 = vector.extract_strided_slice %13 {offsets = [3, 0], sizes = [1, 32], strides = [1, 1]} : vector<8x128xf32> to vector<1x32xf32>
    %18 = vector.extract_strided_slice %13 {offsets = [4, 0], sizes = [1, 32], strides = [1, 1]} : vector<8x128xf32> to vector<1x32xf32>
    %19 = vector.extract_strided_slice %13 {offsets = [5, 0], sizes = [1, 32], strides = [1, 1]} : vector<8x128xf32> to vector<1x32xf32>
    %20 = vector.extract_strided_slice %13 {offsets = [6, 0], sizes = [1, 96], strides = [1, 1]} : vector<8x128xf32> to vector<1x96xf32>
    %21 = vector.extract_strided_slice %13 {offsets = [7, 0], sizes = [1, 128], strides = [1, 1]} : vector<8x128xf32> to vector<1x128xf32>
    %cst_11 = arith.constant dense<0.000000e+00> : vector<24xf32>
    %22 = vector.multi_reduction <add>, %5, %cst_11 [1] : vector<24x32xf32> to vector<24xf32>
    %23 = vector.shape_cast %22 : vector<24xf32> to vector<24x1xf32>
    %cst_12 = arith.constant 3.200000e+01 : f32
    %24 = vector.broadcast %cst_12 : f32 to vector<24x1xf32>
    %25 = arith.divf %23, %24 : vector<24x1xf32>
    %26 = vector.broadcast %25 : vector<24x1xf32> to vector<24x32xf32>
    %27 = arith.subf %5, %26 : vector<24x32xf32>
    %28 = arith.mulf %27, %27 : vector<24x32xf32>
    %cst_13 = arith.constant dense<0.000000e+00> : vector<24xf32>
    %29 = vector.multi_reduction <add>, %28, %cst_13 [1] : vector<24x32xf32> to vector<24xf32>
    %30 = vector.shape_cast %29 : vector<24xf32> to vector<24x1xf32>
    %cst_14 = arith.constant 3.200000e+01 : f32
    %31 = vector.broadcast %cst_14 : f32 to vector<24x1xf32>
    %32 = arith.divf %30, %31 : vector<24x1xf32>
    %33 = vector.broadcast %25 : vector<24x1xf32> to vector<24x32xf32>
    %34 = arith.subf %5, %33 : vector<24x32xf32>
    %cst_15 = arith.constant 9.99999997E-7 : f32
    %35 = vector.broadcast %cst_15 : f32 to vector<24x1xf32>
    %36 = arith.addf %32, %35 : vector<24x1xf32>
    %37 = math.rsqrt %36 : vector<24x1xf32>
    %38 = vector.broadcast %37 : vector<24x1xf32> to vector<24x32xf32>
    %39 = arith.mulf %34, %38 : vector<24x32xf32>
    %40 = vector.broadcast %14 : vector<1x32xf32> to vector<24x32xf32>
    %41 = arith.mulf %39, %40 : vector<24x32xf32>
    %42 = vector.broadcast %15 : vector<1x32xf32> to vector<24x32xf32>
    %43 = arith.addf %41, %42 : vector<24x32xf32>
    %c0_16 = arith.constant 0 : index
    %c0_17 = arith.constant 0 : index
    %c0_18 = arith.constant 0 : index
    %44 = vector.load %arg4[%c0_16, %c0_17, %c0_18] : memref<2x32x96xf32, #tpu.memory_space<vmem>>, vector<1x32x96xf32>
    %45 = vector.shape_cast %44 : vector<1x32x96xf32> to vector<32x96xf32>
    %cst_19 = arith.constant dense<0.000000e+00> : vector<24x96xf32>
    %46 = tpu.matmul %43, %45, %cst_19 {dimension_numbers = #tpu.dot_dimension_numbers<[1], [0], [0], [1], [0, 0, 1, 1], [], []>} : vector<24x32xf32>, vector<32x96xf32>, vector<24x96xf32> -> vector<24x96xf32>
    %47 = vector.broadcast %20 : vector<1x96xf32> to vector<24x96xf32>
    %48 = arith.addf %46, %47 : vector<24x96xf32>
    %49 = vector.extract_strided_slice %48 {offsets = [0, 0], sizes = [24, 32], strides = [1, 1]} : vector<24x96xf32> to vector<24x32xf32>
    %50 = vector.extract_strided_slice %48 {offsets = [0, 32], sizes = [24, 32], strides = [1, 1]} : vector<24x96xf32> to vector<24x32xf32>
    %51 = vector.extract_strided_slice %48 {offsets = [0, 64], sizes = [24, 32], strides = [1, 1]} : vector<24x96xf32> to vector<24x32xf32>
    %52 = vector.extract_strided_slice %49 {offsets = [0, 0], sizes = [24, 8], strides = [1, 1]} : vector<24x32xf32> to vector<24x8xf32>
    %53 = vector.extract_strided_slice %50 {offsets = [0, 0], sizes = [24, 8], strides = [1, 1]} : vector<24x32xf32> to vector<24x8xf32>
    %54 = vector.extract_strided_slice %51 {offsets = [0, 0], sizes = [24, 8], strides = [1, 1]} : vector<24x32xf32> to vector<24x8xf32>
    %cst_20 = arith.constant dense<0.000000e+00> : vector<24x24xf32>
    %55 = tpu.matmul %52, %53, %cst_20 {dimension_numbers = #tpu.dot_dimension_numbers<[1], [1], [0], [0], [0, 0, 1, 0], [], []>} : vector<24x8xf32>, vector<24x8xf32>, vector<24x24xf32> -> vector<24x24xf32>
    %56 = vector.broadcast %11 : vector<1x24xf32> to vector<24x24xf32>
    %57 = arith.addf %55, %56 : vector<24x24xf32>
    %cst_21 = arith.constant dense<0xFF800000> : vector<24xf32>
    %58 = vector.multi_reduction <maximumf>, %57, %cst_21 [1] : vector<24x24xf32> to vector<24xf32>
    %59 = vector.shape_cast %58 : vector<24xf32> to vector<24x1xf32>
    %60 = vector.broadcast %59 : vector<24x1xf32> to vector<24x24xf32>
    %61 = arith.subf %57, %60 : vector<24x24xf32>
    %62 = math.exp %61 : vector<24x24xf32>
    %cst_22 = arith.constant dense<0.000000e+00> : vector<24xf32>
    %63 = vector.multi_reduction <add>, %62, %cst_22 [1] : vector<24x24xf32> to vector<24xf32>
    %64 = vector.shape_cast %63 : vector<24xf32> to vector<24x1xf32>
    %65 = tpu.reciprocal %64 {approx = true} : vector<24x1xf32> -> vector<24x1xf32>
    %66 = vector.broadcast %65 : vector<24x1xf32> to vector<24x24xf32>
    %67 = arith.mulf %62, %66 : vector<24x24xf32>
    %cst_23 = arith.constant dense<0.000000e+00> : vector<24x8xf32>
    %68 = tpu.matmul %67, %54, %cst_23 {dimension_numbers = #tpu.dot_dimension_numbers<[1], [0], [0], [1], [0, 0, 1, 1], [], []>} : vector<24x24xf32>, vector<24x8xf32>, vector<24x8xf32> -> vector<24x8xf32>
    %69 = vector.extract_strided_slice %49 {offsets = [0, 8], sizes = [24, 8], strides = [1, 1]} : vector<24x32xf32> to vector<24x8xf32>
    %70 = vector.extract_strided_slice %50 {offsets = [0, 8], sizes = [24, 8], strides = [1, 1]} : vector<24x32xf32> to vector<24x8xf32>
    %71 = vector.extract_strided_slice %51 {offsets = [0, 8], sizes = [24, 8], strides = [1, 1]} : vector<24x32xf32> to vector<24x8xf32>
    %cst_24 = arith.constant dense<0.000000e+00> : vector<24x24xf32>
    %72 = tpu.matmul %69, %70, %cst_24 {dimension_numbers = #tpu.dot_dimension_numbers<[1], [1], [0], [0], [0, 0, 1, 0], [], []>} : vector<24x8xf32>, vector<24x8xf32>, vector<24x24xf32> -> vector<24x24xf32>
    %73 = vector.broadcast %11 : vector<1x24xf32> to vector<24x24xf32>
    %74 = arith.addf %72, %73 : vector<24x24xf32>
    %cst_25 = arith.constant dense<0xFF800000> : vector<24xf32>
    %75 = vector.multi_reduction <maximumf>, %74, %cst_25 [1] : vector<24x24xf32> to vector<24xf32>
    %76 = vector.shape_cast %75 : vector<24xf32> to vector<24x1xf32>
    %77 = vector.broadcast %76 : vector<24x1xf32> to vector<24x24xf32>
    %78 = arith.subf %74, %77 : vector<24x24xf32>
    %79 = math.exp %78 : vector<24x24xf32>
    %cst_26 = arith.constant dense<0.000000e+00> : vector<24xf32>
    %80 = vector.multi_reduction <add>, %79, %cst_26 [1] : vector<24x24xf32> to vector<24xf32>
    %81 = vector.shape_cast %80 : vector<24xf32> to vector<24x1xf32>
    %82 = tpu.reciprocal %81 {approx = true} : vector<24x1xf32> -> vector<24x1xf32>
    %83 = vector.broadcast %82 : vector<24x1xf32> to vector<24x24xf32>
    %84 = arith.mulf %79, %83 : vector<24x24xf32>
    %cst_27 = arith.constant dense<0.000000e+00> : vector<24x8xf32>
    %85 = tpu.matmul %84, %71, %cst_27 {dimension_numbers = #tpu.dot_dimension_numbers<[1], [0], [0], [1], [0, 0, 1, 1], [], []>} : vector<24x24xf32>, vector<24x8xf32>, vector<24x8xf32> -> vector<24x8xf32>
    %86 = vector.extract_strided_slice %49 {offsets = [0, 16], sizes = [24, 8], strides = [1, 1]} : vector<24x32xf32> to vector<24x8xf32>
    %87 = vector.extract_strided_slice %50 {offsets = [0, 16], sizes = [24, 8], strides = [1, 1]} : vector<24x32xf32> to vector<24x8xf32>
    %88 = vector.extract_strided_slice %51 {offsets = [0, 16], sizes = [24, 8], strides = [1, 1]} : vector<24x32xf32> to vector<24x8xf32>
    %cst_28 = arith.constant dense<0.000000e+00> : vector<24x24xf32>
    %89 = tpu.matmul %86, %87, %cst_28 {dimension_numbers = #tpu.dot_dimension_numbers<[1], [1], [0], [0], [0, 0, 1, 0], [], []>} : vector<24x8xf32>, vector<24x8xf32>, vector<24x24xf32> -> vector<24x24xf32>
    %90 = vector.broadcast %11 : vector<1x24xf32> to vector<24x24xf32>
    %91 = arith.addf %89, %90 : vector<24x24xf32>
    %cst_29 = arith.constant dense<0xFF800000> : vector<24xf32>
    %92 = vector.multi_reduction <maximumf>, %91, %cst_29 [1] : vector<24x24xf32> to vector<24xf32>
    %93 = vector.shape_cast %92 : vector<24xf32> to vector<24x1xf32>
    %94 = vector.broadcast %93 : vector<24x1xf32> to vector<24x24xf32>
    %95 = arith.subf %91, %94 : vector<24x24xf32>
    %96 = math.exp %95 : vector<24x24xf32>
    %cst_30 = arith.constant dense<0.000000e+00> : vector<24xf32>
    %97 = vector.multi_reduction <add>, %96, %cst_30 [1] : vector<24x24xf32> to vector<24xf32>
    %98 = vector.shape_cast %97 : vector<24xf32> to vector<24x1xf32>
    %99 = tpu.reciprocal %98 {approx = true} : vector<24x1xf32> -> vector<24x1xf32>
    %100 = vector.broadcast %99 : vector<24x1xf32> to vector<24x24xf32>
    %101 = arith.mulf %96, %100 : vector<24x24xf32>
    %cst_31 = arith.constant dense<0.000000e+00> : vector<24x8xf32>
    %102 = tpu.matmul %101, %88, %cst_31 {dimension_numbers = #tpu.dot_dimension_numbers<[1], [0], [0], [1], [0, 0, 1, 1], [], []>} : vector<24x24xf32>, vector<24x8xf32>, vector<24x8xf32> -> vector<24x8xf32>
    %103 = vector.extract_strided_slice %49 {offsets = [0, 24], sizes = [24, 8], strides = [1, 1]} : vector<24x32xf32> to vector<24x8xf32>
    %104 = vector.extract_strided_slice %50 {offsets = [0, 24], sizes = [24, 8], strides = [1, 1]} : vector<24x32xf32> to vector<24x8xf32>
    %105 = vector.extract_strided_slice %51 {offsets = [0, 24], sizes = [24, 8], strides = [1, 1]} : vector<24x32xf32> to vector<24x8xf32>
    %cst_32 = arith.constant dense<0.000000e+00> : vector<24x24xf32>
    %106 = tpu.matmul %103, %104, %cst_32 {dimension_numbers = #tpu.dot_dimension_numbers<[1], [1], [0], [0], [0, 0, 1, 0], [], []>} : vector<24x8xf32>, vector<24x8xf32>, vector<24x24xf32> -> vector<24x24xf32>
    %107 = vector.broadcast %11 : vector<1x24xf32> to vector<24x24xf32>
    %108 = arith.addf %106, %107 : vector<24x24xf32>
    %cst_33 = arith.constant dense<0xFF800000> : vector<24xf32>
    %109 = vector.multi_reduction <maximumf>, %108, %cst_33 [1] : vector<24x24xf32> to vector<24xf32>
    %110 = vector.shape_cast %109 : vector<24xf32> to vector<24x1xf32>
    %111 = vector.broadcast %110 : vector<24x1xf32> to vector<24x24xf32>
    %112 = arith.subf %108, %111 : vector<24x24xf32>
    %113 = math.exp %112 : vector<24x24xf32>
    %cst_34 = arith.constant dense<0.000000e+00> : vector<24xf32>
    %114 = vector.multi_reduction <add>, %113, %cst_34 [1] : vector<24x24xf32> to vector<24xf32>
    %115 = vector.shape_cast %114 : vector<24xf32> to vector<24x1xf32>
    %116 = tpu.reciprocal %115 {approx = true} : vector<24x1xf32> -> vector<24x1xf32>
    %117 = vector.broadcast %116 : vector<24x1xf32> to vector<24x24xf32>
    %118 = arith.mulf %113, %117 : vector<24x24xf32>
    %cst_35 = arith.constant dense<0.000000e+00> : vector<24x8xf32>
    %119 = tpu.matmul %118, %105, %cst_35 {dimension_numbers = #tpu.dot_dimension_numbers<[1], [0], [0], [1], [0, 0, 1, 1], [], []>} : vector<24x24xf32>, vector<24x8xf32>, vector<24x8xf32> -> vector<24x8xf32>
    %120 = tpu.concatenate %68, %85, %102, %119 in 1 : vector<24x8xf32>, vector<24x8xf32>, vector<24x8xf32>, vector<24x8xf32> -> vector<24x32xf32>
    %c0_36 = arith.constant 0 : index
    %c0_37 = arith.constant 0 : index
    %c0_38 = arith.constant 0 : index
    %121 = vector.load %arg5[%c0_36, %c0_37, %c0_38] : memref<2x32x32xf32, #tpu.memory_space<vmem>>, vector<1x32x32xf32>
    %122 = vector.shape_cast %121 : vector<1x32x32xf32> to vector<32x32xf32>
    %cst_39 = arith.constant dense<0.000000e+00> : vector<24x32xf32>
    %123 = tpu.matmul %120, %122, %cst_39 {dimension_numbers = #tpu.dot_dimension_numbers<[1], [0], [0], [1], [0, 0, 1, 1], [], []>} : vector<24x32xf32>, vector<32x32xf32>, vector<24x32xf32> -> vector<24x32xf32>
    %124 = arith.addf %5, %123 : vector<24x32xf32>
    %125 = vector.broadcast %18 : vector<1x32xf32> to vector<24x32xf32>
    %126 = arith.addf %124, %125 : vector<24x32xf32>
    %cst_40 = arith.constant dense<0.000000e+00> : vector<24xf32>
    %127 = vector.multi_reduction <add>, %126, %cst_40 [1] : vector<24x32xf32> to vector<24xf32>
    %128 = vector.shape_cast %127 : vector<24xf32> to vector<24x1xf32>
    %cst_41 = arith.constant 3.200000e+01 : f32
    %129 = vector.broadcast %cst_41 : f32 to vector<24x1xf32>
    %130 = arith.divf %128, %129 : vector<24x1xf32>
    %131 = vector.broadcast %130 : vector<24x1xf32> to vector<24x32xf32>
    %132 = arith.subf %126, %131 : vector<24x32xf32>
    %133 = arith.mulf %132, %132 : vector<24x32xf32>
    %cst_42 = arith.constant dense<0.000000e+00> : vector<24xf32>
    %134 = vector.multi_reduction <add>, %133, %cst_42 [1] : vector<24x32xf32> to vector<24xf32>
    %135 = vector.shape_cast %134 : vector<24xf32> to vector<24x1xf32>
    %cst_43 = arith.constant 3.200000e+01 : f32
    %136 = vector.broadcast %cst_43 : f32 to vector<24x1xf32>
    %137 = arith.divf %135, %136 : vector<24x1xf32>
    %138 = vector.broadcast %130 : vector<24x1xf32> to vector<24x32xf32>
    %139 = arith.subf %126, %138 : vector<24x32xf32>
    %cst_44 = arith.constant 9.99999997E-7 : f32
    %140 = vector.broadcast %cst_44 : f32 to vector<24x1xf32>
    %141 = arith.addf %137, %140 : vector<24x1xf32>
    %142 = math.rsqrt %141 : vector<24x1xf32>
    %143 = vector.broadcast %142 : vector<24x1xf32> to vector<24x32xf32>
    %144 = arith.mulf %139, %143 : vector<24x32xf32>
    %145 = vector.broadcast %16 : vector<1x32xf32> to vector<24x32xf32>
    %146 = arith.mulf %144, %145 : vector<24x32xf32>
    %147 = vector.broadcast %17 : vector<1x32xf32> to vector<24x32xf32>
    %148 = arith.addf %146, %147 : vector<24x32xf32>
    %c0_45 = arith.constant 0 : index
    %c0_46 = arith.constant 0 : index
    %c0_47 = arith.constant 0 : index
    %149 = vector.load %arg6[%c0_45, %c0_46, %c0_47] : memref<2x32x128xf32, #tpu.memory_space<vmem>>, vector<1x32x128xf32>
    %150 = vector.shape_cast %149 : vector<1x32x128xf32> to vector<32x128xf32>
    %cst_48 = arith.constant dense<0.000000e+00> : vector<24x128xf32>
    %151 = tpu.matmul %148, %150, %cst_48 {dimension_numbers = #tpu.dot_dimension_numbers<[1], [0], [0], [1], [0, 0, 1, 1], [], []>} : vector<24x32xf32>, vector<32x128xf32>, vector<24x128xf32> -> vector<24x128xf32>
    %152 = vector.broadcast %21 : vector<1x128xf32> to vector<24x128xf32>
    %153 = arith.addf %151, %152 : vector<24x128xf32>
    %154 = arith.mulf %153, %153 : vector<24x128xf32>
    %155 = arith.mulf %153, %154 : vector<24x128xf32>
    %cst_49 = arith.constant 4.471500e-02 : f32
    %156 = vector.broadcast %cst_49 : f32 to vector<24x128xf32>
    %157 = arith.mulf %156, %155 : vector<24x128xf32>
    %158 = arith.addf %153, %157 : vector<24x128xf32>
    %cst_50 = arith.constant 0.797884583 : f32
    %159 = vector.broadcast %cst_50 : f32 to vector<24x128xf32>
    %160 = arith.mulf %159, %158 : vector<24x128xf32>
    %161 = math.tanh %160 : vector<24x128xf32>
    %cst_51 = arith.constant 1.000000e+00 : f32
    %162 = vector.broadcast %cst_51 : f32 to vector<24x128xf32>
    %163 = arith.addf %162, %161 : vector<24x128xf32>
    %cst_52 = arith.constant 5.000000e-01 : f32
    %164 = vector.broadcast %cst_52 : f32 to vector<24x128xf32>
    %165 = arith.mulf %164, %163 : vector<24x128xf32>
    %166 = arith.mulf %153, %165 : vector<24x128xf32>
    %c0_53 = arith.constant 0 : index
    %c0_54 = arith.constant 0 : index
    %c0_55 = arith.constant 0 : index
    %167 = vector.load %arg7[%c0_53, %c0_54, %c0_55] : memref<2x128x32xf32, #tpu.memory_space<vmem>>, vector<1x128x32xf32>
    %168 = vector.shape_cast %167 : vector<1x128x32xf32> to vector<128x32xf32>
    %cst_56 = arith.constant dense<0.000000e+00> : vector<24x32xf32>
    %169 = tpu.matmul %166, %168, %cst_56 {dimension_numbers = #tpu.dot_dimension_numbers<[1], [0], [0], [1], [0, 0, 1, 1], [], []>} : vector<24x128xf32>, vector<128x32xf32>, vector<24x32xf32> -> vector<24x32xf32>
    %170 = vector.broadcast %19 : vector<1x32xf32> to vector<24x32xf32>
    %171 = arith.addf %169, %170 : vector<24x32xf32>
    %172 = arith.addf %126, %171 : vector<24x32xf32>
    %c1 = arith.constant 1 : index
    %c0_57 = arith.constant 0 : index
    %c0_58 = arith.constant 0 : index
    %173 = vector.load %arg8[%c1, %c0_57, %c0_58] : memref<2x8x128xf32, #tpu.memory_space<vmem>>, vector<1x8x128xf32>
    %174 = vector.shape_cast %173 : vector<1x8x128xf32> to vector<8x128xf32>
    %175 = vector.extract_strided_slice %174 {offsets = [0, 0], sizes = [1, 32], strides = [1, 1]} : vector<8x128xf32> to vector<1x32xf32>
    %176 = vector.extract_strided_slice %174 {offsets = [1, 0], sizes = [1, 32], strides = [1, 1]} : vector<8x128xf32> to vector<1x32xf32>
    %177 = vector.extract_strided_slice %174 {offsets = [2, 0], sizes = [1, 32], strides = [1, 1]} : vector<8x128xf32> to vector<1x32xf32>
    %178 = vector.extract_strided_slice %174 {offsets = [3, 0], sizes = [1, 32], strides = [1, 1]} : vector<8x128xf32> to vector<1x32xf32>
    %179 = vector.extract_strided_slice %174 {offsets = [4, 0], sizes = [1, 32], strides = [1, 1]} : vector<8x128xf32> to vector<1x32xf32>
    %180 = vector.extract_strided_slice %174 {offsets = [5, 0], sizes = [1, 32], strides = [1, 1]} : vector<8x128xf32> to vector<1x32xf32>
    %181 = vector.extract_strided_slice %174 {offsets = [6, 0], sizes = [1, 96], strides = [1, 1]} : vector<8x128xf32> to vector<1x96xf32>
    %182 = vector.extract_strided_slice %174 {offsets = [7, 0], sizes = [1, 128], strides = [1, 1]} : vector<8x128xf32> to vector<1x128xf32>
    %cst_59 = arith.constant dense<0.000000e+00> : vector<24xf32>
    %183 = vector.multi_reduction <add>, %172, %cst_59 [1] : vector<24x32xf32> to vector<24xf32>
    %184 = vector.shape_cast %183 : vector<24xf32> to vector<24x1xf32>
    %cst_60 = arith.constant 3.200000e+01 : f32
    %185 = vector.broadcast %cst_60 : f32 to vector<24x1xf32>
    %186 = arith.divf %184, %185 : vector<24x1xf32>
    %187 = vector.broadcast %186 : vector<24x1xf32> to vector<24x32xf32>
    %188 = arith.subf %172, %187 : vector<24x32xf32>
    %189 = arith.mulf %188, %188 : vector<24x32xf32>
    %cst_61 = arith.constant dense<0.000000e+00> : vector<24xf32>
    %190 = vector.multi_reduction <add>, %189, %cst_61 [1] : vector<24x32xf32> to vector<24xf32>
    %191 = vector.shape_cast %190 : vector<24xf32> to vector<24x1xf32>
    %cst_62 = arith.constant 3.200000e+01 : f32
    %192 = vector.broadcast %cst_62 : f32 to vector<24x1xf32>
    %193 = arith.divf %191, %192 : vector<24x1xf32>
    %194 = vector.broadcast %186 : vector<24x1xf32> to vector<24x32xf32>
    %195 = arith.subf %172, %194 : vector<24x32xf32>
    %cst_63 = arith.constant 9.99999997E-7 : f32
    %196 = vector.broadcast %cst_63 : f32 to vector<24x1xf32>
    %197 = arith.addf %193, %196 : vector<24x1xf32>
    %198 = math.rsqrt %197 : vector<24x1xf32>
    %199 = vector.broadcast %198 : vector<24x1xf32> to vector<24x32xf32>
    %200 = arith.mulf %195, %199 : vector<24x32xf32>
    %201 = vector.broadcast %175 : vector<1x32xf32> to vector<24x32xf32>
    %202 = arith.mulf %200, %201 : vector<24x32xf32>
    %203 = vector.broadcast %176 : vector<1x32xf32> to vector<24x32xf32>
    %204 = arith.addf %202, %203 : vector<24x32xf32>
    %c1_64 = arith.constant 1 : index
    %c0_65 = arith.constant 0 : index
    %c0_66 = arith.constant 0 : index
    %205 = vector.load %arg4[%c1_64, %c0_65, %c0_66] : memref<2x32x96xf32, #tpu.memory_space<vmem>>, vector<1x32x96xf32>
    %206 = vector.shape_cast %205 : vector<1x32x96xf32> to vector<32x96xf32>
    %cst_67 = arith.constant dense<0.000000e+00> : vector<24x96xf32>
    %207 = tpu.matmul %204, %206, %cst_67 {dimension_numbers = #tpu.dot_dimension_numbers<[1], [0], [0], [1], [0, 0, 1, 1], [], []>} : vector<24x32xf32>, vector<32x96xf32>, vector<24x96xf32> -> vector<24x96xf32>
    %208 = vector.broadcast %181 : vector<1x96xf32> to vector<24x96xf32>
    %209 = arith.addf %207, %208 : vector<24x96xf32>
    %210 = vector.extract_strided_slice %209 {offsets = [0, 0], sizes = [24, 32], strides = [1, 1]} : vector<24x96xf32> to vector<24x32xf32>
    %211 = vector.extract_strided_slice %209 {offsets = [0, 32], sizes = [24, 32], strides = [1, 1]} : vector<24x96xf32> to vector<24x32xf32>
    %212 = vector.extract_strided_slice %209 {offsets = [0, 64], sizes = [24, 32], strides = [1, 1]} : vector<24x96xf32> to vector<24x32xf32>
    %213 = vector.extract_strided_slice %210 {offsets = [0, 0], sizes = [24, 8], strides = [1, 1]} : vector<24x32xf32> to vector<24x8xf32>
    %214 = vector.extract_strided_slice %211 {offsets = [0, 0], sizes = [24, 8], strides = [1, 1]} : vector<24x32xf32> to vector<24x8xf32>
    %215 = vector.extract_strided_slice %212 {offsets = [0, 0], sizes = [24, 8], strides = [1, 1]} : vector<24x32xf32> to vector<24x8xf32>
    %cst_68 = arith.constant dense<0.000000e+00> : vector<24x24xf32>
    %216 = tpu.matmul %213, %214, %cst_68 {dimension_numbers = #tpu.dot_dimension_numbers<[1], [1], [0], [0], [0, 0, 1, 0], [], []>} : vector<24x8xf32>, vector<24x8xf32>, vector<24x24xf32> -> vector<24x24xf32>
    %217 = vector.broadcast %11 : vector<1x24xf32> to vector<24x24xf32>
    %218 = arith.addf %216, %217 : vector<24x24xf32>
    %cst_69 = arith.constant dense<0xFF800000> : vector<24xf32>
    %219 = vector.multi_reduction <maximumf>, %218, %cst_69 [1] : vector<24x24xf32> to vector<24xf32>
    %220 = vector.shape_cast %219 : vector<24xf32> to vector<24x1xf32>
    %221 = vector.broadcast %220 : vector<24x1xf32> to vector<24x24xf32>
    %222 = arith.subf %218, %221 : vector<24x24xf32>
    %223 = math.exp %222 : vector<24x24xf32>
    %cst_70 = arith.constant dense<0.000000e+00> : vector<24xf32>
    %224 = vector.multi_reduction <add>, %223, %cst_70 [1] : vector<24x24xf32> to vector<24xf32>
    %225 = vector.shape_cast %224 : vector<24xf32> to vector<24x1xf32>
    %226 = tpu.reciprocal %225 {approx = true} : vector<24x1xf32> -> vector<24x1xf32>
    %227 = vector.broadcast %226 : vector<24x1xf32> to vector<24x24xf32>
    %228 = arith.mulf %223, %227 : vector<24x24xf32>
    %cst_71 = arith.constant dense<0.000000e+00> : vector<24x8xf32>
    %229 = tpu.matmul %228, %215, %cst_71 {dimension_numbers = #tpu.dot_dimension_numbers<[1], [0], [0], [1], [0, 0, 1, 1], [], []>} : vector<24x24xf32>, vector<24x8xf32>, vector<24x8xf32> -> vector<24x8xf32>
    %230 = vector.extract_strided_slice %210 {offsets = [0, 8], sizes = [24, 8], strides = [1, 1]} : vector<24x32xf32> to vector<24x8xf32>
    %231 = vector.extract_strided_slice %211 {offsets = [0, 8], sizes = [24, 8], strides = [1, 1]} : vector<24x32xf32> to vector<24x8xf32>
    %232 = vector.extract_strided_slice %212 {offsets = [0, 8], sizes = [24, 8], strides = [1, 1]} : vector<24x32xf32> to vector<24x8xf32>
    %cst_72 = arith.constant dense<0.000000e+00> : vector<24x24xf32>
    %233 = tpu.matmul %230, %231, %cst_72 {dimension_numbers = #tpu.dot_dimension_numbers<[1], [1], [0], [0], [0, 0, 1, 0], [], []>} : vector<24x8xf32>, vector<24x8xf32>, vector<24x24xf32> -> vector<24x24xf32>
    %234 = vector.broadcast %11 : vector<1x24xf32> to vector<24x24xf32>
    %235 = arith.addf %233, %234 : vector<24x24xf32>
    %cst_73 = arith.constant dense<0xFF800000> : vector<24xf32>
    %236 = vector.multi_reduction <maximumf>, %235, %cst_73 [1] : vector<24x24xf32> to vector<24xf32>
    %237 = vector.shape_cast %236 : vector<24xf32> to vector<24x1xf32>
    %238 = vector.broadcast %237 : vector<24x1xf32> to vector<24x24xf32>
    %239 = arith.subf %235, %238 : vector<24x24xf32>
    %240 = math.exp %239 : vector<24x24xf32>
    %cst_74 = arith.constant dense<0.000000e+00> : vector<24xf32>
    %241 = vector.multi_reduction <add>, %240, %cst_74 [1] : vector<24x24xf32> to vector<24xf32>
    %242 = vector.shape_cast %241 : vector<24xf32> to vector<24x1xf32>
    %243 = tpu.reciprocal %242 {approx = true} : vector<24x1xf32> -> vector<24x1xf32>
    %244 = vector.broadcast %243 : vector<24x1xf32> to vector<24x24xf32>
    %245 = arith.mulf %240, %244 : vector<24x24xf32>
    %cst_75 = arith.constant dense<0.000000e+00> : vector<24x8xf32>
    %246 = tpu.matmul %245, %232, %cst_75 {dimension_numbers = #tpu.dot_dimension_numbers<[1], [0], [0], [1], [0, 0, 1, 1], [], []>} : vector<24x24xf32>, vector<24x8xf32>, vector<24x8xf32> -> vector<24x8xf32>
    %247 = vector.extract_strided_slice %210 {offsets = [0, 16], sizes = [24, 8], strides = [1, 1]} : vector<24x32xf32> to vector<24x8xf32>
    %248 = vector.extract_strided_slice %211 {offsets = [0, 16], sizes = [24, 8], strides = [1, 1]} : vector<24x32xf32> to vector<24x8xf32>
    %249 = vector.extract_strided_slice %212 {offsets = [0, 16], sizes = [24, 8], strides = [1, 1]} : vector<24x32xf32> to vector<24x8xf32>
    %cst_76 = arith.constant dense<0.000000e+00> : vector<24x24xf32>
    %250 = tpu.matmul %247, %248, %cst_76 {dimension_numbers = #tpu.dot_dimension_numbers<[1], [1], [0], [0], [0, 0, 1, 0], [], []>} : vector<24x8xf32>, vector<24x8xf32>, vector<24x24xf32> -> vector<24x24xf32>
    %251 = vector.broadcast %11 : vector<1x24xf32> to vector<24x24xf32>
    %252 = arith.addf %250, %251 : vector<24x24xf32>
    %cst_77 = arith.constant dense<0xFF800000> : vector<24xf32>
    %253 = vector.multi_reduction <maximumf>, %252, %cst_77 [1] : vector<24x24xf32> to vector<24xf32>
    %254 = vector.shape_cast %253 : vector<24xf32> to vector<24x1xf32>
    %255 = vector.broadcast %254 : vector<24x1xf32> to vector<24x24xf32>
    %256 = arith.subf %252, %255 : vector<24x24xf32>
    %257 = math.exp %256 : vector<24x24xf32>
    %cst_78 = arith.constant dense<0.000000e+00> : vector<24xf32>
    %258 = vector.multi_reduction <add>, %257, %cst_78 [1] : vector<24x24xf32> to vector<24xf32>
    %259 = vector.shape_cast %258 : vector<24xf32> to vector<24x1xf32>
    %260 = tpu.reciprocal %259 {approx = true} : vector<24x1xf32> -> vector<24x1xf32>
    %261 = vector.broadcast %260 : vector<24x1xf32> to vector<24x24xf32>
    %262 = arith.mulf %257, %261 : vector<24x24xf32>
    %cst_79 = arith.constant dense<0.000000e+00> : vector<24x8xf32>
    %263 = tpu.matmul %262, %249, %cst_79 {dimension_numbers = #tpu.dot_dimension_numbers<[1], [0], [0], [1], [0, 0, 1, 1], [], []>} : vector<24x24xf32>, vector<24x8xf32>, vector<24x8xf32> -> vector<24x8xf32>
    %264 = vector.extract_strided_slice %210 {offsets = [0, 24], sizes = [24, 8], strides = [1, 1]} : vector<24x32xf32> to vector<24x8xf32>
    %265 = vector.extract_strided_slice %211 {offsets = [0, 24], sizes = [24, 8], strides = [1, 1]} : vector<24x32xf32> to vector<24x8xf32>
    %266 = vector.extract_strided_slice %212 {offsets = [0, 24], sizes = [24, 8], strides = [1, 1]} : vector<24x32xf32> to vector<24x8xf32>
    %cst_80 = arith.constant dense<0.000000e+00> : vector<24x24xf32>
    %267 = tpu.matmul %264, %265, %cst_80 {dimension_numbers = #tpu.dot_dimension_numbers<[1], [1], [0], [0], [0, 0, 1, 0], [], []>} : vector<24x8xf32>, vector<24x8xf32>, vector<24x24xf32> -> vector<24x24xf32>
    %268 = vector.broadcast %11 : vector<1x24xf32> to vector<24x24xf32>
    %269 = arith.addf %267, %268 : vector<24x24xf32>
    %cst_81 = arith.constant dense<0xFF800000> : vector<24xf32>
    %270 = vector.multi_reduction <maximumf>, %269, %cst_81 [1] : vector<24x24xf32> to vector<24xf32>
    %271 = vector.shape_cast %270 : vector<24xf32> to vector<24x1xf32>
    %272 = vector.broadcast %271 : vector<24x1xf32> to vector<24x24xf32>
    %273 = arith.subf %269, %272 : vector<24x24xf32>
    %274 = math.exp %273 : vector<24x24xf32>
    %cst_82 = arith.constant dense<0.000000e+00> : vector<24xf32>
    %275 = vector.multi_reduction <add>, %274, %cst_82 [1] : vector<24x24xf32> to vector<24xf32>
    %276 = vector.shape_cast %275 : vector<24xf32> to vector<24x1xf32>
    %277 = tpu.reciprocal %276 {approx = true} : vector<24x1xf32> -> vector<24x1xf32>
    %278 = vector.broadcast %277 : vector<24x1xf32> to vector<24x24xf32>
    %279 = arith.mulf %274, %278 : vector<24x24xf32>
    %cst_83 = arith.constant dense<0.000000e+00> : vector<24x8xf32>
    %280 = tpu.matmul %279, %266, %cst_83 {dimension_numbers = #tpu.dot_dimension_numbers<[1], [0], [0], [1], [0, 0, 1, 1], [], []>} : vector<24x24xf32>, vector<24x8xf32>, vector<24x8xf32> -> vector<24x8xf32>
    %281 = tpu.concatenate %229, %246, %263, %280 in 1 : vector<24x8xf32>, vector<24x8xf32>, vector<24x8xf32>, vector<24x8xf32> -> vector<24x32xf32>
    %c1_84 = arith.constant 1 : index
    %c0_85 = arith.constant 0 : index
    %c0_86 = arith.constant 0 : index
    %282 = vector.load %arg5[%c1_84, %c0_85, %c0_86] : memref<2x32x32xf32, #tpu.memory_space<vmem>>, vector<1x32x32xf32>
    %283 = vector.shape_cast %282 : vector<1x32x32xf32> to vector<32x32xf32>
    %cst_87 = arith.constant dense<0.000000e+00> : vector<24x32xf32>
    %284 = tpu.matmul %281, %283, %cst_87 {dimension_numbers = #tpu.dot_dimension_numbers<[1], [0], [0], [1], [0, 0, 1, 1], [], []>} : vector<24x32xf32>, vector<32x32xf32>, vector<24x32xf32> -> vector<24x32xf32>
    %285 = arith.addf %172, %284 : vector<24x32xf32>
    %286 = vector.broadcast %179 : vector<1x32xf32> to vector<24x32xf32>
    %287 = arith.addf %285, %286 : vector<24x32xf32>
    %cst_88 = arith.constant dense<0.000000e+00> : vector<24xf32>
    %288 = vector.multi_reduction <add>, %287, %cst_88 [1] : vector<24x32xf32> to vector<24xf32>
    %289 = vector.shape_cast %288 : vector<24xf32> to vector<24x1xf32>
    %cst_89 = arith.constant 3.200000e+01 : f32
    %290 = vector.broadcast %cst_89 : f32 to vector<24x1xf32>
    %291 = arith.divf %289, %290 : vector<24x1xf32>
    %292 = vector.broadcast %291 : vector<24x1xf32> to vector<24x32xf32>
    %293 = arith.subf %287, %292 : vector<24x32xf32>
    %294 = arith.mulf %293, %293 : vector<24x32xf32>
    %cst_90 = arith.constant dense<0.000000e+00> : vector<24xf32>
    %295 = vector.multi_reduction <add>, %294, %cst_90 [1] : vector<24x32xf32> to vector<24xf32>
    %296 = vector.shape_cast %295 : vector<24xf32> to vector<24x1xf32>
    %cst_91 = arith.constant 3.200000e+01 : f32
    %297 = vector.broadcast %cst_91 : f32 to vector<24x1xf32>
    %298 = arith.divf %296, %297 : vector<24x1xf32>
    %299 = vector.broadcast %291 : vector<24x1xf32> to vector<24x32xf32>
    %300 = arith.subf %287, %299 : vector<24x32xf32>
    %cst_92 = arith.constant 9.99999997E-7 : f32
    %301 = vector.broadcast %cst_92 : f32 to vector<24x1xf32>
    %302 = arith.addf %298, %301 : vector<24x1xf32>
    %303 = math.rsqrt %302 : vector<24x1xf32>
    %304 = vector.broadcast %303 : vector<24x1xf32> to vector<24x32xf32>
    %305 = arith.mulf %300, %304 : vector<24x32xf32>
    %306 = vector.broadcast %177 : vector<1x32xf32> to vector<24x32xf32>
    %307 = arith.mulf %305, %306 : vector<24x32xf32>
    %308 = vector.broadcast %178 : vector<1x32xf32> to vector<24x32xf32>
    %309 = arith.addf %307, %308 : vector<24x32xf32>
    %c1_93 = arith.constant 1 : index
    %c0_94 = arith.constant 0 : index
    %c0_95 = arith.constant 0 : index
    %310 = vector.load %arg6[%c1_93, %c0_94, %c0_95] : memref<2x32x128xf32, #tpu.memory_space<vmem>>, vector<1x32x128xf32>
    %311 = vector.shape_cast %310 : vector<1x32x128xf32> to vector<32x128xf32>
    %cst_96 = arith.constant dense<0.000000e+00> : vector<24x128xf32>
    %312 = tpu.matmul %309, %311, %cst_96 {dimension_numbers = #tpu.dot_dimension_numbers<[1], [0], [0], [1], [0, 0, 1, 1], [], []>} : vector<24x32xf32>, vector<32x128xf32>, vector<24x128xf32> -> vector<24x128xf32>
    %313 = vector.broadcast %182 : vector<1x128xf32> to vector<24x128xf32>
    %314 = arith.addf %312, %313 : vector<24x128xf32>
    %315 = arith.mulf %314, %314 : vector<24x128xf32>
    %316 = arith.mulf %314, %315 : vector<24x128xf32>
    %cst_97 = arith.constant 4.471500e-02 : f32
    %317 = vector.broadcast %cst_97 : f32 to vector<24x128xf32>
    %318 = arith.mulf %317, %316 : vector<24x128xf32>
    %319 = arith.addf %314, %318 : vector<24x128xf32>
    %cst_98 = arith.constant 0.797884583 : f32
    %320 = vector.broadcast %cst_98 : f32 to vector<24x128xf32>
    %321 = arith.mulf %320, %319 : vector<24x128xf32>
    %322 = math.tanh %321 : vector<24x128xf32>
    %cst_99 = arith.constant 1.000000e+00 : f32
    %323 = vector.broadcast %cst_99 : f32 to vector<24x128xf32>
    %324 = arith.addf %323, %322 : vector<24x128xf32>
    %cst_100 = arith.constant 5.000000e-01 : f32
    %325 = vector.broadcast %cst_100 : f32 to vector<24x128xf32>
    %326 = arith.mulf %325, %324 : vector<24x128xf32>
    %327 = arith.mulf %314, %326 : vector<24x128xf32>
    %c1_101 = arith.constant 1 : index
    %c0_102 = arith.constant 0 : index
    %c0_103 = arith.constant 0 : index
    %328 = vector.load %arg7[%c1_101, %c0_102, %c0_103] : memref<2x128x32xf32, #tpu.memory_space<vmem>>, vector<1x128x32xf32>
    %329 = vector.shape_cast %328 : vector<1x128x32xf32> to vector<128x32xf32>
    %cst_104 = arith.constant dense<0.000000e+00> : vector<24x32xf32>
    %330 = tpu.matmul %327, %329, %cst_104 {dimension_numbers = #tpu.dot_dimension_numbers<[1], [0], [0], [1], [0, 0, 1, 1], [], []>} : vector<24x128xf32>, vector<128x32xf32>, vector<24x32xf32> -> vector<24x32xf32>
    %331 = vector.broadcast %180 : vector<1x32xf32> to vector<24x32xf32>
    %332 = arith.addf %330, %331 : vector<24x32xf32>
    %333 = arith.addf %287, %332 : vector<24x32xf32>
    %c0_105 = arith.constant 0 : index
    %c0_106 = arith.constant 0 : index
    %334 = vector.load %arg10[%c0_105, %c0_106] : memref<8x128xf32, #tpu.memory_space<vmem>>, vector<8x128xf32>
    %335 = vector.extract_strided_slice %334 {offsets = [0, 0], sizes = [1, 32], strides = [1, 1]} : vector<8x128xf32> to vector<1x32xf32>
    %336 = vector.extract_strided_slice %334 {offsets = [1, 0], sizes = [1, 32], strides = [1, 1]} : vector<8x128xf32> to vector<1x32xf32>
    %337 = vector.extract_strided_slice %334 {offsets = [2, 0], sizes = [1, 128], strides = [1, 1]} : vector<8x128xf32> to vector<1x128xf32>
    %cst_107 = arith.constant dense<0.000000e+00> : vector<24xf32>
    %338 = vector.multi_reduction <add>, %333, %cst_107 [1] : vector<24x32xf32> to vector<24xf32>
    %339 = vector.shape_cast %338 : vector<24xf32> to vector<24x1xf32>
    %cst_108 = arith.constant 3.200000e+01 : f32
    %340 = vector.broadcast %cst_108 : f32 to vector<24x1xf32>
    %341 = arith.divf %339, %340 : vector<24x1xf32>
    %342 = vector.broadcast %341 : vector<24x1xf32> to vector<24x32xf32>
    %343 = arith.subf %333, %342 : vector<24x32xf32>
    %344 = arith.mulf %343, %343 : vector<24x32xf32>
    %cst_109 = arith.constant dense<0.000000e+00> : vector<24xf32>
    %345 = vector.multi_reduction <add>, %344, %cst_109 [1] : vector<24x32xf32> to vector<24xf32>
    %346 = vector.shape_cast %345 : vector<24xf32> to vector<24x1xf32>
    %cst_110 = arith.constant 3.200000e+01 : f32
    %347 = vector.broadcast %cst_110 : f32 to vector<24x1xf32>
    %348 = arith.divf %346, %347 : vector<24x1xf32>
    %349 = vector.broadcast %341 : vector<24x1xf32> to vector<24x32xf32>
    %350 = arith.subf %333, %349 : vector<24x32xf32>
    %cst_111 = arith.constant 9.99999997E-7 : f32
    %351 = vector.broadcast %cst_111 : f32 to vector<24x1xf32>
    %352 = arith.addf %348, %351 : vector<24x1xf32>
    %353 = math.rsqrt %352 : vector<24x1xf32>
    %354 = vector.broadcast %353 : vector<24x1xf32> to vector<24x32xf32>
    %355 = arith.mulf %350, %354 : vector<24x32xf32>
    %356 = vector.broadcast %335 : vector<1x32xf32> to vector<24x32xf32>
    %357 = arith.mulf %355, %356 : vector<24x32xf32>
    %358 = vector.broadcast %336 : vector<1x32xf32> to vector<24x32xf32>
    %359 = arith.addf %357, %358 : vector<24x32xf32>
    %360 = vector.extract_strided_slice %359 {offsets = [0, 0], sizes = [1, 32], strides = [1, 1]} : vector<24x32xf32> to vector<1x32xf32>
    %c0_112 = arith.constant 0 : index
    %c0_113 = arith.constant 0 : index
    %361 = vector.load %arg9[%c0_112, %c0_113] : memref<32x128xf32, #tpu.memory_space<vmem>>, vector<32x128xf32>
    %cst_114 = arith.constant dense<0.000000e+00> : vector<1x128xf32>
    %362 = tpu.matmul %360, %361, %cst_114 {dimension_numbers = #tpu.dot_dimension_numbers<[1], [0], [0], [1], [0, 0, 1, 1], [], []>} : vector<1x32xf32>, vector<32x128xf32>, vector<1x128xf32> -> vector<1x128xf32>
    %363 = arith.addf %362, %337 : vector<1x128xf32>
    %364 = vector.shape_cast %363 : vector<1x128xf32> to vector<1x128xf32>
    %365 = vector.broadcast %364 : vector<1x128xf32> to vector<8x128xf32>
    %c0_115 = arith.constant 0 : index
    %c0_116 = arith.constant 0 : index
    %c0_117 = arith.constant 0 : index
    %366 = vector.load %arg11[%c0_115, %c0_116, %c0_117] : memref<1x8x128xf32, #tpu.memory_space<vmem>>, vector<1x8x128xf32>
    %367 = vector.shape_cast %366 : vector<1x8x128xf32> to vector<8x128xf32>
    %368 = vector.shape_cast %365 : vector<8x128xf32> to vector<1x8x128xf32>
    tpu.vector_store %arg11[%c0_115, %c0_116, %c0_117], %368 {strides = array<i32>} : memref<1x8x128xf32, #tpu.memory_space<vmem>>, vector<1x8x128xf32>,
    return
  }
  func.func @transform_0(%arg0: i32) -> (i32, i32, i32) {
    %c0_i32 = arith.constant 0 : i32
    %c0_i32_0 = arith.constant 0 : i32
    %c0_i32_1 = arith.constant 0 : i32
    return %arg0, %c0_i32, %c0_i32_0 : i32, i32, i32
  }
  func.func @transform_1(%arg0: i32) -> (i32, i32) {
    %c0_i32 = arith.constant 0 : i32
    %c0_i32_0 = arith.constant 0 : i32
    %c0_i32_1 = arith.constant 0 : i32
    return %c0_i32, %c0_i32_0 : i32, i32
  }
  func.func @transform_2(%arg0: i32) -> (i32, i32) {
    %c0_i32 = arith.constant 0 : i32
    %c0_i32_0 = arith.constant 0 : i32
    %c0_i32_1 = arith.constant 0 : i32
    return %c0_i32, %c0_i32_0 : i32, i32
  }
  func.func @transform_3(%arg0: i32) -> (i32, i32, i32) {
    %c0_i32 = arith.constant 0 : i32
    %c0_i32_0 = arith.constant 0 : i32
    %c0_i32_1 = arith.constant 0 : i32
    %c0_i32_2 = arith.constant 0 : i32
    return %c0_i32, %c0_i32_0, %c0_i32_1 : i32, i32, i32
  }
  func.func @transform_4(%arg0: i32) -> (i32, i32, i32) {
    %c0_i32 = arith.constant 0 : i32
    %c0_i32_0 = arith.constant 0 : i32
    %c0_i32_1 = arith.constant 0 : i32
    %c0_i32_2 = arith.constant 0 : i32
    return %c0_i32, %c0_i32_0, %c0_i32_1 : i32, i32, i32
  }
  func.func @transform_5(%arg0: i32) -> (i32, i32, i32) {
    %c0_i32 = arith.constant 0 : i32
    %c0_i32_0 = arith.constant 0 : i32
    %c0_i32_1 = arith.constant 0 : i32
    %c0_i32_2 = arith.constant 0 : i32
    return %c0_i32, %c0_i32_0, %c0_i32_1 : i32, i32, i32
  }
  func.func @transform_6(%arg0: i32) -> (i32, i32, i32) {
    %c0_i32 = arith.constant 0 : i32
    %c0_i32_0 = arith.constant 0 : i32
    %c0_i32_1 = arith.constant 0 : i32
    %c0_i32_2 = arith.constant 0 : i32
    return %c0_i32, %c0_i32_0, %c0_i32_1 : i32, i32, i32
  }
  func.func @transform_7(%arg0: i32) -> (i32, i32, i32) {
    %c0_i32 = arith.constant 0 : i32
    %c0_i32_0 = arith.constant 0 : i32
    %c0_i32_1 = arith.constant 0 : i32
    %c0_i32_2 = arith.constant 0 : i32
    return %c0_i32, %c0_i32_0, %c0_i32_1 : i32, i32, i32
  }
  func.func @transform_8(%arg0: i32) -> (i32, i32) {
    %c0_i32 = arith.constant 0 : i32
    %c0_i32_0 = arith.constant 0 : i32
    %c0_i32_1 = arith.constant 0 : i32
    return %c0_i32, %c0_i32_0 : i32, i32
  }
  func.func @transform_9(%arg0: i32) -> (i32, i32) {
    %c0_i32 = arith.constant 0 : i32
    %c0_i32_0 = arith.constant 0 : i32
    %c0_i32_1 = arith.constant 0 : i32
    return %c0_i32, %c0_i32_0 : i32, i32
  }
  func.func @transform_10(%arg0: i32) -> (i32, i32, i32) {
    %c0_i32 = arith.constant 0 : i32
    %c0_i32_0 = arith.constant 0 : i32
    %c0_i32_1 = arith.constant 0 : i32
    return %arg0, %c0_i32, %c0_i32_0 : i32, i32, i32
  }
}

</mosaic_0001>

<bundles_post_ra>
// kernel: vit_forward.1
= control target key start
LH: loop header
LB: loop body
LE: loop exit
PB: predicated region body
PF: predicated region fallthrough
CT: control target
= control target key end

     0   :  { %s4692_s13 = smov 0   ;;  %s5900_s0 = inlined_call_operand.vmem [shape: f32[2,24,64], index: 0, kind: input, shape index: {}]   ;;  %s5901_s1 = inlined_call_operand.vmem [shape: f32[64,32], index: 1, kind: input, shape index: {}]   ;;  %s5902_s2 = inlined_call_operand.vmem [shape: f32[24,32], index: 2, kind: input, shape index: {}]   ;;  %s5903_s3 = inlined_call_operand.vmem [shape: f32[2,32,96], index: 3, kind: input, shape index: {}]   ;;  %s5904_s4 = inlined_call_operand.vmem [shape: f32[2,32,32], index: 4, kind: input, shape index: {}]   ;;  %s5905_s5 = inlined_call_operand.vmem [shape: f32[2,32,128], index: 5, kind: input, shape index: {}]   ;;  %s5906_s6 = inlined_call_operand.vmem [shape: f32[2,128,32], index: 6, kind: input, shape index: {}]   ;;  %s5907_s7 = inlined_call_operand.vmem [shape: f32[2,8,128], index: 7, kind: input, shape index: {}]   ;;  %s5908_s8 = inlined_call_operand.vmem [shape: f32[32,128], index: 8, kind: input, shape index: {}]   ;;  %s5909_s9 = inlined_call_operand.vmem [shape: f32[8,128], index: 9, kind: input, shape index: {}]   ;;  %s5910_s10 = inlined_call_operand.vmem [shape: f32[2,8,128], index: 10, kind: output, shape index: {}]  }
   0x1 LB: > { %s3666_s14 = sadd.s32 4294967295, %s4618_s13   ;;  %p3670_p0 = scmp.ge.s32.totalorder %s4618_s13, 1  ;;  %s4618_s13 = sphi %s4692_s13, %s20_s13  }
   0x2   : > { %p312_p1 = scmp.lt.s32.totalorder %s4618_s13, 3 }
   0x4   : > { %p313_p2 = pnand %p3670_p0, %p312_p1 }
   0x5   : > { %p349_p3 = scmp.lt.s32.totalorder (!%p313_p2), %s3666_s14, 1  ;;  %s4622_s15 = smov (!%p313_p2), 96  }
   0x6   : > { %316 = sbr.rel (%p313_p2) target bundleno = 5741 (0x166d), region = 60  ;;  %s4623_s16 = smov (!%p313_p2), 88  }
   0x7   : > { %s4624_s17 = smov (!%p313_p2), 120   ;;  %s4625_s18 = smov (!%p313_p2), 80  }
   0x8   : > { %s4626_s19 = smov (!%p313_p2), 112   ;;  %s4627_s20 = smov (!%p313_p2), 72  }
   0x9   : > { %s4628_s21 = smov (!%p313_p2), 104   ;;  %s4629_s22 = smov (!%p313_p2), 64  }
   0xa   : > { %s4630_s23 = smov (!%p313_p2), 56   ;;  %s4632_s24 = smov (!%p313_p2), 48  }
   0xb   : > { %v368_v0 = vld [vmem:[%s5901_s1 + $0x38] sm:$0xff]  ;;  %v4620_v1 = vmov 0.0   ;;  %v367_v2 = vld [vmem:[%s5901_s1 + $0x30] sm:$0xff]  ;;  %vm4621_vm0 = vmmov 0   ;;  %v366_v3 = vld [vmem:[%s5901_s1 + $0x28] sm:$0xff]  ;;  %s5924_s14 = smov (!%p349_p3, %s3666_s14), 1  ;;  %v462_v50 = vlaneseq }
   0xc   : > { %3990 = vmatprep.subr.mxu0 %v4620_v1  ;;  %4006 = vmatprep.mubr.msk.f32.mxu0 %vm4621_vm0, %v4620_v1  ;;  %v365_v4 = vld [vmem:[%s5901_s1 + $0x20] sm:$0xff]  ;;  %v364_v5 = vld [vmem:[%s5901_s1 + $0x18] sm:$0xff]  ;;  %s4450_s25 = smul.u32 24, %s5924_s14  ;;  %v363_v6 = vld [vmem:[%s5901_s1 + $0x10] sm:$0xff]  ;;  %vm372_vm1 = vcmask 523264   ;;  %vm467_vm2 = vcmask 261120  }
   0xd   : > { %3991 = vmatpush3.msra.mxu0 %v368_v0  ;;  %4032 = vmatprep.subr.mxu1 %v4620_v1  ;;  %v362_v7 = vld [vmem:[%s5901_s1 + $0x8] sm:$0xff]  ;;  %v361_v8 = vld [vmem:[%s5901_s1] sm:$0xff]  ;;  %v371_v21 = vld [vmem:[%s5902_s2 + $0x10] sm:$0xff]  ;;  %v4794_v54 = vshrl.u32 %v462_v50, 7  ;;  %vm628_vm3 = vcmask 64512   ;;  %vm721_vm5 = vcmask 195584  }
   0xe   : > { %3992 = vmatprep.subr.mxu0 %v4620_v1  ;;  %4038 = vmatprep.mubr.msk.f32.mxu1 %vm4621_vm0, %v4620_v1  ;;  %s353_s12 = scalar_lea.vmem %s5900_s0, %s4450_s25  ;;  %v369_v12 = vld [vmem:[%s5902_s2] sm:$0xff]  ;;  %v370_v16 = vld [vmem:[%s5902_s2 + $0x8] sm:$0xff]  ;;  %v525_v42 = vld [vmem:[%s5903_s3 + $0x18] sm:$0xff]  ;;  %s5911_s25 = smov 40   ;;  %vm1597_vm6 = vcmask 130048  }
   0xf   : > { %3993 = vmatpush3.msra.mxu0 %v367_v2  ;;  %v358_v9 = vld [vmem:[%s353_s12] sm:$0xff]  ;;  %v359_v10 = vld [vmem:[%s353_s12 + $0x8] sm:$0xff]  ;;  %v360_v11 = vld [vmem:[%s353_s12 + $0x10] sm:$0xff]  ;;  %v4797_v57 = vsub.s32 0, %v4794_v54  ;;  %v4805_v59 = vsub.s32 1, %v4794_v54  ;;  %s5917_s28 = smov 8  }
  0x10   : > { %3994 = vmatprep.subr.mxu0 %v4620_v1  ;;  %v524_v43 = vld [vmem:[%s5903_s3 + $0x10] sm:$0xff]  ;;  %v523_v44 = vld [vmem:[%s5903_s3 + $0x8] sm:$0xff]  ;;  %v522_v45 = vld [vmem:[%s5903_s3] sm:$0xff]  ;;  %s5915_s29 = smov 16   ;;  %s5913_s30 = smov 24  }
  0x11   : > { %3995 = vmatpush3.msra.mxu0 %v366_v3  ;;  %v4802_v58 = vld [vmem:[%s5907_s7] sm:$0xff]  ;;  %s5922_s12 = smov 24   ;;  %s3672_s11 = sshll.u32 %s5924_s14, 3 }
  0x12   : > { %3996 = vmatprep.subr.mxu0 %v4620_v1  ;;  %v511_v60 = vrot.slane %v4802_v58, %v4797_v57  ;;  %v518_v63 = vrot.slane %v4802_v58, %v4805_v59  ;;  %s357_s27 = scalar_lea.vmem %s5910_s10, %s3672_s11 }
  0x13   : > { %3997 = vmatpush3.msra.mxu0 %v365_v4 }
  0x14   : > { %3998 = vmatprep.subr.mxu0 %v4620_v1 }
  0x15   : > { %3999 = vmatpush3.msra.mxu0 %v364_v5 }
  0x16   : > { %4000 = vmatprep.subr.mxu0 %v4620_v1 }
  0x17   : > { %4001 = vmatpush3.msra.mxu0 %v363_v6 }
  0x18   : > { %4002 = vmatprep.subr.mxu0 %v4620_v1 }
  0x19   : > { %4003 = vmatpush3.msra.mxu0 %v362_v7 }
  0x1a   : > { %4004 = vmatprep.subr.mxu0 %v4620_v1 }
  0x1b   : > { %4005 = vmatpush3.msra.mxu0 %v361_v8 }
  0x1c   : > { %4007 = vmatmul.mubr.msk.f32.vlgmr.msra.gmra.mxu0 %vm372_vm1, %v358_v9  ;;  %4015 = vmatprep.subr.mxu0 %v4620_v1 }
  0x1d   : > { %4009 = vmatprep.mubr.msk.f32.mxu0 %vm4621_vm0, %v4620_v1  ;;  %4016 = vmatpush3.msra.mxu0 %v525_v42 }
  0x1e   : > { %4017 = vmatprep.subr.mxu0 %v4620_v1 }
  0x1f   : > { %4018 = vmatpush3.msra.mxu0 %v524_v43 }
  0x20   : > { %4010 = vmatmul.mubr.msk.f32.gmra.mxu0 %vm372_vm1, %v359_v10  ;;  %4019 = vmatprep.subr.mxu0 %v4620_v1 }
  0x21   : > { %4012 = vmatprep.mubr.msk.f32.mxu0 %vm4621_vm0, %v4620_v1  ;;  %4020 = vmatpush3.msra.mxu0 %v523_v44 }
  0x22   : > { %4021 = vmatprep.subr.mxu0 %v4620_v1 }
  0x23   : > { %4022 = vmatpush3.msra.mxu0 %v522_v45 }
  0x24   : > { %4013 = vmatmul.mubr.msk.f32.gmra.mxu0 %vm372_vm1, %v360_v11  ;;  %4047 = vmatprep.subr.mxu0 %v4620_v1  ;;  %v528_v11 = vsub.s32 6, %v4794_v54 }
  0x25   : > { %4023 = vmatprep.mubr.msk.f32.mxu0 %vm4621_vm0, %v4620_v1 }
  0xdc   : > { %v448_v13 = vpop.f32.mrf.mxu0 }
  0xdd   : > { %v4753_v14 = vadd.f32 %v448_v13, %v369_v12 }
  0xde   : > { %v4008_v15 = vpop.f32.mrf.mxu0 }
  0xdf   : > { %v468_v17 = vsel %vm467_vm2, %v4753_v14, 0.0  ;;  %v529_v15 = vrot.slane %v4802_v58, %v528_v11 }
  0xe0   : > { %469 = vadd.xlane.f32.xlu0 %v468_v17  ;;  %v453_v18 = vpop.f32.mrf.mxu0 }
  0xe1   : > { %v4760_v19 = vadd.f32 %v453_v18, %v370_v16 }
  0xe2   : > { %v4011_v20 = vpop.f32.mrf.mxu0 }
  0xe3   : > { %v471_v22 = vsel %vm467_vm2, %v4760_v19, 0.0 }
  0xe4   : > { %472 = vadd.xlane.f32.xlu0 %v471_v22  ;;  %v458_v23 = vpop.f32.mrf.mxu0 }
  0xe5   : > { %v4767_v24 = vadd.f32 %v458_v23, %v371_v21 }
  0xe6   : > { %v4014_v25 = vpop.f32.mrf.mxu0 }
  0xe7   : > { %v474_v26 = vsel %vm467_vm2, %v4767_v24, 0.0 }
  0xe8   : > { %475 = vadd.xlane.f32.xlu1 %v474_v26 }
 0x169   : > { %v470_v27 = vpop.xlane.xlu0 %469 }
 0x16a   : > { %v478_v28 = vmul.f32 0.03125, %v470_v27 }
 0x16c   : > { %v481_v29 = vsub.f32 %v4753_v14, %v478_v28 }
 0x16d   : > { %v473_v30 = vpop.xlane.xlu0 %472 }
 0x16e   : > { %v479_v31 = vmul.f32 0.03125, %v473_v30  ;;  %v484_v32 = vmul.f32 %v481_v29, %v481_v29 }
 0x170   : > { %v482_v33 = vsub.f32 %v4760_v19, %v479_v31  ;;  %v487_v34 = vsel %vm467_vm2, %v484_v32, 0.0 }
 0x171   : > { %488 = vadd.xlane.f32.xlu1 %v487_v34  ;;  %v476_v35 = vpop.xlane.xlu1 %475 }
 0x172   : > { %v480_v36 = vmul.f32 0.03125, %v476_v35  ;;  %v485_v37 = vmul.f32 %v482_v33, %v482_v33 }
 0x174   : > { %v483_v38 = vsub.f32 %v4767_v24, %v480_v36  ;;  %v490_v39 = vsel %vm467_vm2, %v485_v37, 0.0 }
 0x175   : > { %491 = vadd.xlane.f32.xlu0 %v490_v39 }
 0x176   : > { %v486_v40 = vmul.f32 %v483_v38, %v483_v38 }
 0x178   : > { %v493_v41 = vsel %vm467_vm2, %v486_v40, 0.0 }
 0x179   : > { %494 = vadd.xlane.f32.xlu1 %v493_v41 }
 0x1fa   : > { %v489_v46 = vpop.xlane.xlu1 %488 }
 0x1fb   : > { %v496_v47 = vmul.f32 0.03125, %v489_v46 }
 0x1fd   : > { %v499_v48 = vadd.f32 1e-06, %v496_v47 }
 0x1fe   : > { %v492_v49 = vpop.xlane.xlu0 %491 }
 0x1ff   : > { %4476 = vrsqrt.f32 %v499_v48  ;;  %v497_v51 = vmul.f32 0.03125, %v492_v49  ;;  %v463_v49 = vand.u32 127, %v462_v50 }
 0x201   : > { %v500_v52 = vadd.f32 1e-06, %v497_v51  ;;  %vm464_vm4 = vcmp.lt.s32.totalorder %v463_v49, 17  ;;  %v4631_v51 = vmov -1e+30  }
 0x202   : > { %v495_v53 = vpop.xlane.xlu1 %494 }
 0x203   : > { %4478 = vrsqrt.f32 %v500_v52  ;;  %v498_v55 = vmul.f32 0.03125, %v495_v53  ;;  %v4947_v52 = vsel %vm464_vm4, 0.0, %v4631_v51 }
 0x205   : > { %v501_v56 = vadd.f32 1e-06, %v498_v55 }
 0x207   : > { %4480 = vrsqrt.f32 %v501_v56 }
 0x20c   : > { %v4477_v61 = vpop.eup %4476 }
 0x20d   : > { %v505_v62 = vmul.f32 %v4477_v61, %v481_v29 }
 0x20f   : > { %v512_v0 = vmul.f32 %v511_v60, %v505_v62 }
 0x210   : > { %v4479_v2 = vpop.eup %4478 }
 0x211   : > { %v519_v3 = vadd.f32 %v518_v63, %v512_v0  ;;  %v506_v4 = vmul.f32 %v4479_v2, %v482_v33 }
 0x213   : > { %4024 = vmatmul.mubr.msk.f32.vlgmr.msra.gmra.mxu0 %vm467_vm2, %v519_v3  ;;  %v513_v5 = vmul.f32 %v511_v60, %v506_v4 }
 0x214   : > { %v4481_v6 = vpop.eup %4480  ;;  %4026 = vmatprep.mubr.msk.f32.mxu0 %vm4621_vm0, %v4620_v1 }
 0x215   : > { %v520_v7 = vadd.f32 %v518_v63, %v513_v5  ;;  %v507_v8 = vmul.f32 %v4481_v6, %v483_v38 }
 0x217   : > { %4027 = vmatmul.mubr.msk.f32.gmra.mxu0 %vm467_vm2, %v520_v7  ;;  %v514_v9 = vmul.f32 %v511_v60, %v507_v8 }
 0x218   : > { %4029 = vmatprep.mubr.msk.f32.mxu0 %vm4621_vm0, %v4620_v1 }
 0x219   : > { %v521_v10 = vadd.f32 %v518_v63, %v514_v9 }
 0x21b   : > { %4030 = vmatmul.mubr.msk.f32.gmra.mxu0 %vm467_vm2, %v521_v10 }
 0x21c   : > { %4053 = vmatprep.mubr.msk.f32.mxu0 %vm4621_vm0, %v4620_v1 }
 0x2d3   : > { %v605_v12 = vpop.f32.mrf.mxu0 }
 0x2d4   : > { %v4828_v21 = vadd.f32 %v605_v12, %v529_v15 }
 0x2d5   : > { %v4025_v13 = vpop.f32.mrf.mxu0 }
 0x2d7   : > { %v610_v16 = vpop.f32.mrf.mxu0 }
 0x2d8   : > { %v4824_v17 = vadd.f32 %v610_v16, %v529_v15 }
 0x2d9   : > { %v4028_v18 = vpop.f32.mrf.mxu0 }
 0x2da   : > { %624 = vrot.lane.b32.xlu1 %v4824_v17, %s4622_s15 }
 0x2db   : > { %v615_v20 = vpop.f32.mrf.mxu0 }
 0x2dc   : > { %v4830_v22 = vadd.f32 %v615_v20, %v529_v15 }
 0x2dd   : > { %v4031_v23 = vpop.f32.mrf.mxu0 }
 0x2de   : > { %622 = vrot.lane.b32.xlu1 %v4828_v21, %s4622_s15  ;;  %626 = vrot.lane.b32.xlu0 %v4830_v22, %s4622_s15 }
 0x2e2   : > { %863 = vrot.lane.b32.xlu1 %v4830_v22, %s4623_s16  ;;  %861 = vrot.lane.b32.xlu0 %v4824_v17, %s4623_s16 }
 0x2e6   : > { %859 = vrot.lane.b32.xlu1 %v4828_v21, %s4623_s16  ;;  %853 = vrot.lane.b32.xlu0 %v4828_v21, %s4624_s17 }
 0x2ea   : > { %1098 = vrot.lane.b32.xlu1 %v4830_v22, %s4625_s18  ;;  %855 = vrot.lane.b32.xlu0 %v4824_v17, %s4624_s17 }
 0x2ee   : > { %1096 = vrot.lane.b32.xlu1 %v4824_v17, %s4625_s18  ;;  %857 = vrot.lane.b32.xlu0 %v4830_v22, %s4624_s17 }
 0x2f2   : > { %1094 = vrot.lane.b32.xlu1 %v4828_v21, %s4625_s18  ;;  %1088 = vrot.lane.b32.xlu0 %v4828_v21, %s4626_s19 }
 0x2f6   : > { %1333 = vrot.lane.b32.xlu1 %v4830_v22, %s4627_s20  ;;  %1090 = vrot.lane.b32.xlu0 %v4824_v17, %s4626_s19 }
 0x2fa   : > { %1331 = vrot.lane.b32.xlu1 %v4824_v17, %s4627_s20  ;;  %1092 = vrot.lane.b32.xlu0 %v4830_v22, %s4626_s19 }
 0x2fe   : > { %1329 = vrot.lane.b32.xlu1 %v4828_v21, %s4627_s20  ;;  %1323 = vrot.lane.b32.xlu0 %v4828_v21, %s4628_s21 }
 0x302   : > { %1325 = vrot.lane.b32.xlu1 %v4824_v17, %s4628_s21  ;;  %1327 = vrot.lane.b32.xlu0 %v4830_v22, %s4628_s21 }
 0x306   : > { %755 = vrot.lane.b32.xlu1 %v4828_v21, %s4629_s22  ;;  %757 = vrot.lane.b32.xlu0 %v4824_v17, %s4629_s22 }
 0x30a   : > { %759 = vrot.lane.b32.xlu1 %v4830_v22, %s4629_s22 }
 0x30e   : > { %994 = vrot.lane.b32.xlu1 %v4830_v22, %s4630_s23 }
 0x34c   : > { %v625_v25 = vpop.permute.xlu1 %624 }
 0x350   : > { %v623_v26 = vpop.permute.xlu1 %622  ;;  %v627_v27 = vpop.permute.xlu0 %626 }
 0x351   : > { %4033 = vmatpush3.xpose.msk.msra.mxu1 %vm628_vm3, %v627_v27 }
 0x352   : > { %4034 = vmatprep.subr.mxu1 %v4620_v1 }
 0x354   : > { %v864_v28 = vpop.permute.xlu1 %863  ;;  %v862_v29 = vpop.permute.xlu0 %861 }
 0x355   : > { %4035 = vmatpush3.xpose.msk.msra.mxu1 %vm628_vm3, %v625_v25 }
 0x356   : > { %4036 = vmatprep.subr.mxu1 %v4620_v1 }
 0x358   : > { %v860_v30 = vpop.permute.xlu1 %859  ;;  %v854_v31 = vpop.permute.xlu0 %853 }
 0x359   : > { %4037 = vmatpush3.xpose.msk.msra.mxu1 %vm628_vm3, %v623_v26 }
 0x35a   : > { %4062 = vmatprep.subr.mxu1 %v4620_v1 }
 0x35c   : > { %v1099_v32 = vpop.permute.xlu1 %1098  ;;  %4039 = vmatmul.mubr.msk.f32.vlgmr.msra.gmra.mxu1 %vm628_vm3, %v4828_v21  ;;  %v856_v33 = vpop.permute.xlu0 %855 }
 0x35d   : > { %4063 = vmatpush3.xpose.msk.msra.mxu1 %vm628_vm3, %v864_v28  ;;  %4041 = vmatprep.mubr.msk.f32.mxu1 %vm4621_vm0, %v4620_v1 }
 0x35e   : > { %4064 = vmatprep.subr.mxu1 %v4620_v1 }
 0x360   : > { %v1097_v34 = vpop.permute.xlu1 %1096  ;;  %4042 = vmatmul.mubr.msk.f32.gmra.mxu1 %vm628_vm3, %v4824_v17  ;;  %v858_v35 = vpop.permute.xlu0 %857 }
 0x361   : > { %4065 = vmatpush3.xpose.msk.msra.mxu1 %vm628_vm3, %v862_v29  ;;  %4044 = vmatprep.mubr.msk.f32.mxu1 %vm4621_vm0, %v4620_v1 }
 0x362   : > { %4066 = vmatprep.subr.mxu1 %v4620_v1 }
 0x364   : > { %v1095_v36 = vpop.permute.xlu1 %1094  ;;  %4045 = vmatmul.mubr.msk.f32.gmra.mxu1 %vm628_vm3, %v4830_v22  ;;  %v1089_v37 = vpop.permute.xlu0 %1088 }
 0x365   : > { %4067 = vmatpush3.xpose.msk.msra.mxu1 %vm628_vm3, %v860_v30  ;;  %4068 = vmatprep.mubr.msk.f32.mxu1 %vm4621_vm0, %v4620_v1 }
 0x366   : > { %4092 = vmatprep.subr.mxu1 %v4620_v1 }
 0x368   : > { %v1334_v38 = vpop.permute.xlu1 %1333  ;;  %4069 = vmatmul.mubr.msk.f32.vlgmr.msra.gmra.mxu1 %vm628_vm3, %v854_v31  ;;  %v1091_v39 = vpop.permute.xlu0 %1090 }
 0x369   : > { %4093 = vmatpush3.xpose.msk.msra.mxu1 %vm628_vm3, %v1099_v32  ;;  %4071 = vmatprep.mubr.msk.f32.mxu1 %vm4621_vm0, %v4620_v1 }
 0x36a   : > { %4094 = vmatprep.subr.mxu1 %v4620_v1 }
 0x36c   : > { %v1332_v40 = vpop.permute.xlu1 %1331  ;;  %4072 = vmatmul.mubr.msk.f32.gmra.mxu1 %vm628_vm3, %v856_v33  ;;  %v1093_v41 = vpop.permute.xlu0 %1092 }
 0x36d   : > { %4095 = vmatpush3.xpose.msk.msra.mxu1 %vm628_vm3, %v1097_v34  ;;  %4074 = vmatprep.mubr.msk.f32.mxu1 %vm4621_vm0, %v4620_v1 }
 0x36e   : > { %4096 = vmatprep.subr.mxu1 %v4620_v1 }
 0x370   : > { %v1330_v42 = vpop.permute.xlu1 %1329  ;;  %4075 = vmatmul.mubr.msk.f32.gmra.mxu1 %vm628_vm3, %v858_v35  ;;  %v1324_v43 = vpop.permute.xlu0 %1323 }
 0x371   : > { %4097 = vmatpush3.xpose.msk.msra.mxu1 %vm628_vm3, %v1095_v36  ;;  %4098 = vmatprep.mubr.msk.f32.mxu1 %vm4621_vm0, %v4620_v1 }
 0x372   : > { %4122 = vmatprep.subr.mxu1 %v4620_v1 }
 0x374   : > { %v1326_v44 = vpop.permute.xlu1 %1325  ;;  %4099 = vmatmul.mubr.msk.f32.vlgmr.msra.gmra.mxu1 %vm628_vm3, %v1089_v37  ;;  %v1328_v45 = vpop.permute.xlu0 %1327 }
 0x375   : > { %4123 = vmatpush3.xpose.msk.msra.mxu1 %vm628_vm3, %v1334_v38  ;;  %4101 = vmatprep.mubr.msk.f32.mxu1 %vm4621_vm0, %v4620_v1 }
 0x376   : > { %4124 = vmatprep.subr.mxu1 %v4620_v1 }
 0x378   : > { %v756_v46 = vpop.permute.xlu1 %755  ;;  %4102 = vmatmul.mubr.msk.f32.gmra.mxu1 %vm628_vm3, %v1091_v39  ;;  %v758_v48 = vpop.permute.xlu0 %757 }
 0x379   : > { %4125 = vmatpush3.xpose.msk.msra.mxu1 %vm628_vm3, %v1332_v40  ;;  %4104 = vmatprep.mubr.msk.f32.mxu1 %vm4621_vm0, %v4620_v1 }
 0x37a   : > { %4126 = vmatprep.subr.mxu1 %v4620_v1 }
 0x37c   : > { %v760_v47 = vpop.permute.xlu1 %759  ;;  %4105 = vmatmul.mubr.msk.f32.gmra.mxu1 %vm628_vm3, %v1093_v41 }
 0x37d   : > { %4048 = vmatpush3.msra.mxu0 %v760_v47  ;;  %4127 = vmatpush3.xpose.msk.msra.mxu1 %vm628_vm3, %v1330_v42 }
 0x37e   : > { %4049 = vmatprep.subr.mxu0 %v4620_v1  ;;  %4128 = vmatprep.mubr.msk.f32.mxu1 %vm4621_vm0, %v4620_v1 }
 0x37f   : > { %4050 = vmatpush3.msra.mxu0 %v758_v48  ;;  %4152 = vmatprep.subr.mxu1 %v4620_v1 }
 0x380   : > { %4051 = vmatprep.subr.mxu0 %v4620_v1  ;;  %4129 = vmatmul.mubr.msk.f32.vlgmr.msra.gmra.mxu1 %vm628_vm3, %v1324_v43  ;;  %v5015_v48 = vpop.permute.xlu1 %994 }
 0x381   : > { %4052 = vmatpush3.msra.mxu0 %v756_v46  ;;  %4131 = vmatprep.mubr.msk.f32.mxu1 %vm4621_vm0, %v4620_v1 }
 0x382   : > { %4077 = vmatprep.subr.mxu0 %v4620_v1 }
 0x384   : > { %4132 = vmatmul.mubr.msk.f32.gmra.mxu1 %vm628_vm3, %v1326_v44 }
 0x385   : > { %4134 = vmatprep.mubr.msk.f32.mxu1 %vm4621_vm0, %v4620_v1 }
 0x388   : > { %4135 = vmatmul.mubr.msk.f32.gmra.mxu1 %vm628_vm3, %v1328_v45 }
 0x389   : > { %4160 = vmatprep.mubr.msk.f32.mxu1 %vm4621_vm0, %v4620_v1 }
 0x41c   : > { %v707_v53 = vpop.f32.mrf.mxu1 }
 0x41d   : > { %v4950_v55 = vadd.f32 %v707_v53, %v4947_v52 }
 0x41e   : > { %v4040_v56 = vpop.f32.mrf.mxu1 }
 0x41f   : > { %v722_v60 = vsel %vm721_vm5, %v4950_v55, -inf }
 0x420   : > { %723 = vmax.xlane.f32.xlu1 %v722_v60  ;;  %v712_v61 = vpop.f32.mrf.mxu1 }
 0x421   : > { %v4955_v62 = vadd.f32 %v712_v61, %v4947_v52 }
 0x422   : > { %v4043_v63 = vpop.f32.mrf.mxu1 }
 0x423   : > { %v725_v50 = vsel %vm721_vm5, %v4955_v62, -inf }
 0x424   : > { %726 = vmax.xlane.f32.xlu0 %v725_v50  ;;  %v717_v0 = vpop.f32.mrf.mxu1 }
 0x425   : > { %v4960_v2 = vadd.f32 %v717_v0, %v4947_v52 }
 0x426   : > { %v4046_v3 = vpop.f32.mrf.mxu1 }
 0x427   : > { %v728_v4 = vsel %vm721_vm5, %v4960_v2, -inf }
 0x428   : > { %729 = vmax.xlane.f32.xlu0 %v728_v4  ;;  %v943_v5 = vpop.f32.mrf.mxu1 }
 0x429   : > { %v4965_v6 = vadd.f32 %v943_v5, %v4947_v52 }
 0x42a   : > { %v4070_v7 = vpop.f32.mrf.mxu1 }
 0x42b   : > { %v957_v8 = vsel %vm721_vm5, %v4965_v6, -inf }
 0x42c   : > { %958 = vmax.xlane.f32.xlu0 %v957_v8  ;;  %v948_v9 = vpop.f32.mrf.mxu1 }
 0x42d   : > { %v4970_v10 = vadd.f32 %v948_v9, %v4947_v52 }
 0x42e   : > { %v4073_v12 = vpop.f32.mrf.mxu1 }
 0x42f   : > { %v960_v13 = vsel %vm721_vm5, %v4970_v10, -inf }
 0x430   : > { %961 = vmax.xlane.f32.xlu1 %v960_v13  ;;  %v953_v15 = vpop.f32.mrf.mxu1 }
 0x431   : > { %v4975_v16 = vadd.f32 %v953_v15, %v4947_v52 }
 0x432   : > { %v4076_v18 = vpop.f32.mrf.mxu1 }
 0x433   : > { %v963_v20 = vsel %vm721_vm5, %v4975_v16, -inf }
 0x434   : > { %964 = vmax.xlane.f32.xlu0 %v963_v20  ;;  %v1178_v23 = vpop.f32.mrf.mxu1 }
 0x435   : > { %v4980_v25 = vadd.f32 %v1178_v23, %v4947_v52 }
 0x436   : > { %v4100_v26 = vpop.f32.mrf.mxu1 }
 0x437   : > { %v1192_v27 = vsel %vm721_vm5, %v4980_v25, -inf }
 0x438   : > { %1193 = vmax.xlane.f32.xlu1 %v1192_v27  ;;  %v1183_v28 = vpop.f32.mrf.mxu1 }
 0x439   : > { %v4985_v29 = vadd.f32 %v1183_v28, %v4947_v52 }
 0x43a   : > { %v4103_v30 = vpop.f32.mrf.mxu1 }
 0x43b   : > { %v1195_v31 = vsel %vm721_vm5, %v4985_v29, -inf }
 0x43c   : > { %1196 = vmax.xlane.f32.xlu0 %v1195_v31  ;;  %v1188_v32 = vpop.f32.mrf.mxu1 }
 0x43d   : > { %v4990_v33 = vadd.f32 %v1188_v32, %v4947_v52 }
 0x43e   : > { %v4106_v34 = vpop.f32.mrf.mxu1 }
 0x43f   : > { %v1198_v35 = vsel %vm721_vm5, %v4990_v33, -inf }
 0x440   : > { %1199 = vmax.xlane.f32.xlu1 %v1198_v35  ;;  %v1413_v36 = vpop.f32.mrf.mxu1 }
 0x441   : > { %v4995_v37 = vadd.f32 %v1413_v36, %v4947_v52 }
 0x442   : > { %v4130_v38 = vpop.f32.mrf.mxu1 }
 0x443   : > { %v1427_v39 = vsel %vm721_vm5, %v4995_v37, -inf }
 0x444   : > { %1428 = vmax.xlane.f32.xlu0 %v1427_v39  ;;  %v1418_v40 = vpop.f32.mrf.mxu1 }
 0x445   : > { %v5006_v44 = vadd.f32 %v1418_v40, %v4947_v52 }
 0x446   : > { %v4133_v41 = vpop.f32.mrf.mxu1 }
 0x447   : > { %v1430_v46 = vsel %vm721_vm5, %v5006_v44, -inf }
 0x448   : > { %v1423_v42 = vpop.f32.mrf.mxu1 }
 0x449   : > { %v5009_v45 = vadd.f32 %v1423_v42, %v4947_v52 }
 0x44a   : > { %v4136_v43 = vpop.f32.mrf.mxu1 }
 0x44b   : > { %v1433_v47 = vsel %vm721_vm5, %v5009_v45, -inf }
 0x451   : > { %990 = vrot.lane.b32.xlu1 %v4828_v21, %s4630_s23 }
 0x455   : > { %1229 = vrot.lane.b32.xlu1 %v4830_v22, %s4632_s24 }
 0x45a   : > { %992 = vrot.lane.b32.xlu0 %v4824_v17, %s4630_s23 }
 0x479   : > { %1431 = vmax.xlane.f32.xlu1 %v1430_v46  ;;  %1434 = vmax.xlane.f32.xlu0 %v1433_v47 }
 0x4a9   : > { %v724_v49 = vpop.xlane.xlu1 %723 }
 0x4aa   : > { %v731_v51 = vsub.f32 %v4950_v55, %v724_v49 }
 0x4ac   : > { %v734_v53 = vmul.f32 1.442695, %v731_v51 }
 0x4ad   : > { %v727_v56 = vpop.xlane.xlu0 %726 }
 0x4ae   : > { %4482 = vpow2.f32 %v734_v53  ;;  %v732_v60 = vsub.f32 %v4955_v62, %v727_v56 }
 0x4b0   : > { %v736_v61 = vmul.f32 1.442695, %v732_v60 }
 0x4b1   : > { %v730_v55 = vpop.xlane.xlu0 %729 }
 0x4b2   : > { %4484 = vpow2.f32 %v736_v61  ;;  %v733_v62 = vsub.f32 %v4960_v2, %v730_v55 }
 0x4b4   : > { %v738_v8 = vmul.f32 1.442695, %v733_v62 }
 0x4b5   : > { %v959_v4 = vpop.xlane.xlu0 %958 }
 0x4b6   : > { %v966_v7 = vsub.f32 %v4965_v6, %v959_v4  ;;  %4486 = vpow2.f32 %v738_v8 }
 0x4b8   : > { %v969_v13 = vmul.f32 1.442695, %v966_v7 }
 0x4b9   : > { %v962_v5 = vpop.xlane.xlu1 %961 }
 0x4ba   : > { %v967_v9 = vsub.f32 %v4970_v10, %v962_v5  ;;  %4488 = vpow2.f32 %v969_v13 }
 0x4bb   : > { %v5019_v63 = vpop.eup %4482 }
 0x4bc   : > { %v740_v50 = vsel %vm721_vm5, %v5019_v63, 0.0  ;;  %v971_v15 = vmul.f32 1.442695, %v967_v9 }
 0x4bd   : > { %741 = vadd.xlane.f32.xlu1 %v740_v50  ;;  %v965_v12 = vpop.xlane.xlu0 %964 }
 0x4be   : > { %v968_v18 = vsub.f32 %v4975_v16, %v965_v12  ;;  %4490 = vpow2.f32 %v971_v15 }
 0x4bf   : > { %v5023_v0 = vpop.eup %4484 }
 0x4c0   : > { %v743_v3 = vsel %vm721_vm5, %v5023_v0, 0.0  ;;  %v973_v23 = vmul.f32 1.442695, %v968_v18 }
 0x4c1   : > { %744 = vadd.xlane.f32.xlu0 %v743_v3  ;;  %v1194_v20 = vpop.xlane.xlu1 %1193 }
 0x4c2   : > { %v1201_v26 = vsub.f32 %v4980_v25, %v1194_v20  ;;  %4492 = vpow2.f32 %v973_v23 }
 0x4c3   : > { %v5038_v32 = vpop.eup %4486 }
 0x4c4   : > { %v1204_v28 = vmul.f32 1.442695, %v1201_v26  ;;  %v746_v25 = vsel %vm721_vm5, %v5038_v32, 0.0 }
 0x4c5   : > { %v1197_v2 = vpop.xlane.xlu0 %1196 }
 0x4c6   : > { %4494 = vpow2.f32 %v1204_v28  ;;  %v1202_v61 = vsub.f32 %v4985_v29, %v1197_v2 }
 0x4c7   : > { %v5040_v16 = vpop.eup %4488 }
 0x4c8   : > { %v975_v36 = vsel %vm721_vm5, %v5040_v16, 0.0  ;;  %v1206_v55 = vmul.f32 1.442695, %v1202_v61 }
 0x4c9   : > { %v1200_v27 = vpop.xlane.xlu1 %1199 }
 0x4ca   : > { %v1203_v6 = vsub.f32 %v4990_v33, %v1200_v27 }
 0x4cb   : > { %v5044_v35 = vpop.eup %4490 }
 0x4cc   : > { %v1208_v10 = vmul.f32 1.442695, %v1203_v6  ;;  %v978_v33 = vsel %vm721_vm5, %v5044_v35, 0.0 }
 0x4cd   : > { %v1429_v30 = vpop.xlane.xlu0 %1428  ;;  %v991_v56 = vpop.permute.xlu1 %990 }
 0x4ce   : > { %1225 = vrot.lane.b32.xlu1 %v4828_v21, %s4632_s24  ;;  %v1436_v31 = vsub.f32 %v4995_v37, %v1429_v30  ;;  %4496 = vpow2.f32 %v1208_v10 }
 0x4cf   : > { %v5050_v37 = vpop.eup %4492 }
 0x4d0   : > { %v1439_v34 = vmul.f32 1.442695, %v1436_v31  ;;  %v981_v38 = vsel %vm721_vm5, %v5050_v37, 0.0 }
 0x4d1   : > { %v993_v42 = vpop.permute.xlu0 %992  ;;  %v1230_v60 = vpop.permute.xlu1 %1229 }
 0x4d2   : > { %4498 = vpow2.f32 %v1439_v34 }
 0x4d3   : > { %v5054_v39 = vpop.eup %4494 }
 0x4d4   : > { %v1210_v40 = vsel %vm721_vm5, %v5054_v39, 0.0 }
 0x4d7   : > { %1227 = vrot.lane.b32.xlu0 %v4824_v17, %s4632_s24 }
 0x4db   : > { %v5058_v41 = vpop.eup %4496 }
 0x4dc   : > { %v1216_v43 = vsel %vm721_vm5, %v5058_v41, 0.0 }
 0x4df   : > { %v5062_v46 = vpop.eup %4498 }
 0x4e0   : > { %v1445_v53 = vsel %vm721_vm5, %v5062_v46, 0.0 }
 0x4f2   : > { %747 = vadd.xlane.f32.xlu1 %v746_v25 }
 0x4f6   : > { %979 = vadd.xlane.f32.xlu1 %v978_v33  ;;  %976 = vadd.xlane.f32.xlu0 %v975_v36 }
 0x4fa   : > { %982 = vadd.xlane.f32.xlu0 %v981_v38 }
 0x4fe   : > { %1211 = vadd.xlane.f32.xlu0 %v1210_v40 }
 0x502   : > { %1217 = vadd.xlane.f32.xlu0 %v1216_v43  ;;  %v1435_v47 = vpop.xlane.xlu0 %1434  ;;  %v1432_v50 = vpop.xlane.xlu1 %1431 }
 0x503   : > { %v1438_v49 = vsub.f32 %v5009_v45, %v1435_v47  ;;  %v1437_v45 = vsub.f32 %v5006_v44, %v1432_v50 }
 0x505   : > { %v1443_v51 = vmul.f32 1.442695, %v1438_v49  ;;  %v1441_v4 = vmul.f32 1.442695, %v1437_v45 }
 0x506   : > { %1446 = vadd.xlane.f32.xlu0 %v1445_v53 }
 0x507   : > { %1464 = vrot.lane.b32.xlu1 %v4830_v22, %s5911_s25  ;;  %4500 = vpow2.f32 %v1443_v51 }
 0x508   : > { %4502 = vpow2.f32 %v1206_v55 }
 0x509   : > { %4504 = vpow2.f32 %v1441_v4  ;;  %v1607_v4 = vld [vmem:[%s5904_s4 + $0x18] sm:$0xff] }
 0x50a   : > { %4153 = vmatpush3.msra.mxu1 %v1607_v4 }
 0x50b   : > { %4154 = vmatprep.subr.mxu1 %v4620_v1 }
 0x514   : > { %v5070_v3 = vpop.eup %4500 }
 0x515   : > { %v1451_v62 = vsel %vm721_vm5, %v5070_v3, 0.0  ;;  %v5075_v5 = vpop.eup %4502 }
 0x516   : > { %1452 = vadd.xlane.f32.xlu0 %v1451_v62  ;;  %v1213_v22 = vsel %vm721_vm5, %v5075_v5, 0.0  ;;  %v5079_v7 = vpop.eup %4504 }
 0x517   : > { %v1448_v29 = vsel %vm721_vm5, %v5079_v7, 0.0 }
 0x52b   : > { %1214 = vadd.xlane.f32.xlu1 %v1213_v22 }
 0x52c   : > { %1460 = vrot.lane.b32.xlu0 %v4828_v21, %s5911_s25 }
 0x52f   : > { %1449 = vadd.xlane.f32.xlu1 %v1448_v29 }
 0x540   : > { %1462 = vrot.lane.b32.xlu1 %v4824_v17, %s5911_s25 }
 0x546   : > { %v742_v44 = vpop.xlane.xlu1 %741 }
 0x547   : > { %4506 = vrcp.f32 %v742_v44 }
 0x54a   : > { %v745_v8 = vpop.xlane.xlu0 %744  ;;  %v1226_v17 = vpop.permute.xlu1 %1225 }
 0x54b   : > { %4508 = vrcp.f32 %v745_v8 }
 0x554   : > { %v4507_v9 = vpop.eup %4506 }
 0x555   : > { %v752_v12 = vmul.f32 %v4507_v9, %v5019_v63  ;;  %v1606_v9 = vld [vmem:[%s5904_s4 + $0x10] sm:$0xff] }
 0x556   : > { %4155 = vmatpush3.msra.mxu1 %v1606_v9 }
 0x557   : > { %4054 = vmatmul.mubr.msk.f32.vlgmr.msra.gmra.mxu0 %vm721_vm5, %v752_v12  ;;  %v1605_v12 = vld [vmem:[%s5904_s4 + $0x8] sm:$0xff]  ;;  %4156 = vmatprep.subr.mxu1 %v4620_v1 }
 0x558   : > { %v4509_v13 = vpop.eup %4508  ;;  %4078 = vmatpush3.msra.mxu0 %v5015_v48  ;;  %4056 = vmatprep.mubr.msk.f32.mxu0 %vm4621_vm0, %v4620_v1  ;;  %v1228_v48 = vpop.permute.xlu0 %1227 }
 0x559   : > { %4079 = vmatprep.subr.mxu0 %v4620_v1  ;;  %v753_v21 = vmul.f32 %v4509_v13, %v5023_v0  ;;  %v1604_v13 = vld [vmem:[%s5904_s4] sm:$0xff]  ;;  %4157 = vmatpush3.msra.mxu1 %v1605_v12 }
 0x55a   : > { %4080 = vmatpush3.msra.mxu0 %v993_v42  ;;  %4158 = vmatprep.subr.mxu1 %v4620_v1 }
 0x55b   : > { %4081 = vmatprep.subr.mxu0 %v4620_v1  ;;  %4057 = vmatmul.mubr.msk.f32.gmra.mxu0 %vm721_vm5, %v753_v21 }
 0x55c   : > { %4082 = vmatpush3.msra.mxu0 %v991_v56  ;;  %4059 = vmatprep.mubr.msk.f32.mxu0 %vm4621_vm0, %v4620_v1 }
 0x55d   : > { %4107 = vmatprep.subr.mxu0 %v4620_v1  ;;  %4159 = vmatpush3.msra.mxu1 %v1604_v13 }
 0x55e   : > { %4186 = vmatprep.subr.mxu1 %v4620_v1 }
 0x57b   : > { %v748_v63 = vpop.xlane.xlu1 %747 }
 0x57c   : > { %4510 = vrcp.f32 %v748_v63 }
 0x57f   : > { %v977_v15 = vpop.xlane.xlu0 %976  ;;  %v980_v18 = vpop.xlane.xlu1 %979 }
 0x580   : > { %4512 = vrcp.f32 %v977_v15 }
 0x581   : > { %4514 = vrcp.f32 %v980_v18 }
 0x583   : > { %v983_v0 = vpop.xlane.xlu0 %982 }
 0x584   : > { %4516 = vrcp.f32 %v983_v0 }
 0x587   : > { %v1212_v20 = vpop.xlane.xlu0 %1211 }
 0x588   : > { %4518 = vrcp.f32 %v1212_v20 }
 0x589   : > { %v4511_v23 = vpop.eup %4510 }
 0x58a   : > { %v754_v26 = vmul.f32 %v4511_v23, %v5038_v32 }
 0x58b   : > { %v1218_v34 = vpop.xlane.xlu0 %1217 }
 0x58c   : > { %4060 = vmatmul.mubr.msk.f32.gmra.mxu0 %vm721_vm5, %v754_v26 }
 0x58d   : > { %4083 = vmatprep.mubr.msk.f32.mxu0 %vm4621_vm0, %v4620_v1  ;;  %v4513_v2 = vpop.eup %4512 }
 0x58e   : > { %v987_v27 = vmul.f32 %v4513_v2, %v5040_v16  ;;  %v4515_v28 = vpop.eup %4514  ;;  %v1465_v16 = vpop.permute.xlu1 %1464 }
 0x58f   : > { %v988_v6 = vmul.f32 %v4515_v28, %v5044_v35  ;;  %v1447_v25 = vpop.xlane.xlu0 %1446 }
 0x590   : > { %4084 = vmatmul.mubr.msk.f32.vlgmr.msra.gmra.mxu0 %vm721_vm5, %v987_v27 }
 0x591   : > { %4108 = vmatpush3.msra.mxu0 %v1230_v60  ;;  %4086 = vmatprep.mubr.msk.f32.mxu0 %vm4621_vm0, %v4620_v1  ;;  %v4517_v30 = vpop.eup %4516 }
 0x592   : > { %4109 = vmatprep.subr.mxu0 %v4620_v1  ;;  %v989_v10 = vmul.f32 %v4517_v30, %v5050_v37 }
 0x593   : > { %4110 = vmatpush3.msra.mxu0 %v1228_v48 }
 0x594   : > { %4111 = vmatprep.subr.mxu0 %v4620_v1  ;;  %4087 = vmatmul.mubr.msk.f32.gmra.mxu0 %vm721_vm5, %v988_v6 }
 0x595   : > { %4112 = vmatpush3.msra.mxu0 %v1226_v17  ;;  %4089 = vmatprep.mubr.msk.f32.mxu0 %vm4621_vm0, %v4620_v1  ;;  %v4519_v31 = vpop.eup %4518 }
 0x596   : > { %4137 = vmatprep.subr.mxu0 %v4620_v1  ;;  %v1222_v32 = vmul.f32 %v4519_v31, %v5054_v39 }
 0x598   : > { %4090 = vmatmul.mubr.msk.f32.gmra.mxu0 %vm721_vm5, %v989_v10 }
 0x599   : > { %4113 = vmatprep.mubr.msk.f32.mxu0 %vm4621_vm0, %v4620_v1 }
 0x59c   : > { %4114 = vmatmul.mubr.msk.f32.vlgmr.msra.gmra.mxu0 %vm721_vm5, %v1222_v32 }
 0x59d   : > { %4138 = vmatpush3.msra.mxu0 %v1465_v16  ;;  %4116 = vmatprep.mubr.msk.f32.mxu0 %vm4621_vm0, %v4620_v1 }
 0x59e   : > { %4139 = vmatprep.subr.mxu0 %v4620_v1 }
 0x59f   : > { %v1453_v33 = vpop.xlane.xlu0 %1452 }
 0x5a3   : > { %v1461_v38 = vpop.permute.xlu0 %1460 }
 0x5b4   : > { %v1215_v35 = vpop.xlane.xlu1 %1214 }
 0x5b5   : > { %4520 = vrcp.f32 %v1215_v35 }
 0x5b6   : > { %4522 = vrcp.f32 %v1218_v34 }
 0x5b7   : > { %4524 = vrcp.f32 %v1447_v25 }
 0x5b8   : > { %v1450_v36 = vpop.xlane.xlu1 %1449 }
 0x5b9   : > { %4526 = vrcp.f32 %v1450_v36 }
 0x5ba   : > { %4528 = vrcp.f32 %v1453_v33 }
 0x5bc   : > { %v1463_v37 = vpop.permute.xlu1 %1462 }
 0x5bd   : > { %4140 = vmatpush3.msra.mxu0 %v1463_v37 }
 0x5be   : > { %4141 = vmatprep.subr.mxu0 %v4620_v1 }
 0x5bf   : > { %4142 = vmatpush3.msra.mxu0 %v1461_v38 }
 0x5c0   : > { %4169 = vmatprep.subr.mxu0 %v4620_v1 }
 0x5c2   : > { %v4521_v39 = vpop.eup %4520 }
 0x5c3   : > { %v1223_v40 = vmul.f32 %v4521_v39, %v5075_v5  ;;  %v4523_v42 = vpop.eup %4522 }
 0x5c4   : > { %v1224_v43 = vmul.f32 %v4523_v42, %v5058_v41  ;;  %v4525_v47 = vpop.eup %4524  ;;  %v1702_v42 = vsub.s32 4, %v4794_v54 }
 0x5c5   : > { %4117 = vmatmul.mubr.msk.f32.gmra.mxu0 %vm721_vm5, %v1223_v40  ;;  %v1457_v49 = vmul.f32 %v4525_v47, %v5062_v46 }
 0x5c6   : > { %4119 = vmatprep.mubr.msk.f32.mxu0 %vm4621_vm0, %v4620_v1  ;;  %v4527_v51 = vpop.eup %4526 }
 0x5c7   : > { %v1458_v53 = vmul.f32 %v4527_v51, %v5079_v7  ;;  %v4529_v56 = vpop.eup %4528 }
 0x5c8   : > { %v1459_v41 = vmul.f32 %v4529_v56, %v5070_v3 }
 0x5c9   : > { %4120 = vmatmul.mubr.msk.f32.gmra.mxu0 %vm721_vm5, %v1224_v43  ;;  %v1703_v43 = vrot.slane %v4802_v58, %v1702_v42 }
 0x5ca   : > { %4143 = vmatprep.mubr.msk.f32.mxu0 %vm4621_vm0, %v4620_v1 }
 0x5cd   : > { %4144 = vmatmul.mubr.msk.f32.vlgmr.msra.gmra.mxu0 %vm721_vm5, %v1457_v49 }
 0x5ce   : > { %4146 = vmatprep.mubr.msk.f32.mxu0 %vm4621_vm0, %v4620_v1 }
 0x5d1   : > { %4147 = vmatmul.mubr.msk.f32.gmra.mxu0 %vm721_vm5, %v1458_v53 }
 0x5d2   : > { %4149 = vmatprep.mubr.msk.f32.mxu0 %vm4621_vm0, %v4620_v1 }
 0x5d5   : > { %4150 = vmatmul.mubr.msk.f32.gmra.mxu0 %vm721_vm5, %v1459_v41 }
 0x5d6   : > { %4177 = vmatprep.mubr.msk.f32.mxu0 %vm4621_vm0, %v4620_v1 }
 0x617   : > { %v839_v46 = vpop.f32.mrf.mxu0 }
 0x619   : > { %v4055_v60 = vpop.f32.mrf.mxu0 }
 0x61b   : > { %v844_v61 = vpop.f32.mrf.mxu0 }
 0x61d   : > { %v4058_v50 = vpop.f32.mrf.mxu0 }
 0x64c   : > { %v5145_v55 = vpop.f32.mrf.mxu0 }
 0x64e   : > { %v4061_v45 = vpop.f32.mrf.mxu0 }
 0x650   : > { %v1074_v62 = vpop.f32.mrf.mxu0 }
 0x651   : > { %1561 = vrot.lane.b32.xlu1 %v1074_v62, %s5917_s28 }
 0x652   : > { %v4085_v3 = vpop.f32.mrf.mxu0 }
 0x654   : > { %v1079_v5 = vpop.f32.mrf.mxu0 }
 0x655   : > { %1563 = vrot.lane.b32.xlu0 %v1079_v5, %s5917_s28 }
 0x656   : > { %v4088_v22 = vpop.f32.mrf.mxu0 }
 0x658   : > { %v1084_v7 = vpop.f32.mrf.mxu0 }
 0x65a   : > { %v4091_v29 = vpop.f32.mrf.mxu0 }
 0x65c   : > { %v1309_v44 = vpop.f32.mrf.mxu0 }
 0x65d   : > { %1573 = vrot.lane.b32.xlu0 %v1309_v44, %s5915_s29 }
 0x65e   : > { %v4115_v8 = vpop.f32.mrf.mxu0 }
 0x685   : > { %v1314_v21 = vpop.f32.mrf.mxu0 }
 0x686   : > { %1575 = vrot.lane.b32.xlu1 %v1314_v21, %s5915_s29 }
 0x687   : > { %v4118_v17 = vpop.f32.mrf.mxu0 }
 0x689   : > { %v1319_v48 = vpop.f32.mrf.mxu0 }
 0x68b   : > { %v4121_v63 = vpop.f32.mrf.mxu0 }
 0x68c   : > { %v1762_v63 = vld [vmem:[%s5905_s5 + $0x10] sm:$0xff] }
 0x68d   : > { %v1544_v15 = vpop.f32.mrf.mxu0 }
 0x68e   : > { %1585 = vrot.lane.b32.xlu1 %v1544_v15, %s5913_s30  ;;  %v1761_v15 = vld [vmem:[%s5905_s5 + $0x8] sm:$0xff] }
 0x68f   : > { %v4145_v18 = vpop.f32.mrf.mxu0 }
 0x690   : > { %v1760_v18 = vld [vmem:[%s5905_s5] sm:$0xff] }
 0x691   : > { %v1549_v0 = vpop.f32.mrf.mxu0 }
 0x692   : > { %1565 = vrot.lane.b32.xlu1 %v1084_v7, %s5917_s28  ;;  %1587 = vrot.lane.b32.xlu0 %v1549_v0, %s5913_s30 }
 0x693   : > { %v4148_v20 = vpop.f32.mrf.mxu0 }
 0x695   : > { %v1554_v23 = vpop.f32.mrf.mxu0 }
 0x696   : > { %1577 = vrot.lane.b32.xlu0 %v1319_v48, %s5915_s29  ;;  %1589 = vrot.lane.b32.xlu1 %v1554_v23, %s5913_s30  ;;  %v1763_v48 = vld [vmem:[%s5905_s5 + $0x18] sm:$0xff] }
 0x697   : > { %v4151_v26 = vpop.f32.mrf.mxu0  ;;  %4170 = vmatpush3.msra.mxu0 %v1763_v48 }
 0x698   : > { %4171 = vmatprep.subr.mxu0 %v4620_v1 }
 0x699   : > { %4172 = vmatpush3.msra.mxu0 %v1762_v63 }
 0x69a   : > { %4173 = vmatprep.subr.mxu0 %v4620_v1 }
 0x69b   : > { %4174 = vmatpush3.msra.mxu0 %v1761_v15 }
 0x69c   : > { %4175 = vmatprep.subr.mxu0 %v4620_v1 }
 0x69d   : > { %4176 = vmatpush3.msra.mxu0 %v1760_v18 }
 0x69e   : > { %4227 = vmatprep.subr.mxu0 %v4620_v1 }
 0x6c3   : > { %v1562_v2 = vpop.permute.xlu1 %1561 }
 0x6c4   : > { %v1594_v30 = vsel %vm628_vm3, %v839_v46, %v1562_v2 }
 0x6c7   : > { %v1564_v27 = vpop.permute.xlu0 %1563 }
 0x6c8   : > { %v1595_v16 = vsel %vm628_vm3, %v844_v61, %v1564_v27 }
 0x6cf   : > { %v1574_v6 = vpop.permute.xlu0 %1573 }
 0x6d0   : > { %v1598_v10 = vsel %vm1597_vm6, %v1594_v30, %v1574_v6 }
 0x6f8   : > { %v1576_v28 = vpop.permute.xlu1 %1575 }
 0x6f9   : > { %v1599_v34 = vsel %vm1597_vm6, %v1595_v16, %v1576_v28 }
 0x700   : > { %v1586_v31 = vpop.permute.xlu1 %1585 }
 0x701   : > { %v1601_v32 = vsel %vm721_vm5, %v1598_v10, %v1586_v31  ;;  %v1748_v10 = vsub.s32 2, %v4794_v54  ;;  %v1755_v31 = vsub.s32 3, %v4794_v54 }
 0x702   : > { %4161 = vmatmul.mubr.msk.f32.vlgmr.msra.gmra.mxu1 %vm467_vm2, %v1601_v32  ;;  %v5237_v32 = vld [vmem:[%s5907_s7] sm:$0xff] }
 0x703   : > { %4163 = vmatprep.mubr.msk.f32.mxu1 %vm4621_vm0, %v4620_v1  ;;  %v1749_v16 = vrot.slane %v5237_v32, %v1748_v10 }
 0x704   : > { %v1566_v25 = vpop.permute.xlu1 %1565  ;;  %v1588_v35 = vpop.permute.xlu0 %1587 }
 0x705   : > { %v1602_v33 = vsel %vm721_vm5, %v1599_v34, %v1588_v35  ;;  %v1596_v36 = vsel %vm628_vm3, %v5145_v55, %v1566_v25  ;;  %v1756_v35 = vrot.slane %v5237_v32, %v1755_v31 }
 0x706   : > { %4164 = vmatmul.mubr.msk.f32.gmra.mxu1 %vm467_vm2, %v1602_v33 }
 0x707   : > { %4166 = vmatprep.mubr.msk.f32.mxu1 %vm4621_vm0, %v4620_v1 }
 0x708   : > { %v1578_v37 = vpop.permute.xlu0 %1577  ;;  %v1590_v38 = vpop.permute.xlu1 %1589 }
 0x709   : > { %v1600_v39 = vsel %vm1597_vm6, %v1596_v36, %v1578_v37 }
 0x70a   : > { %v1603_v40 = vsel %vm721_vm5, %v1600_v39, %v1590_v38 }
 0x70b   : > { %4167 = vmatmul.mubr.msk.f32.gmra.mxu1 %vm467_vm2, %v1603_v40 }
 0x70c   : > { %4218 = vmatprep.mubr.msk.f32.mxu1 %vm4621_vm0, %v4620_v1 }
 0x7c2   : > { %v1683_v47 = vpop.f32.mrf.mxu1 }
 0x7c3   : > { %v1697_v49 = vadd.f32 %v1683_v47, %v4753_v14 }
 0x7c4   : > { %v4162_v51 = vpop.f32.mrf.mxu1 }
 0x7c5   : > { %v5196_v53 = vadd.f32 %v1703_v43, %v1697_v49 }
 0x7c6   : > { %v1688_v56 = vpop.f32.mrf.mxu1 }
 0x7c7   : > { %v1698_v41 = vadd.f32 %v1688_v56, %v4760_v19  ;;  %v1707_v46 = vsel %vm467_vm2, %v5196_v53, 0.0  ;;  %v1899_v56 = vld [vmem:[%s5906_s6 + $0x78] sm:$0xff] }
 0x7c8   : > { %1708 = vadd.xlane.f32.xlu0 %v1707_v46  ;;  %v4165_v60 = vpop.f32.mrf.mxu1  ;;  %4187 = vmatpush3.msra.mxu1 %v1899_v56  ;;  %v1897_v46 = vld [vmem:[%s5906_s6 + $0x68] sm:$0xff] }
 0x7c9   : > { %v5201_v61 = vadd.f32 %v1703_v43, %v1698_v41  ;;  %4188 = vmatprep.subr.mxu1 %v4620_v1  ;;  %v1898_v41 = vld [vmem:[%s5906_s6 + $0x70] sm:$0xff]  ;;  %v1896_v60 = vld [vmem:[%s5906_s6 + $0x60] sm:$0xff] }
 0x7ca   : > { %4189 = vmatpush3.msra.mxu1 %v1898_v41 }
 0x7cb   : > { %v1693_v50 = vpop.f32.mrf.mxu1  ;;  %v1710_v58 = vsel %vm467_vm2, %v5201_v61, 0.0  ;;  %4190 = vmatprep.subr.mxu1 %v4620_v1 }
 0x7cc   : > { %v1699_v55 = vadd.f32 %v1693_v50, %v4767_v24  ;;  %1711 = vadd.xlane.f32.xlu1 %v1710_v58  ;;  %4191 = vmatpush3.msra.mxu1 %v1897_v46  ;;  %v1895_v50 = vld [vmem:[%s5906_s6 + $0x58] sm:$0xff]  ;;  %v1894_v58 = vld [vmem:[%s5906_s6 + $0x50] sm:$0xff] }
 0x7cd   : > { %v4168_v14 = vpop.f32.mrf.mxu1  ;;  %4192 = vmatprep.subr.mxu1 %v4620_v1 }
 0x7ce   : > { %v5206_v45 = vadd.f32 %v1703_v43, %v1699_v55  ;;  %4193 = vmatpush3.msra.mxu1 %v1896_v60  ;;  %v1893_v55 = vld [vmem:[%s5906_s6 + $0x48] sm:$0xff]  ;;  %v1892_v14 = vld [vmem:[%s5906_s6 + $0x40] sm:$0xff]  ;;  %v1902_v60 = vsub.s32 5, %v4794_v54 }
 0x7cf   : > { %4194 = vmatprep.subr.mxu1 %v4620_v1 }
 0x7d0   : > { %v1713_v19 = vsel %vm467_vm2, %v5206_v45, 0.0  ;;  %4195 = vmatpush3.msra.mxu1 %v1895_v50  ;;  %v1903_v50 = vrot.slane %v5237_v32, %v1902_v60 }
 0x7d1   : > { %1714 = vadd.xlane.f32.xlu0 %v1713_v19  ;;  %4196 = vmatprep.subr.mxu1 %v4620_v1  ;;  %v1891_v19 = vld [vmem:[%s5906_s6 + $0x38] sm:$0xff] }
 0x7d2   : > { %4197 = vmatpush3.msra.mxu1 %v1894_v58 }
 0x7d3   : > { %4198 = vmatprep.subr.mxu1 %v4620_v1 }
 0x7d4   : > { %4199 = vmatpush3.msra.mxu1 %v1893_v55 }
 0x7d5   : > { %4200 = vmatprep.subr.mxu1 %v4620_v1 }
 0x7d6   : > { %4201 = vmatpush3.msra.mxu1 %v1892_v14 }
 0x7d7   : > { %4202 = vmatprep.subr.mxu1 %v4620_v1 }
 0x7d8   : > { %4203 = vmatpush3.msra.mxu1 %v1891_v19 }
 0x7d9   : > { %4204 = vmatprep.subr.mxu1 %v4620_v1 }
 0x851   : > { %v1709_v62 = vpop.xlane.xlu0 %1708 }
 0x852   : > { %v1716_v4 = vmul.f32 0.03125, %v1709_v62  ;;  %v1890_v62 = vld [vmem:[%s5906_s6 + $0x30] sm:$0xff] }
 0x853   : > { %4205 = vmatpush3.msra.mxu1 %v1890_v62 }
 0x854   : > { %v1719_v3 = vsub.f32 %v5196_v53, %v1716_v4  ;;  %4206 = vmatprep.subr.mxu1 %v4620_v1  ;;  %v1889_v4 = vld [vmem:[%s5906_s6 + $0x28] sm:$0xff] }
 0x855   : > { %v1712_v5 = vpop.xlane.xlu1 %1711  ;;  %4207 = vmatpush3.msra.mxu1 %v1889_v4 }
 0x856   : > { %v1717_v22 = vmul.f32 0.03125, %v1712_v5  ;;  %v1722_v7 = vmul.f32 %v1719_v3, %v1719_v3  ;;  %4208 = vmatprep.subr.mxu1 %v4620_v1  ;;  %v1887_v5 = vld [vmem:[%s5906_s6 + $0x18] sm:$0xff] }
 0x858   : > { %v1720_v29 = vsub.f32 %v5201_v61, %v1717_v22  ;;  %v1725_v44 = vsel %vm467_vm2, %v1722_v7, 0.0  ;;  %v1886_v22 = vld [vmem:[%s5906_s6 + $0x10] sm:$0xff]  ;;  %v1885_v7 = vld [vmem:[%s5906_s6 + $0x8] sm:$0xff] }
 0x859   : > { %1726 = vadd.xlane.f32.xlu0 %v1725_v44  ;;  %v1766_v44 = vsub.s32 7, %v4794_v54 }
 0x85a   : > { %v1715_v24 = vpop.xlane.xlu0 %1714  ;;  %v1723_v8 = vmul.f32 %v1720_v29, %v1720_v29 }
 0x85b   : > { %v1718_v9 = vmul.f32 0.03125, %v1715_v24  ;;  %v1767_v24 = vrot.slane %v5237_v32, %v1766_v44 }
 0x85c   : > { %v1728_v12 = vsel %vm467_vm2, %v1723_v8, 0.0 }
 0x85d   : > { %v1721_v13 = vsub.f32 %v5206_v45, %v1718_v9  ;;  %1729 = vadd.xlane.f32.xlu0 %v1728_v12 }
 0x85f   : > { %v1724_v21 = vmul.f32 %v1721_v13, %v1721_v13 }
 0x861   : > { %v1731_v17 = vsel %vm467_vm2, %v1724_v21, 0.0 }
 0x862   : > { %1732 = vadd.xlane.f32.xlu1 %v1731_v17 }
 0x8e2   : > { %v1727_v0 = vpop.xlane.xlu0 %1726 }
 0x8e3   : > { %v1734_v20 = vmul.f32 0.03125, %v1727_v0 }
 0x8e5   : > { %v1737_v23 = vadd.f32 1e-06, %v1734_v20 }
 0x8e6   : > { %v1730_v26 = vpop.xlane.xlu0 %1729 }
 0x8e7   : > { %4530 = vrsqrt.f32 %v1737_v23  ;;  %v1735_v2 = vmul.f32 0.03125, %v1730_v26 }
 0x8e9   : > { %v1738_v27 = vadd.f32 1e-06, %v1735_v2 }
 0x8eb   : > { %4532 = vrsqrt.f32 %v1738_v27  ;;  %v1733_v28 = vpop.xlane.xlu1 %1732 }
 0x8ec   : > { %v1736_v6 = vmul.f32 0.03125, %v1733_v28 }
 0x8ee   : > { %v1739_v30 = vadd.f32 1e-06, %v1736_v6 }
 0x8f0   : > { %4534 = vrsqrt.f32 %v1739_v30 }
 0x8f4   : > { %v4531_v34 = vpop.eup %4530 }
 0x8f5   : > { %v1743_v25 = vmul.f32 %v4531_v34, %v1719_v3  ;;  %v1888_v3 = vld [vmem:[%s5906_s6 + $0x20] sm:$0xff] }
 0x8f6   : > { %4209 = vmatpush3.msra.mxu1 %v1888_v3 }
 0x8f7   : > { %v1750_v33 = vmul.f32 %v1749_v16, %v1743_v25  ;;  %4210 = vmatprep.subr.mxu1 %v4620_v1 }
 0x8f8   : > { %v4533_v36 = vpop.eup %4532  ;;  %4211 = vmatpush3.msra.mxu1 %v1887_v5 }
 0x8f9   : > { %v1757_v37 = vadd.f32 %v1756_v35, %v1750_v33  ;;  %v1744_v38 = vmul.f32 %v4533_v36, %v1720_v29  ;;  %4212 = vmatprep.subr.mxu1 %v4620_v1  ;;  %v1884_v29 = vld [vmem:[%s5906_s6] sm:$0xff] }
 0x8fa   : > { %4213 = vmatpush3.msra.mxu1 %v1886_v22 }
 0x8fb   : > { %4178 = vmatmul.mubr.msk.f32.vlgmr.msra.gmra.mxu0 %vm467_vm2, %v1757_v37  ;;  %v1751_v39 = vmul.f32 %v1749_v16, %v1744_v38  ;;  %4214 = vmatprep.subr.mxu1 %v4620_v1 }
 0x8fc   : > { %4180 = vmatprep.mubr.msk.f32.mxu0 %vm4621_vm0, %v4620_v1  ;;  %4215 = vmatpush3.msra.mxu1 %v1885_v7 }
 0x8fd   : > { %v4535_v40 = vpop.eup %4534  ;;  %v1758_v43 = vadd.f32 %v1756_v35, %v1751_v39  ;;  %4216 = vmatprep.subr.mxu1 %v4620_v1 }
 0x8fe   : > { %v1745_v47 = vmul.f32 %v4535_v40, %v1721_v13  ;;  %4217 = vmatpush3.msra.mxu1 %v1884_v29 }
 0x8ff   : > { %4181 = vmatmul.mubr.msk.f32.gmra.mxu0 %vm467_vm2, %v1758_v43  ;;  %4274 = vmatprep.subr.mxu1 %v4620_v1 }
 0x900   : > { %4183 = vmatprep.mubr.msk.f32.mxu0 %vm4621_vm0, %v4620_v1  ;;  %v1752_v49 = vmul.f32 %v1749_v16, %v1745_v47 }
 0x902   : > { %v1759_v51 = vadd.f32 %v1756_v35, %v1752_v49 }
 0x904   : > { %4184 = vmatmul.mubr.msk.f32.gmra.mxu0 %vm467_vm2, %v1759_v51 }
 0x905   : > { %4235 = vmatprep.mubr.msk.f32.mxu0 %vm4621_vm0, %v4620_v1 }
 0x9bb   : > { %v1843_v8 = vpop.f32.mrf.mxu0 }
 0x9bc   : > { %v1844_v9 = vadd.f32 %v1843_v8, %v1767_v24 }
 0x9bd   : > { %v4179_v12 = vpop.f32.mrf.mxu0 }
 0x9be   : > { %v1857_v13 = vmul.f32 %v1844_v9, %v1844_v9 }
 0x9bf   : > { %v1848_v21 = vpop.f32.mrf.mxu0 }
 0x9c0   : > { %v1860_v17 = vmul.f32 %v1857_v13, %v1844_v9  ;;  %v1849_v48 = vadd.f32 %v1848_v21, %v1767_v24 }
 0x9c1   : > { %v4182_v63 = vpop.f32.mrf.mxu0 }
 0x9c2   : > { %v1863_v15 = vmul.f32 0.044715, %v1860_v17  ;;  %v1858_v18 = vmul.f32 %v1849_v48, %v1849_v48 }
 0x9c4   : > { %v1866_v0 = vadd.f32 %v1863_v15, %v1844_v9  ;;  %v1861_v20 = vmul.f32 %v1858_v18, %v1849_v48  ;;  %v1853_v23 = vpop.f32.mrf.mxu0 }
 0x9c5   : > { %v1854_v26 = vadd.f32 %v1853_v23, %v1767_v24 }
 0x9c6   : > { %v1869_v2 = vmul.f32 0.7978846, %v1866_v0  ;;  %v1864_v27 = vmul.f32 0.044715, %v1861_v20  ;;  %v4185_v28 = vpop.f32.mrf.mxu0 }
 0x9c7   : > { %v1859_v6 = vmul.f32 %v1854_v26, %v1854_v26  ;;  %v3723_v28 = vld [vmem:[%s5903_s3 + $0x28] sm:$0xff] }
 0x9c8   : > { %4536 = vtanh.f32 %v1869_v2  ;;  %v1867_v30 = vadd.f32 %v1864_v27, %v1849_v48  ;;  %v3725_v2 = vld [vmem:[%s5903_s3 + $0x38] sm:$0xff]  ;;  %v3724_v27 = vld [vmem:[%s5903_s3 + $0x30] sm:$0xff] }
 0x9c9   : > { %v1862_v16 = vmul.f32 %v1859_v6, %v1854_v26  ;;  %4228 = vmatpush3.msra.mxu0 %v3725_v2  ;;  %v3722_v6 = vld [vmem:[%s5903_s3 + $0x20] sm:$0xff] }
 0x9ca   : > { %v1870_v34 = vmul.f32 0.7978846, %v1867_v30  ;;  %4229 = vmatprep.subr.mxu0 %v4620_v1 }
 0x9cb   : > { %v1865_v25 = vmul.f32 0.044715, %v1862_v16  ;;  %4230 = vmatpush3.msra.mxu0 %v3724_v27 }
 0x9cc   : > { %4538 = vtanh.f32 %v1870_v34  ;;  %4231 = vmatprep.subr.mxu0 %v4620_v1 }
 0x9cd   : > { %v1868_v35 = vadd.f32 %v1865_v25, %v1854_v26  ;;  %4232 = vmatpush3.msra.mxu0 %v3723_v28 }
 0x9ce   : > { %4233 = vmatprep.subr.mxu0 %v4620_v1 }
 0x9cf   : > { %v1871_v33 = vmul.f32 0.7978846, %v1868_v35  ;;  %4234 = vmatpush3.msra.mxu0 %v3722_v6 }
 0x9d0   : > { %4244 = vmatprep.subr.mxu0 %v4620_v1 }
 0x9d1   : > { %4540 = vtanh.f32 %v1871_v33 }
 0x9d5   : > { %v4537_v36 = vpop.eup %4536 }
 0x9d6   : > { %v1875_v37 = vadd.f32 1.0, %v4537_v36 }
 0x9d8   : > { %v1878_v38 = vmul.f32 0.5, %v1875_v37 }
 0x9d9   : > { %v4539_v39 = vpop.eup %4538 }
 0x9da   : > { %v1881_v40 = vmul.f32 %v1878_v38, %v1844_v9  ;;  %v1876_v43 = vadd.f32 1.0, %v4539_v39  ;;  %v5372_v39 = vld [vmem:[%s5907_s7 + $0x8] sm:$0xff] }
 0x9dc   : > { %4219 = vmatmul.mubr.f32.vlgmr.msra.gmra.mxu1 %v1881_v40  ;;  %v1879_v47 = vmul.f32 0.5, %v1876_v43  ;;  %v2031_v40 = vrot.slane %v5372_v39, %v4797_v57 }
 0x9dd   : > { %4221 = vmatprep.mubr.msk.f32.mxu1 %vm4621_vm0, %v4620_v1 }
 0x9de   : > { %v4541_v49 = vpop.eup %4540  ;;  %v1882_v51 = vmul.f32 %v1879_v47, %v1849_v48 }
 0x9df   : > { %v1877_v56 = vadd.f32 1.0, %v4541_v49  ;;  %v2038_v49 = vrot.slane %v5372_v39, %v4805_v59 }
 0x9e0   : > { %4222 = vmatmul.mubr.f32.gmra.mxu1 %v1882_v51 }
 0x9e1   : > { %4224 = vmatprep.mubr.msk.f32.mxu1 %vm4621_vm0, %v4620_v1  ;;  %v1880_v41 = vmul.f32 0.5, %v1877_v56 }
 0x9e3   : > { %v1883_v46 = vmul.f32 %v1880_v41, %v1854_v26 }
 0x9e5   : > { %4225 = vmatmul.mubr.f32.gmra.mxu1 %v1883_v46 }
 0x9e6   : > { %4280 = vmatprep.mubr.msk.f32.mxu1 %vm4621_vm0, %v4620_v1 }
 0xa9c   : > { %v1970_v58 = vpop.f32.mrf.mxu1 }
 0xa9d   : > { %v1971_v55 = vadd.f32 %v1970_v58, %v1903_v50 }
 0xa9e   : > { %v4220_v14 = vpop.f32.mrf.mxu1 }
 0xa9f   : > { %v5333_v19 = vadd.f32 %v1971_v55, %v5196_v53 }
 0xaa0   : > { %v1975_v62 = vpop.f32.mrf.mxu1 }
 0xaa1   : > { %v1976_v4 = vadd.f32 %v1975_v62, %v1903_v50  ;;  %v1989_v3 = vsel %vm467_vm2, %v5333_v19, 0.0 }
 0xaa2   : > { %1990 = vadd.xlane.f32.xlu0 %v1989_v3  ;;  %v4223_v5 = vpop.f32.mrf.mxu1 }
 0xaa3   : > { %v5338_v22 = vadd.f32 %v1976_v4, %v5201_v61 }
 0xaa5   : > { %v1980_v7 = vpop.f32.mrf.mxu1  ;;  %v1992_v32 = vsel %vm467_vm2, %v5338_v22, 0.0 }
 0xaa6   : > { %v1981_v29 = vadd.f32 %v1980_v7, %v1903_v50  ;;  %1993 = vadd.xlane.f32.xlu1 %v1992_v32  ;;  %v2050_v7 = vrot.slane %v5372_v39, %v528_v11 }
 0xaa7   : > { %v4226_v24 = vpop.f32.mrf.mxu1 }
 0xaa8   : > { %v5343_v53 = vadd.f32 %v1981_v29, %v5206_v45 }
 0xaaa   : > { %v1995_v8 = vsel %vm467_vm2, %v5343_v53, 0.0 }
 0xaab   : > { %1996 = vadd.xlane.f32.xlu0 %v1995_v8 }
 0xb2b   : > { %v1991_v9 = vpop.xlane.xlu0 %1990 }
 0xb2c   : > { %v1998_v12 = vmul.f32 0.03125, %v1991_v9 }
 0xb2e   : > { %v2001_v13 = vsub.f32 %v5333_v19, %v1998_v12 }
 0xb2f   : > { %v1994_v61 = vpop.xlane.xlu1 %1993 }
 0xb30   : > { %v1999_v21 = vmul.f32 0.03125, %v1994_v61  ;;  %v2004_v17 = vmul.f32 %v2001_v13, %v2001_v13 }
 0xb32   : > { %v2002_v48 = vsub.f32 %v5338_v22, %v1999_v21  ;;  %v2007_v63 = vsel %vm467_vm2, %v2004_v17, 0.0 }
 0xb33   : > { %2008 = vadd.xlane.f32.xlu1 %v2007_v63 }
 0xb34   : > { %v1997_v15 = vpop.xlane.xlu0 %1996  ;;  %v2005_v18 = vmul.f32 %v2002_v48, %v2002_v48 }
 0xb35   : > { %v2000_v45 = vmul.f32 0.03125, %v1997_v15 }
 0xb36   : > { %v2010_v0 = vsel %vm467_vm2, %v2005_v18, 0.0 }
 0xb37   : > { %v2003_v20 = vsub.f32 %v5343_v53, %v2000_v45  ;;  %2011 = vadd.xlane.f32.xlu0 %v2010_v0 }
 0xb39   : > { %v2006_v23 = vmul.f32 %v2003_v20, %v2003_v20 }
 0xb3b   : > { %v2013_v26 = vsel %vm467_vm2, %v2006_v23, 0.0 }
 0xb3c   : > { %2014 = vadd.xlane.f32.xlu1 %v2013_v26 }
 0xbbc   : > { %v2009_v30 = vpop.xlane.xlu1 %2008 }
 0xbbd   : > { %v2016_v16 = vmul.f32 0.03125, %v2009_v30 }
 0xbbf   : > { %v2019_v34 = vadd.f32 1e-06, %v2016_v16 }
 0xbc0   : > { %v2012_v25 = vpop.xlane.xlu0 %2011 }
 0xbc1   : > { %4542 = vrsqrt.f32 %v2019_v34  ;;  %v2017_v35 = vmul.f32 0.03125, %v2012_v25 }
 0xbc3   : > { %v2020_v33 = vadd.f32 1e-06, %v2017_v35 }
 0xbc5   : > { %4544 = vrsqrt.f32 %v2020_v33  ;;  %v2015_v36 = vpop.xlane.xlu1 %2014 }
 0xbc6   : > { %v2018_v37 = vmul.f32 0.03125, %v2015_v36 }
 0xbc8   : > { %v2021_v38 = vadd.f32 1e-06, %v2018_v37 }
 0xbca   : > { %4546 = vrsqrt.f32 %v2021_v38 }
 0xbce   : > { %v4543_v43 = vpop.eup %4542 }
 0xbcf   : > { %v2025_v47 = vmul.f32 %v4543_v43, %v2001_v13 }
 0xbd1   : > { %v2032_v51 = vmul.f32 %v2031_v40, %v2025_v47 }
 0xbd2   : > { %v4545_v56 = vpop.eup %4544 }
 0xbd3   : > { %v2039_v41 = vadd.f32 %v2038_v49, %v2032_v51  ;;  %v2026_v46 = vmul.f32 %v4545_v56, %v2002_v48 }
 0xbd5   : > { %4236 = vmatmul.mubr.msk.f32.vlgmr.msra.gmra.mxu0 %vm467_vm2, %v2039_v41  ;;  %v2033_v50 = vmul.f32 %v2031_v40, %v2026_v46 }
 0xbd6   : > { %4238 = vmatprep.mubr.msk.f32.mxu0 %vm4621_vm0, %v4620_v1 }
 0xbd7   : > { %v4547_v58 = vpop.eup %4546  ;;  %v2040_v55 = vadd.f32 %v2038_v49, %v2033_v50 }
 0xbd8   : > { %v2027_v14 = vmul.f32 %v4547_v58, %v2003_v20 }
 0xbd9   : > { %4239 = vmatmul.mubr.msk.f32.gmra.mxu0 %vm467_vm2, %v2040_v55 }
 0xbda   : > { %4241 = vmatprep.mubr.msk.f32.mxu0 %vm4621_vm0, %v4620_v1  ;;  %v2034_v62 = vmul.f32 %v2031_v40, %v2027_v14 }
 0xbdc   : > { %v2041_v4 = vadd.f32 %v2038_v49, %v2034_v62 }
 0xbde   : > { %4242 = vmatmul.mubr.msk.f32.gmra.mxu0 %vm467_vm2, %v2041_v4 }
 0xbdf   : > { %4250 = vmatprep.mubr.msk.f32.mxu0 %vm4621_vm0, %v4620_v1 }
 0xc95   : > { %v2126_v3 = vpop.f32.mrf.mxu0 }
 0xc96   : > { %v5394_v8 = vadd.f32 %v2126_v3, %v2050_v7 }
 0xc97   : > { %v4237_v5 = vpop.f32.mrf.mxu0 }
 0xc99   : > { %v2131_v32 = vpop.f32.mrf.mxu0 }
 0xc9a   : > { %v5390_v29 = vadd.f32 %v2131_v32, %v2050_v7 }
 0xc9b   : > { %v4240_v24 = vpop.f32.mrf.mxu0 }
 0xc9c   : > { %2145 = vrot.lane.b32.xlu1 %v5390_v29, %s4622_s15 }
 0xc9e   : > { %v2136_v9 = vpop.f32.mrf.mxu0 }
 0xc9f   : > { %v5396_v12 = vadd.f32 %v2136_v9, %v2050_v7 }
 0xca0   : > { %2143 = vrot.lane.b32.xlu1 %v5394_v8, %s4622_s15  ;;  %v4243_v13 = vpop.f32.mrf.mxu0 }
 0xca1   : > { %2147 = vrot.lane.b32.xlu0 %v5396_v12, %s4622_s15  ;;  %s5919_s15 = smov 40  }
 0xca4   : > { %2382 = vrot.lane.b32.xlu1 %v5396_v12, %s4623_s16 }
 0xca5   : > { %2380 = vrot.lane.b32.xlu0 %v5390_v29, %s4623_s16 }
 0xca8   : > { %2378 = vrot.lane.b32.xlu1 %v5394_v8, %s4623_s16 }
 0xca9   : > { %2372 = vrot.lane.b32.xlu0 %v5394_v8, %s4624_s17 }
 0xcac   : > { %2617 = vrot.lane.b32.xlu1 %v5396_v12, %s4625_s18 }
 0xcad   : > { %2374 = vrot.lane.b32.xlu0 %v5390_v29, %s4624_s17 }
 0xcb0   : > { %2615 = vrot.lane.b32.xlu1 %v5390_v29, %s4625_s18 }
 0xcb1   : > { %2376 = vrot.lane.b32.xlu0 %v5396_v12, %s4624_s17 }
 0xcb4   : > { %2613 = vrot.lane.b32.xlu1 %v5394_v8, %s4625_s18 }
 0xcb5   : > { %2607 = vrot.lane.b32.xlu0 %v5394_v8, %s4626_s19 }
 0xcb8   : > { %2852 = vrot.lane.b32.xlu1 %v5396_v12, %s4627_s20 }
 0xcb9   : > { %2609 = vrot.lane.b32.xlu0 %v5390_v29, %s4626_s19 }
 0xcbc   : > { %2850 = vrot.lane.b32.xlu1 %v5390_v29, %s4627_s20 }
 0xcbd   : > { %2611 = vrot.lane.b32.xlu0 %v5396_v12, %s4626_s19 }
 0xcc0   : > { %2848 = vrot.lane.b32.xlu1 %v5394_v8, %s4627_s20  ;;  %s5920_s20 = smov 8  }
 0xcc1   : > { %2842 = vrot.lane.b32.xlu0 %v5394_v8, %s4628_s21 }
 0xcc4   : > { %2274 = vrot.lane.b32.xlu1 %v5394_v8, %s4629_s22 }
 0xcc5   : > { %2276 = vrot.lane.b32.xlu0 %v5390_v29, %s4629_s22 }
 0xcc8   : > { %2509 = vrot.lane.b32.xlu1 %v5394_v8, %s4630_s23 }
 0xcc9   : > { %2511 = vrot.lane.b32.xlu0 %v5390_v29, %s4630_s23 }
 0xccc   : > { %2746 = vrot.lane.b32.xlu1 %v5390_v29, %s4632_s24 }
 0xcd0   : > { %2278 = vrot.lane.b32.xlu1 %v5396_v12, %s4629_s22 }
 0xcd4   : > { %2513 = vrot.lane.b32.xlu1 %v5396_v12, %s4630_s23 }
 0xcd8   : > { %2748 = vrot.lane.b32.xlu1 %v5396_v12, %s4632_s24 }
 0xd0e   : > { %v2146_v11 = vpop.permute.xlu1 %2145 }
 0xd12   : > { %v2144_v61 = vpop.permute.xlu1 %2143 }
 0xd13   : > { %v2148_v21 = vpop.permute.xlu0 %2147 }
 0xd14   : > { %4245 = vmatpush3.xpose.msk.msra.mxu0 %vm628_vm3, %v2148_v21 }
 0xd15   : > { %4246 = vmatprep.subr.mxu0 %v4620_v1 }
 0xd16   : > { %v2383_v17 = vpop.permute.xlu1 %2382 }
 0xd17   : > { %4275 = vmatpush3.xpose.msk.msra.mxu1 %vm628_vm3, %v2383_v17  ;;  %v2381_v48 = vpop.permute.xlu0 %2380 }
 0xd18   : > { %4247 = vmatpush3.xpose.msk.msra.mxu0 %vm628_vm3, %v2146_v11  ;;  %4276 = vmatprep.subr.mxu1 %v4620_v1 }
 0xd19   : > { %4248 = vmatprep.subr.mxu0 %v4620_v1 }
 0xd1a   : > { %v2379_v63 = vpop.permute.xlu1 %2378 }
 0xd1b   : > { %4277 = vmatpush3.xpose.msk.msra.mxu1 %vm628_vm3, %v2381_v48  ;;  %v2373_v15 = vpop.permute.xlu0 %2372 }
 0xd1c   : > { %4249 = vmatpush3.xpose.msk.msra.mxu0 %vm628_vm3, %v2144_v61  ;;  %4278 = vmatprep.subr.mxu1 %v4620_v1 }
 0xd1d   : > { %4259 = vmatprep.subr.mxu0 %v4620_v1 }
 0xd1e   : > { %v2618_v18 = vpop.permute.xlu1 %2617 }
 0xd1f   : > { %4251 = vmatmul.mubr.msk.f32.vlgmr.msra.gmra.mxu0 %vm628_vm3, %v5394_v8  ;;  %4279 = vmatpush3.xpose.msk.msra.mxu1 %vm628_vm3, %v2379_v63  ;;  %v2375_v45 = vpop.permute.xlu0 %2374 }
 0xd20   : > { %4253 = vmatprep.mubr.msk.f32.mxu0 %vm4621_vm0, %v4620_v1  ;;  %4304 = vmatprep.subr.mxu1 %v4620_v1 }
 0xd22   : > { %v2616_v0 = vpop.permute.xlu1 %2615  ;;  %4281 = vmatmul.mubr.msk.f32.vlgmr.msra.gmra.mxu1 %vm628_vm3, %v2373_v15 }
 0xd23   : > { %4254 = vmatmul.mubr.msk.f32.gmra.mxu0 %vm628_vm3, %v5390_v29  ;;  %4305 = vmatpush3.xpose.msk.msra.mxu1 %vm628_vm3, %v2618_v18  ;;  %v2377_v20 = vpop.permute.xlu0 %2376 }
 0xd24   : > { %4283 = vmatprep.mubr.msk.f32.mxu1 %vm4621_vm0, %v4620_v1  ;;  %4256 = vmatprep.mubr.msk.f32.mxu0 %vm4621_vm0, %v4620_v1 }
 0xd25   : > { %4306 = vmatprep.subr.mxu1 %v4620_v1 }
 0xd26   : > { %v2614_v23 = vpop.permute.xlu1 %2613  ;;  %4284 = vmatmul.mubr.msk.f32.gmra.mxu1 %vm628_vm3, %v2375_v45 }
 0xd27   : > { %4257 = vmatmul.mubr.msk.f32.gmra.mxu0 %vm628_vm3, %v5396_v12  ;;  %4307 = vmatpush3.xpose.msk.msra.mxu1 %vm628_vm3, %v2616_v0  ;;  %v2608_v26 = vpop.permute.xlu0 %2607 }
 0xd28   : > { %4286 = vmatprep.mubr.msk.f32.mxu1 %vm4621_vm0, %v4620_v1  ;;  %4308 = vmatprep.subr.mxu1 %v4620_v1 }
 0xd29   : > { %4265 = vmatprep.mubr.msk.f32.mxu0 %vm4621_vm0, %v4620_v1 }
 0xd2a   : > { %v2853_v2 = vpop.permute.xlu1 %2852  ;;  %4287 = vmatmul.mubr.msk.f32.gmra.mxu1 %vm628_vm3, %v2377_v20 }
 0xd2b   : > { %4309 = vmatpush3.xpose.msk.msra.mxu1 %vm628_vm3, %v2614_v23  ;;  %4310 = vmatprep.mubr.msk.f32.mxu1 %vm4621_vm0, %v4620_v1  ;;  %v2610_v27 = vpop.permute.xlu0 %2609 }
 0xd2c   : > { %4334 = vmatprep.subr.mxu1 %v4620_v1 }
 0xd2e   : > { %v2851_v28 = vpop.permute.xlu1 %2850  ;;  %4311 = vmatmul.mubr.msk.f32.vlgmr.msra.gmra.mxu1 %vm628_vm3, %v2608_v26 }
 0xd2f   : > { %4335 = vmatpush3.xpose.msk.msra.mxu1 %vm628_vm3, %v2853_v2  ;;  %4313 = vmatprep.mubr.msk.f32.mxu1 %vm4621_vm0, %v4620_v1  ;;  %v2612_v30 = vpop.permute.xlu0 %2611 }
 0xd30   : > { %4336 = vmatprep.subr.mxu1 %v4620_v1 }
 0xd32   : > { %v2849_v6 = vpop.permute.xlu1 %2848  ;;  %4314 = vmatmul.mubr.msk.f32.gmra.mxu1 %vm628_vm3, %v2610_v27 }
 0xd33   : > { %4337 = vmatpush3.xpose.msk.msra.mxu1 %vm628_vm3, %v2851_v28  ;;  %4316 = vmatprep.mubr.msk.f32.mxu1 %vm4621_vm0, %v4620_v1  ;;  %v2843_v34 = vpop.permute.xlu0 %2842 }
 0xd34   : > { %4338 = vmatprep.subr.mxu1 %v4620_v1 }
 0xd36   : > { %v2275_v16 = vpop.permute.xlu1 %2274  ;;  %4317 = vmatmul.mubr.msk.f32.gmra.mxu1 %vm628_vm3, %v2612_v30 }
 0xd37   : > { %4339 = vmatpush3.xpose.msk.msra.mxu1 %vm628_vm3, %v2849_v6  ;;  %4340 = vmatprep.mubr.msk.f32.mxu1 %vm4621_vm0, %v4620_v1  ;;  %v2277_v36 = vpop.permute.xlu0 %2276 }
 0xd38   : > { %4364 = vmatprep.subr.mxu1 %v4620_v1 }
 0xd3a   : > { %v5504_v25 = vpop.permute.xlu1 %2509  ;;  %4341 = vmatmul.mubr.msk.f32.vlgmr.msra.gmra.mxu1 %vm628_vm3, %v2843_v34 }
 0xd3b   : > { %4343 = vmatprep.mubr.msk.f32.mxu1 %vm4621_vm0, %v4620_v1  ;;  %v5551_v34 = vpop.permute.xlu0 %2511 }
 0xd3e   : > { %v5509_v35 = vpop.permute.xlu1 %2746 }
 0xd42   : > { %v2279_v33 = vpop.permute.xlu1 %2278 }
 0xd43   : > { %4260 = vmatpush3.msra.mxu0 %v2279_v33 }
 0xd44   : > { %4261 = vmatprep.subr.mxu0 %v4620_v1 }
 0xd45   : > { %4262 = vmatpush3.msra.mxu0 %v2277_v36 }
 0xd46   : > { %4263 = vmatprep.subr.mxu0 %v4620_v1  ;;  %v5547_v30 = vpop.permute.xlu1 %2513 }
 0xd47   : > { %4264 = vmatpush3.msra.mxu0 %v2275_v16 }
 0xd48   : > { %4289 = vmatprep.subr.mxu0 %v4620_v1 }
 0xd4a   : > { %v5549_v16 = vpop.permute.xlu1 %2748 }
 0xddf   : > { %v2227_v37 = vpop.f32.mrf.mxu0 }
 0xde0   : > { %v2228_v38 = vadd.f32 %v2227_v37, %v4947_v52 }
 0xde1   : > { %v4252_v40 = vpop.f32.mrf.mxu0 }
 0xde2   : > { %v2462_v43 = vpop.f32.mrf.mxu1  ;;  %v2241_v47 = vsel %vm721_vm5, %v2228_v38, -inf }
 0xde3   : > { %v2463_v49 = vadd.f32 %v2462_v43, %v4947_v52  ;;  %2242 = vmax.xlane.f32.xlu1 %v2241_v47  ;;  %v2232_v51 = vpop.f32.mrf.mxu0 }
 0xde4   : > { %v4282_v56 = vpop.f32.mrf.mxu1  ;;  %v2233_v41 = vadd.f32 %v2232_v51, %v4947_v52 }
 0xde5   : > { %v4255_v46 = vpop.f32.mrf.mxu0  ;;  %v2476_v50 = vsel %vm721_vm5, %v2463_v49, -inf }
 0xde6   : > { %2477 = vmax.xlane.f32.xlu0 %v2476_v50  ;;  %v2467_v58 = vpop.f32.mrf.mxu1  ;;  %v2244_v7 = vsel %vm721_vm5, %v2233_v41, -inf }
 0xde7   : > { %v2468_v55 = vadd.f32 %v2467_v58, %v4947_v52  ;;  %v2237_v14 = vpop.f32.mrf.mxu0 }
 0xde8   : > { %v4285_v62 = vpop.f32.mrf.mxu1  ;;  %v2238_v4 = vadd.f32 %v2237_v14, %v4947_v52 }
 0xde9   : > { %v4258_v3 = vpop.f32.mrf.mxu0  ;;  %v2479_v5 = vsel %vm721_vm5, %v2468_v55, -inf }
 0xdea   : > { %v2472_v32 = vpop.f32.mrf.mxu1  ;;  %2480 = vmax.xlane.f32.xlu1 %v2479_v5  ;;  %2245 = vmax.xlane.f32.xlu0 %v2244_v7  ;;  %v2247_v13 = vsel %vm721_vm5, %v2238_v4, -inf }
 0xdeb   : > { %v2473_v9 = vadd.f32 %v2472_v32, %v4947_v52 }
 0xdec   : > { %v4288_v24 = vpop.f32.mrf.mxu1 }
 0xded   : > { %v2482_v48 = vsel %vm721_vm5, %v2473_v9, -inf }
 0xdee   : > { %v2697_v11 = vpop.f32.mrf.mxu1  ;;  %2248 = vmax.xlane.f32.xlu0 %v2247_v13 }
 0xdef   : > { %v2698_v61 = vadd.f32 %v2697_v11, %v4947_v52 }
 0xdf0   : > { %v4312_v21 = vpop.f32.mrf.mxu1 }
 0xdf1   : > { %v2711_v17 = vsel %vm721_vm5, %v2698_v61, -inf }
 0xdf2   : > { %v2702_v63 = vpop.f32.mrf.mxu1  ;;  %2712 = vmax.xlane.f32.xlu1 %v2711_v17  ;;  %2483 = vmax.xlane.f32.xlu0 %v2482_v48 }
 0xdf3   : > { %v5529_v15 = vadd.f32 %v2702_v63, %v4947_v52 }
 0xdf4   : > { %v4315_v18 = vpop.f32.mrf.mxu1 }
 0xdf5   : > { %v2714_v45 = vsel %vm721_vm5, %v5529_v15, -inf }
 0xdf6   : > { %v2707_v0 = vpop.f32.mrf.mxu1  ;;  %2715 = vmax.xlane.f32.xlu0 %v2714_v45 }
 0xdf7   : > { %v5534_v20 = vadd.f32 %v2707_v0, %v4947_v52 }
 0xdf8   : > { %v4318_v23 = vpop.f32.mrf.mxu1 }
 0xdf9   : > { %v2717_v26 = vsel %vm721_vm5, %v5534_v20, -inf }
 0xdfa   : > { %v2932_v2 = vpop.f32.mrf.mxu1  ;;  %2718 = vmax.xlane.f32.xlu1 %v2717_v26 }
 0xdfb   : > { %v5539_v27 = vadd.f32 %v2932_v2, %v4947_v52 }
 0xdfc   : > { %v4342_v28 = vpop.f32.mrf.mxu1 }
 0xdfd   : > { %v2946_v6 = vsel %vm721_vm5, %v5539_v27, -inf }
 0xdfe   : > { %2947 = vmax.xlane.f32.xlu0 %v2946_v6 }
 0xe0b   : > { %2744 = vrot.lane.b32.xlu1 %v5394_v8, %s4632_s24 }
 0xe14   : > { %2983 = vrot.lane.b32.xlu0 %v5396_v12, %s5919_s15 }
 0xe6c   : > { %v2243_v33 = vpop.xlane.xlu1 %2242 }
 0xe6d   : > { %v2250_v36 = vsub.f32 %v2228_v38, %v2243_v33 }
 0xe6f   : > { %v2253_v37 = vmul.f32 1.442695, %v2250_v36  ;;  %v2478_v40 = vpop.xlane.xlu0 %2477 }
 0xe70   : > { %v2485_v43 = vsub.f32 %v2463_v49, %v2478_v40 }
 0xe71   : > { %4548 = vpow2.f32 %v2253_v37 }
 0xe72   : > { %v2488_v47 = vmul.f32 1.442695, %v2485_v43 }
 0xe73   : > { %v2481_v51 = vpop.xlane.xlu1 %2480  ;;  %v2246_v56 = vpop.xlane.xlu0 %2245 }
 0xe74   : > { %4550 = vpow2.f32 %v2488_v47  ;;  %v2486_v46 = vsub.f32 %v2468_v55, %v2481_v51  ;;  %v2251_v50 = vsub.f32 %v2233_v41, %v2246_v56 }
 0xe76   : > { %v2490_v58 = vmul.f32 1.442695, %v2486_v46  ;;  %v2255_v14 = vmul.f32 1.442695, %v2251_v50 }
 0xe77   : > { %v2249_v62 = vpop.xlane.xlu0 %2248 }
 0xe78   : > { %4552 = vpow2.f32 %v2490_v58  ;;  %v2252_v3 = vsub.f32 %v2238_v4, %v2249_v62 }
 0xe79   : > { %4554 = vpow2.f32 %v2255_v14 }
 0xe7a   : > { %v2257_v5 = vmul.f32 1.442695, %v2252_v3 }
 0xe7b   : > { %v2713_v7 = vpop.xlane.xlu1 %2712  ;;  %v2484_v32 = vpop.xlane.xlu0 %2483 }
 0xe7c   : > { %4556 = vpow2.f32 %v2257_v5  ;;  %v2720_v38 = vsub.f32 %v2698_v61, %v2713_v7  ;;  %v2487_v24 = vsub.f32 %v2473_v9, %v2484_v32 }
 0xe7e   : > { %v4549_v49 = vpop.eup %4548  ;;  %v2492_v13 = vmul.f32 1.442695, %v2487_v24  ;;  %v2723_v11 = vmul.f32 1.442695, %v2720_v38 }
 0xe7f   : > { %v2259_v21 = vsel %vm721_vm5, %v4549_v49, 0.0  ;;  %v2716_v26 = vpop.xlane.xlu0 %2715 }
 0xe80   : > { %2260 = vadd.xlane.f32.xlu1 %v2259_v21  ;;  %4558 = vpow2.f32 %v2492_v13  ;;  %v2721_v2 = vsub.f32 %v5529_v15, %v2716_v26 }
 0xe81   : > { %v5554_v55 = vpop.eup %4550  ;;  %4560 = vpow2.f32 %v2723_v11 }
 0xe82   : > { %v2494_v41 = vsel %vm721_vm5, %v5554_v55, 0.0  ;;  %v2725_v28 = vmul.f32 1.442695, %v2721_v2 }
 0xe83   : > { %2495 = vadd.xlane.f32.xlu0 %v2494_v41  ;;  %v2719_v6 = vpop.xlane.xlu1 %2718 }
 0xe84   : > { %4562 = vpow2.f32 %v2725_v28  ;;  %v2722_v33 = vsub.f32 %v5534_v20, %v2719_v6 }
 0xe85   : > { %v5558_v4 = vpop.eup %4552 }
 0xe86   : > { %v5560_v17 = vpop.eup %4554  ;;  %v2497_v9 = vsel %vm721_vm5, %v5558_v4, 0.0  ;;  %v2727_v37 = vmul.f32 1.442695, %v2722_v33 }
 0xe87   : > { %2498 = vadd.xlane.f32.xlu1 %v2497_v9  ;;  %v2262_v61 = vsel %vm721_vm5, %v5560_v17, 0.0  ;;  %v2948_v36 = vpop.xlane.xlu0 %2947 }
 0xe88   : > { %2263 = vadd.xlane.f32.xlu0 %v2262_v61  ;;  %v2955_v40 = vsub.f32 %v5539_v27, %v2948_v36  ;;  %4564 = vpow2.f32 %v2727_v37  ;;  %v2745_v27 = vpop.permute.xlu1 %2744 }
 0xe89   : > { %v5566_v48 = vpop.eup %4556 }
 0xe8a   : > { %v2265_v63 = vsel %vm721_vm5, %v5566_v48, 0.0  ;;  %v2958_v43 = vmul.f32 1.442695, %v2955_v40 }
 0xe8b   : > { %2266 = vadd.xlane.f32.xlu1 %v2265_v63  ;;  %v2984_v46 = vpop.permute.xlu0 %2983 }
 0xe8c   : > { %4566 = vpow2.f32 %v2958_v43 }
 0xe8d   : > { %v5570_v18 = vpop.eup %4558 }
 0xe8e   : > { %v2500_v45 = vsel %vm721_vm5, %v5570_v18, 0.0  ;;  %v5574_v0 = vpop.eup %4560 }
 0xe8f   : > { %2501 = vadd.xlane.f32.xlu0 %v2500_v45  ;;  %v2729_v23 = vsel %vm721_vm5, %v5574_v0, 0.0 }
 0xe91   : > { %v5585_v47 = vpop.eup %4562 }
 0xe92   : > { %v2732_v15 = vsel %vm721_vm5, %v5585_v47, 0.0 }
 0xe93   : > { %2730 = vadd.xlane.f32.xlu0 %v2729_v23 }
 0xe95   : > { %v5589_v51 = vpop.eup %4564 }
 0xe99   : > { %v5593_v56 = vpop.eup %4566 }
 0xe9a   : > { %v2964_v20 = vsel %vm721_vm5, %v5593_v56, 0.0 }
 0xe9c   : > { %2844 = vrot.lane.b32.xlu1 %v5390_v29, %s4628_s21 }
 0xea9   : > { %2981 = vrot.lane.b32.xlu0 %v5390_v29, %s5919_s15  ;;  %v2735_v29 = vsel %vm721_vm5, %v5589_v51, 0.0 }
 0xec0   : > { %2733 = vadd.xlane.f32.xlu1 %v2732_v15  ;;  %v3768_v15 = vld [vmem:[%s5904_s4 + $0x38] sm:$0xff] }
 0xec1   : > { %4365 = vmatpush3.msra.mxu1 %v3768_v15 }
 0xec2   : > { %4366 = vmatprep.subr.mxu1 %v4620_v1 }
 0xec8   : > { %2736 = vadd.xlane.f32.xlu0 %v2735_v29 }
 0xecc   : > { %2965 = vadd.xlane.f32.xlu0 %v2964_v20 }
 0xed1   : > { %2979 = vrot.lane.b32.xlu1 %v5394_v8, %s5919_s15 }
 0xee2   : > { %2846 = vrot.lane.b32.xlu0 %v5396_v12, %s4628_s21  ;;  %s5921_s21 = smov 16  }
 0xf09   : > { %v2261_v50 = vpop.xlane.xlu1 %2260 }
 0xf0a   : > { %4568 = vrcp.f32 %v2261_v50 }
 0xf0c   : > { %v2496_v58 = vpop.xlane.xlu0 %2495 }
 0xf10   : > { %v2499_v14 = vpop.xlane.xlu1 %2498 }
 0xf11   : > { %v2264_v62 = vpop.xlane.xlu0 %2263 }
 0xf12   : > { %4570 = vrcp.f32 %v2264_v62 }
 0xf14   : > { %v2267_v3 = vpop.xlane.xlu1 %2266 }
 0xf15   : > { %4572 = vrcp.f32 %v2267_v3  ;;  %v3766_v3 = vld [vmem:[%s5904_s4 + $0x28] sm:$0xff] }
 0xf16   : > { %4574 = vrcp.f32 %v2496_v58 }
 0xf17   : > { %v4569_v5 = vpop.eup %4568  ;;  %4576 = vrcp.f32 %v2499_v14 }
 0xf18   : > { %v2271_v7 = vmul.f32 %v4569_v5, %v4549_v49  ;;  %v2845_v32 = vpop.permute.xlu1 %2844  ;;  %v2502_v8 = vpop.xlane.xlu0 %2501 }
 0xf19   : > { %4344 = vmatmul.mubr.msk.f32.gmra.mxu1 %vm628_vm3, %v2845_v32  ;;  %4578 = vrcp.f32 %v2502_v8  ;;  %v3765_v32 = vld [vmem:[%s5904_s4 + $0x20] sm:$0xff] }
 0xf1a   : > { %4266 = vmatmul.mubr.msk.f32.vlgmr.msra.gmra.mxu0 %vm721_vm5, %v2271_v7  ;;  %4346 = vmatprep.mubr.msk.f32.mxu1 %vm4621_vm0, %v4620_v1 }
 0xf1b   : > { %4290 = vmatpush3.msra.mxu0 %v5547_v30  ;;  %4268 = vmatprep.mubr.msk.f32.mxu0 %vm4621_vm0, %v4620_v1 }
 0xf1c   : > { %4291 = vmatprep.subr.mxu0 %v4620_v1  ;;  %v2731_v24 = vpop.xlane.xlu0 %2730 }
 0xf1d   : > { %4292 = vmatpush3.msra.mxu0 %v5551_v34  ;;  %4580 = vrcp.f32 %v2731_v24 }
 0xf1e   : > { %4293 = vmatprep.subr.mxu0 %v4620_v1 }
 0xf1f   : > { %v4571_v12 = vpop.eup %4570  ;;  %4294 = vmatpush3.msra.mxu0 %v5504_v25 }
 0xf20   : > { %v2272_v38 = vmul.f32 %v4571_v12, %v5560_v17  ;;  %4319 = vmatprep.subr.mxu0 %v4620_v1  ;;  %v2982_v41 = vpop.permute.xlu0 %2981 }
 0xf22   : > { %v4573_v30 = vpop.eup %4572  ;;  %4269 = vmatmul.mubr.msk.f32.gmra.mxu0 %vm721_vm5, %v2272_v38 }
 0xf23   : > { %4271 = vmatprep.mubr.msk.f32.mxu0 %vm4621_vm0, %v4620_v1  ;;  %v2273_v49 = vmul.f32 %v4573_v30, %v5566_v48  ;;  %v4575_v34 = vpop.eup %4574 }
 0xf24   : > { %v2506_v25 = vmul.f32 %v4575_v34, %v5554_v55  ;;  %v4577_v13 = vpop.eup %4576 }
 0xf25   : > { %v2507_v11 = vmul.f32 %v4577_v13, %v5558_v4 }
 0xf26   : > { %4272 = vmatmul.mubr.msk.f32.gmra.mxu0 %vm721_vm5, %v2273_v49  ;;  %v4579_v21 = vpop.eup %4578 }
 0xf27   : > { %4295 = vmatprep.mubr.msk.f32.mxu0 %vm4621_vm0, %v4620_v1 }
 0xf2a   : > { %4296 = vmatmul.mubr.msk.f32.vlgmr.msra.gmra.mxu0 %vm721_vm5, %v2506_v25  ;;  %v4581_v55 = vpop.eup %4580 }
 0xf2b   : > { %4320 = vmatpush3.msra.mxu0 %v5549_v16  ;;  %4298 = vmatprep.mubr.msk.f32.mxu0 %vm4621_vm0, %v4620_v1  ;;  %v2508_v16 = vmul.f32 %v4579_v21, %v5570_v18 }
 0xf2c   : > { %4321 = vmatprep.subr.mxu0 %v4620_v1 }
 0xf2d   : > { %4322 = vmatpush3.msra.mxu0 %v5509_v35  ;;  %v2741_v35 = vmul.f32 %v4581_v55, %v5574_v0 }
 0xf2e   : > { %4323 = vmatprep.subr.mxu0 %v4620_v1  ;;  %4299 = vmatmul.mubr.msk.f32.gmra.mxu0 %vm721_vm5, %v2507_v11 }
 0xf2f   : > { %4324 = vmatpush3.msra.mxu0 %v2745_v27  ;;  %4301 = vmatprep.mubr.msk.f32.mxu0 %vm4621_vm0, %v4620_v1 }
 0xf30   : > { %4349 = vmatprep.subr.mxu0 %v4620_v1 }
 0xf32   : > { %4302 = vmatmul.mubr.msk.f32.gmra.mxu0 %vm721_vm5, %v2508_v16 }
 0xf33   : > { %4325 = vmatprep.mubr.msk.f32.mxu0 %vm4621_vm0, %v4620_v1 }
 0xf36   : > { %4326 = vmatmul.mubr.msk.f32.vlgmr.msra.gmra.mxu0 %vm721_vm5, %v2741_v35 }
 0xf37   : > { %4350 = vmatpush3.msra.mxu0 %v2984_v46  ;;  %4328 = vmatprep.mubr.msk.f32.mxu0 %vm4621_vm0, %v4620_v1 }
 0xf38   : > { %4351 = vmatprep.subr.mxu0 %v4620_v1 }
 0xf39   : > { %4352 = vmatpush3.msra.mxu0 %v2982_v41 }
 0xf3a   : > { %4353 = vmatprep.subr.mxu0 %v4620_v1 }
 0xf49   : > { %v2734_v4 = vpop.xlane.xlu1 %2733 }
 0xf4a   : > { %4582 = vrcp.f32 %v2734_v4 }
 0xf4d   : > { %v2980_v17 = vpop.permute.xlu1 %2979 }
 0xf4e   : > { %4354 = vmatpush3.msra.mxu0 %v2980_v17 }
 0xf4f   : > { %4381 = vmatprep.subr.mxu0 %v4620_v1 }
 0xf51   : > { %v2737_v9 = vpop.xlane.xlu0 %2736 }
 0xf52   : > { %4584 = vrcp.f32 %v2737_v9 }
 0xf55   : > { %v2966_v61 = vpop.xlane.xlu0 %2965 }
 0xf56   : > { %4586 = vrcp.f32 %v2966_v61 }
 0xf57   : > { %v4583_v48 = vpop.eup %4582 }
 0xf58   : > { %v2742_v63 = vmul.f32 %v4583_v48, %v5585_v47 }
 0xf59   : > { %v2847_v18 = vpop.permute.xlu0 %2846 }
 0xf5a   : > { %4329 = vmatmul.mubr.msk.f32.gmra.mxu0 %vm721_vm5, %v2742_v63  ;;  %4347 = vmatmul.mubr.msk.f32.gmra.mxu1 %vm628_vm3, %v2847_v18 }
 0xf5b   : > { %4331 = vmatprep.mubr.msk.f32.mxu0 %vm4621_vm0, %v4620_v1  ;;  %4372 = vmatprep.mubr.msk.f32.mxu1 %vm4621_vm0, %v4620_v1 }
 0xf5f   : > { %v4585_v45 = vpop.eup %4584 }
 0xf60   : > { %v2743_v0 = vmul.f32 %v4585_v45, %v5589_v51  ;;  %v3767_v51 = vld [vmem:[%s5904_s4 + $0x30] sm:$0xff] }
 0xf61   : > { %4367 = vmatpush3.msra.mxu1 %v3767_v51 }
 0xf62   : > { %4332 = vmatmul.mubr.msk.f32.gmra.mxu0 %vm721_vm5, %v2743_v0  ;;  %4368 = vmatprep.subr.mxu1 %v4620_v1 }
 0xf63   : > { %v4587_v23 = vpop.eup %4586  ;;  %4355 = vmatprep.mubr.msk.f32.mxu0 %vm4621_vm0, %v4620_v1  ;;  %4369 = vmatpush3.msra.mxu1 %v3766_v3  ;;  %v3774_v3 = vld [vmem:[%s5905_s5 + $0x30] sm:$0xff] }
 0xf64   : > { %v2976_v26 = vmul.f32 %v4587_v23, %v5593_v56  ;;  %4370 = vmatprep.subr.mxu1 %v4620_v1 }
 0xf65   : > { %4371 = vmatpush3.msra.mxu1 %v3765_v32 }
 0xf66   : > { %4356 = vmatmul.mubr.msk.f32.vlgmr.msra.gmra.mxu0 %vm721_vm5, %v2976_v26  ;;  %4398 = vmatprep.subr.mxu1 %v4620_v1 }
 0xf67   : > { %4358 = vmatprep.mubr.msk.f32.mxu0 %vm4621_vm0, %v4620_v1 }
 0xfd9   : > { %v2937_v2 = vpop.f32.mrf.mxu1 }
 0xfda   : > { %v2358_v28 = vpop.f32.mrf.mxu0  ;;  %v2938_v14 = vadd.f32 %v2937_v2, %v4947_v52  ;;  %v5706_v2 = vrot.slane %v5372_v39, %v1702_v42 }
 0xfdb   : > { %v4345_v6 = vpop.f32.mrf.mxu1 }
 0xfdc   : > { %v4267_v33 = vpop.f32.mrf.mxu0  ;;  %v2949_v62 = vsel %vm721_vm5, %v2938_v14, -inf }
 0xfe2   : > { %v5660_v36 = vpop.f32.mrf.mxu0 }
 0xfe4   : > { %v4270_v37 = vpop.f32.mrf.mxu0 }
 0xfe6   : > { %v5662_v40 = vpop.f32.mrf.mxu0 }
 0xfe8   : > { %v4273_v43 = vpop.f32.mrf.mxu0 }
 0xfea   : > { %v2593_v47 = vpop.f32.mrf.mxu0 }
 0xfeb   : > { %3080 = vrot.lane.b32.xlu1 %v2593_v47, %s5920_s20 }
 0xfec   : > { %v4297_v29 = vpop.f32.mrf.mxu0 }
 0xfee   : > { %v5672_v56 = vpop.f32.mrf.mxu0 }
 0xff0   : > { %v4300_v20 = vpop.f32.mrf.mxu0 }
 0xff2   : > { %v5675_v27 = vpop.f32.mrf.mxu0 }
 0xff4   : > { %v4303_v46 = vpop.f32.mrf.mxu0 }
 0xff6   : > { %v2828_v50 = vpop.f32.mrf.mxu0 }
 0xff7   : > { %3092 = vrot.lane.b32.xlu0 %v2828_v50, %s5921_s21 }
 0xff8   : > { %v4327_v58 = vpop.f32.mrf.mxu0 }
0x100f   : > { %2950 = vmax.xlane.f32.xlu1 %v2949_v62  ;;  %v3775_v62 = vld [vmem:[%s5905_s5 + $0x38] sm:$0xff] }
0x1010   : > { %4382 = vmatpush3.msra.mxu0 %v3775_v62 }
0x1011   : > { %4383 = vmatprep.subr.mxu0 %v4620_v1 }
0x1012   : > { %4384 = vmatpush3.msra.mxu0 %v3774_v3 }
0x1013   : > { %4385 = vmatprep.subr.mxu0 %v4620_v1 }
0x101a   : > { %v2833_v5 = vpop.f32.mrf.mxu0  ;;  %v2942_v7 = vpop.f32.mrf.mxu1 }
0x101b   : > { %v2943_v34 = vadd.f32 %v2942_v7, %v4947_v52 }
0x101c   : > { %v4330_v8 = vpop.f32.mrf.mxu0  ;;  %v4348_v12 = vpop.f32.mrf.mxu1 }
0x101d   : > { %v2952_v25 = vsel %vm721_vm5, %v2943_v34, -inf }
0x1022   : > { %v2838_v38 = vpop.f32.mrf.mxu0 }
0x1024   : > { %v4333_v24 = vpop.f32.mrf.mxu0 }
0x1026   : > { %v3063_v30 = vpop.f32.mrf.mxu0 }
0x1027   : > { %3104 = vrot.lane.b32.xlu0 %v3063_v30, %s5922_s12 }
0x1028   : > { %v4357_v49 = vpop.f32.mrf.mxu0 }
0x1046   : > { %2953 = vmax.xlane.f32.xlu0 %v2952_v25 }
0x105d   : > { %v3081_v13 = vpop.permute.xlu1 %3080 }
0x105e   : > { %v3113_v16 = vsel %vm628_vm3, %v2358_v28, %v3081_v13 }
0x1069   : > { %v3093_v11 = vpop.permute.xlu0 %3092 }
0x106a   : > { %v3116_v35 = vsel %vm1597_vm6, %v3113_v16, %v3093_v11 }
0x1098   : > { %v2951_v21 = vpop.xlane.xlu1 %2950 }
0x1099   : > { %v2956_v55 = vsub.f32 %v2938_v14, %v2951_v21  ;;  %v3105_v41 = vpop.permute.xlu0 %3104 }
0x109a   : > { %v3119_v17 = vsel %vm721_vm5, %v3116_v35, %v3105_v41 }
0x109b   : > { %v2960_v4 = vmul.f32 1.442695, %v2956_v55  ;;  %4373 = vmatmul.mubr.msk.f32.vlgmr.msra.gmra.mxu1 %vm467_vm2, %v3119_v17  ;;  %v5759_v55 = vrot.slane %v5372_v39, %v1748_v10  ;;  %v3794_v10 = vld [vmem:[%s5906_s6 + $0xf8] sm:$0xff] }
0x109c   : > { %4375 = vmatprep.mubr.msk.f32.mxu1 %vm4621_vm0, %v4620_v1  ;;  %4399 = vmatpush3.msra.mxu1 %v3794_v10 }
0x109d   : > { %4588 = vpow2.f32 %v2960_v4  ;;  %4400 = vmatprep.subr.mxu1 %v4620_v1 }
0x10aa   : > { %v4589_v52 = vpop.eup %4588 }
0x10ab   : > { %v2967_v9 = vsel %vm721_vm5, %v4589_v52, 0.0 }
0x10ac   : > { %2968 = vadd.xlane.f32.xlu0 %v2967_v9  ;;  %v3790_v9 = vld [vmem:[%s5906_s6 + $0xd8] sm:$0xff] }
0x10cf   : > { %v2954_v61 = vpop.xlane.xlu0 %2953 }
0x10d0   : > { %v2957_v48 = vsub.f32 %v2943_v34, %v2954_v61  ;;  %v3789_v61 = vld [vmem:[%s5906_s6 + $0xd0] sm:$0xff] }
0x10d2   : > { %v2962_v63 = vmul.f32 1.442695, %v2957_v48  ;;  %v3788_v48 = vld [vmem:[%s5906_s6 + $0xc8] sm:$0xff] }
0x10d4   : > { %4590 = vpow2.f32 %v2962_v63  ;;  %v3787_v63 = vld [vmem:[%s5906_s6 + $0xc0] sm:$0xff] }
0x10e1   : > { %v4591_v18 = vpop.eup %4590 }
0x10e2   : > { %v2970_v45 = vsel %vm721_vm5, %v4591_v18, 0.0 }
0x10e3   : > { %2971 = vadd.xlane.f32.xlu1 %v2970_v45  ;;  %v3785_v45 = vld [vmem:[%s5906_s6 + $0xb0] sm:$0xff] }
0x10f4   : > { %3094 = vrot.lane.b32.xlu1 %v2833_v5, %s5921_s21  ;;  %v3772_v5 = vld [vmem:[%s5905_s5 + $0x20] sm:$0xff] }
0x1135   : > { %v2969_v0 = vpop.xlane.xlu0 %2968 }
0x1136   : > { %4592 = vrcp.f32 %v2969_v0  ;;  %v3784_v0 = vld [vmem:[%s5906_s6 + $0xa8] sm:$0xff] }
0x1143   : > { %v4593_v23 = vpop.eup %4592 }
0x1144   : > { %v2977_v26 = vmul.f32 %v4593_v23, %v4589_v52  ;;  %v3791_v52 = vld [vmem:[%s5906_s6 + $0xe0] sm:$0xff] }
0x1145   : > { %v3783_v23 = vld [vmem:[%s5906_s6 + $0xa0] sm:$0xff] }
0x1146   : > { %4359 = vmatmul.mubr.msk.f32.gmra.mxu0 %vm721_vm5, %v2977_v26  ;;  %v3782_v26 = vld [vmem:[%s5906_s6 + $0x98] sm:$0xff] }
0x1147   : > { %4361 = vmatprep.mubr.msk.f32.mxu0 %vm4621_vm0, %v4620_v1 }
0x115b   : > { %v3202_v28 = vpop.f32.mrf.mxu1 }
0x115c   : > { %v3216_v6 = vadd.f32 %v3202_v28, %v5333_v19  ;;  %v3781_v28 = vld [vmem:[%s5906_s6 + $0x90] sm:$0xff] }
0x115d   : > { %v4374_v33 = vpop.f32.mrf.mxu1 }
0x115e   : > { %v5710_v37 = vadd.f32 %v5706_v2, %v3216_v6  ;;  %v3780_v6 = vld [vmem:[%s5906_s6 + $0x88] sm:$0xff]  ;;  %v3779_v33 = vld [vmem:[%s5906_s6 + $0x80] sm:$0xff] }
0x1160   : > { %v3226_v43 = vsel %vm467_vm2, %v5710_v37, 0.0 }
0x1161   : > { %3227 = vadd.xlane.f32.xlu0 %v3226_v43 }
0x116c   : > { %v2972_v47 = vpop.xlane.xlu1 %2971 }
0x116d   : > { %4594 = vrcp.f32 %v2972_v47 }
0x1170   : > { %v3095_v32 = vpop.permute.xlu1 %3094 }
0x1177   : > { %3082 = vrot.lane.b32.xlu0 %v5672_v56, %s5920_s20 }
0x117a   : > { %v4595_v15 = vpop.eup %4594 }
0x117b   : > { %3096 = vrot.lane.b32.xlu0 %v2838_v38, %s5921_s21  ;;  %v2978_v42 = vmul.f32 %v4595_v15, %v4591_v18  ;;  %v3786_v18 = vld [vmem:[%s5906_s6 + $0xb8] sm:$0xff] }
0x117d   : > { %4362 = vmatmul.mubr.msk.f32.gmra.mxu0 %vm721_vm5, %v2978_v42 }
0x117e   : > { %4389 = vmatprep.mubr.msk.f32.mxu0 %vm4621_vm0, %v4620_v1 }
0x11ea   : > { %v3228_v29 = vpop.xlane.xlu0 %3227 }
0x11eb   : > { %v3235_v20 = vmul.f32 0.03125, %v3228_v29 }
0x11ed   : > { %v3238_v46 = vsub.f32 %v5710_v37, %v3235_v20 }
0x11ee   : > { %v3083_v7 = vpop.permute.xlu0 %3082 }
0x11ef   : > { %v3241_v50 = vmul.f32 %v3238_v46, %v3238_v46  ;;  %v3114_v8 = vsel %vm628_vm3, %v5660_v36, %v3083_v7 }
0x11f0   : > { %v3117_v12 = vsel %vm1597_vm6, %v3114_v8, %v3095_v32 }
0x11f1   : > { %v3244_v56 = vsel %vm467_vm2, %v3241_v50, 0.0 }
0x11f2   : > { %v3097_v11 = vpop.permute.xlu0 %3096 }
0x1206   : > { %v3068_v19 = vpop.f32.mrf.mxu0 }
0x1207   : > { %3106 = vrot.lane.b32.xlu1 %v3068_v19, %s5922_s12 }
0x1208   : > { %v4360_v51 = vpop.f32.mrf.mxu0 }
0x122b   : > { %3245 = vadd.xlane.f32.xlu1 %v3244_v56  ;;  %v4611_v56 = vld [vmem:[%s5907_s7 + $0x8] sm:$0xff] }
0x123c   : > { %3084 = vrot.lane.b32.xlu1 %v5675_v27, %s5920_s20  ;;  %v3773_v27 = vld [vmem:[%s5905_s5 + $0x28] sm:$0xff] }
0x123d   : > { %v3073_v58 = vpop.f32.mrf.mxu0  ;;  %4386 = vmatpush3.msra.mxu0 %v3773_v27 }
0x123e   : > { %4387 = vmatprep.subr.mxu0 %v4620_v1 }
0x123f   : > { %v4363_v14 = vpop.f32.mrf.mxu0  ;;  %4388 = vmatpush3.msra.mxu0 %v3772_v5 }
0x1240   : > { %3108 = vrot.lane.b32.xlu1 %v3073_v58, %s5922_s12  ;;  %4439 = vmatprep.subr.mxu0 %v4620_v1 }
0x1279   : > { %v3107_v38 = vpop.permute.xlu1 %3106 }
0x127a   : > { %v3120_v24 = vsel %vm721_vm5, %v3117_v12, %v3107_v38 }
0x127b   : > { %4376 = vmatmul.mubr.msk.f32.gmra.mxu1 %vm467_vm2, %v3120_v24 }
0x127c   : > { %4378 = vmatprep.mubr.msk.f32.mxu1 %vm4621_vm0, %v4620_v1 }
0x12b4   : > { %v3246_v30 = vpop.xlane.xlu1 %3245 }
0x12b5   : > { %v3253_v49 = vmul.f32 0.03125, %v3246_v30 }
0x12b7   : > { %v3256_v34 = vadd.f32 1e-06, %v3253_v49 }
0x12b8   : > { %v3085_v25 = vpop.permute.xlu1 %3084 }
0x12b9   : > { %4596 = vrsqrt.f32 %v3256_v34  ;;  %v3115_v13 = vsel %vm628_vm3, %v5662_v40, %v3085_v25  ;;  %v5764_v40 = vrot.slane %v5372_v39, %v1755_v31  ;;  %v3793_v31 = vld [vmem:[%s5906_s6 + $0xf0] sm:$0xff]  ;;  %v3792_v39 = vld [vmem:[%s5906_s6 + $0xe8] sm:$0xff] }
0x12ba   : > { %v3118_v36 = vsel %vm1597_vm6, %v3115_v13, %v3097_v11  ;;  %4401 = vmatpush3.msra.mxu1 %v3793_v31 }
0x12bb   : > { %4402 = vmatprep.subr.mxu1 %v4620_v1 }
0x12bc   : > { %v3109_v21 = vpop.permute.xlu1 %3108  ;;  %4403 = vmatpush3.msra.mxu1 %v3792_v39 }
0x12bd   : > { %v3121_v16 = vsel %vm721_vm5, %v3118_v36, %v3109_v21  ;;  %4404 = vmatprep.subr.mxu1 %v4620_v1 }
0x12be   : > { %4379 = vmatmul.mubr.msk.f32.gmra.mxu1 %vm467_vm2, %v3121_v16 }
0x12bf   : > { %4430 = vmatprep.mubr.msk.f32.mxu1 %vm4621_vm0, %v4620_v1  ;;  %4405 = vmatpush3.msra.mxu1 %v3791_v52 }
0x12c0   : > { %4406 = vmatprep.subr.mxu1 %v4620_v1 }
0x12c1   : > { %4407 = vmatpush3.msra.mxu1 %v3790_v9 }
0x12c2   : > { %4408 = vmatprep.subr.mxu1 %v4620_v1 }
0x12c3   : > { %4409 = vmatpush3.msra.mxu1 %v3789_v61 }
0x12c4   : > { %4410 = vmatprep.subr.mxu1 %v4620_v1 }
0x12c5   : > { %4411 = vmatpush3.msra.mxu1 %v3788_v48 }
0x12c6   : > { %v4597_v35 = vpop.eup %4596  ;;  %4412 = vmatprep.subr.mxu1 %v4620_v1 }
0x12c7   : > { %v3262_v41 = vmul.f32 %v4597_v35, %v3238_v46  ;;  %4413 = vmatpush3.msra.mxu1 %v3787_v63 }
0x12c8   : > { %4414 = vmatprep.subr.mxu1 %v4620_v1 }
0x12c9   : > { %v3269_v4 = vmul.f32 %v5759_v55, %v3262_v41  ;;  %4415 = vmatpush3.msra.mxu1 %v3786_v18  ;;  %v3424_v41 = vrot.slane %v4611_v56, %v1902_v60 }
0x12ca   : > { %4416 = vmatprep.subr.mxu1 %v4620_v1 }
0x12cb   : > { %v3276_v17 = vadd.f32 %v5764_v40, %v3269_v4  ;;  %4417 = vmatpush3.msra.mxu1 %v3785_v45 }
0x12cc   : > { %4418 = vmatprep.subr.mxu1 %v4620_v1 }
0x12cd   : > { %4390 = vmatmul.mubr.msk.f32.vlgmr.msra.gmra.mxu0 %vm467_vm2, %v3276_v17  ;;  %4419 = vmatpush3.msra.mxu1 %v3784_v0 }
0x12ce   : > { %4392 = vmatprep.mubr.msk.f32.mxu0 %vm4621_vm0, %v4620_v1  ;;  %4420 = vmatprep.subr.mxu1 %v4620_v1 }
0x12cf   : > { %4421 = vmatpush3.msra.mxu1 %v3783_v23 }
0x12d0   : > { %4422 = vmatprep.subr.mxu1 %v4620_v1 }
0x12d1   : > { %4423 = vmatpush3.msra.mxu1 %v3782_v26 }
0x12d2   : > { %4424 = vmatprep.subr.mxu1 %v4620_v1 }
0x12d3   : > { %4425 = vmatpush3.msra.mxu1 %v3781_v28 }
0x12d4   : > { %4426 = vmatprep.subr.mxu1 %v4620_v1 }
0x12d5   : > { %4427 = vmatpush3.msra.mxu1 %v3780_v6 }
0x12d6   : > { %4428 = vmatprep.subr.mxu1 %v4620_v1 }
0x12d7   : > { %4429 = vmatpush3.msra.mxu1 %v3779_v33 }
0x133b   : > { %v3207_v43 = vpop.f32.mrf.mxu1 }
0x133c   : > { %v3217_v47 = vadd.f32 %v3207_v43, %v5338_v22  ;;  %v5845_v22 = vrot.slane %v4611_v56, %v1766_v44  ;;  %v3531_v43 = vld [vmem:[%s5908_s8 + $0x18] sm:$0xff] }
0x133d   : > { %v4377_v15 = vpop.f32.mrf.mxu1  ;;  %4440 = vmatpush3.msra.mxu0 %v3531_v43 }
0x133e   : > { %v3224_v42 = vadd.f32 %v5706_v2, %v3217_v47  ;;  %4441 = vmatprep.subr.mxu0 %v4620_v1  ;;  %v3528_v47 = vld [vmem:[%s5908_s8] sm:$0xff] }
0x1340   : > { %v3229_v19 = vsel %vm467_vm2, %v3224_v42, 0.0 }
0x1341   : > { %3230 = vadd.xlane.f32.xlu0 %v3229_v19 }
0x137e   : > { %v3212_v51 = vpop.f32.mrf.mxu1 }
0x137f   : > { %v3218_v29 = vadd.f32 %v3212_v51, %v5343_v53 }
0x1380   : > { %v4380_v20 = vpop.f32.mrf.mxu1 }
0x1381   : > { %v3225_v46 = vadd.f32 %v5706_v2, %v3218_v29 }
0x1383   : > { %v3232_v50 = vsel %vm467_vm2, %v3225_v46, 0.0 }
0x1384   : > { %3233 = vadd.xlane.f32.xlu1 %v3232_v50 }
0x138d   : > { %v3363_v58 = vpop.f32.mrf.mxu0 }
0x138e   : > { %v3364_v14 = vadd.f32 %v3363_v58, %v5845_v22 }
0x138f   : > { %v4391_v62 = vpop.f32.mrf.mxu0 }
0x1390   : > { %v3377_v3 = vmul.f32 %v3364_v14, %v3364_v14 }
0x1392   : > { %v3380_v53 = vmul.f32 %v3377_v3, %v3364_v14 }
0x1394   : > { %v3383_v27 = vmul.f32 0.044715, %v3380_v53 }
0x1396   : > { %v3386_v5 = vadd.f32 %v3383_v27, %v3364_v14 }
0x1398   : > { %v3389_v2 = vmul.f32 0.7978846, %v3386_v5 }
0x139a   : > { %4598 = vtanh.f32 %v3389_v2 }
0x13a7   : > { %v4599_v7 = vpop.eup %4598 }
0x13a8   : > { %v3395_v32 = vadd.f32 1.0, %v4599_v7 }
0x13aa   : > { %v3398_v8 = vmul.f32 0.5, %v3395_v32 }
0x13ac   : > { %v3401_v12 = vmul.f32 %v3398_v8, %v3364_v14 }
0x13ae   : > { %4431 = vmatmul.mubr.f32.vlgmr.msra.gmra.mxu1 %v3401_v12 }
0x13af   : > { %4433 = vmatprep.mubr.msk.f32.mxu1 %vm4621_vm0, %v4620_v1 }
0x13ca   : > { %v3231_v44 = vpop.xlane.xlu0 %3230 }
0x13cb   : > { %v3236_v38 = vmul.f32 0.03125, %v3231_v44 }
0x13cd   : > { %v3239_v24 = vsub.f32 %v3224_v42, %v3236_v38 }
0x13cf   : > { %v3242_v30 = vmul.f32 %v3239_v24, %v3239_v24 }
0x13d1   : > { %v3247_v49 = vsel %vm467_vm2, %v3242_v30, 0.0 }
0x13d2   : > { %3248 = vadd.xlane.f32.xlu0 %v3247_v49 }
0x140d   : > { %v3234_v34 = vpop.xlane.xlu1 %3233 }
0x140e   : > { %v3237_v25 = vmul.f32 0.03125, %v3234_v34 }
0x1410   : > { %v3240_v13 = vsub.f32 %v3225_v46, %v3237_v25 }
0x1412   : > { %v3243_v11 = vmul.f32 %v3240_v13, %v3240_v13 }
0x1414   : > { %v3250_v36 = vsel %vm467_vm2, %v3243_v11, 0.0 }
0x1415   : > { %3251 = vadd.xlane.f32.xlu0 %v3250_v36 }
0x145b   : > { %v3249_v21 = vpop.xlane.xlu0 %3248 }
0x145c   : > { %v3254_v16 = vmul.f32 0.03125, %v3249_v21 }
0x145e   : > { %v3257_v35 = vadd.f32 1e-06, %v3254_v16 }
0x1460   : > { %4600 = vrsqrt.f32 %v3257_v35 }
0x146d   : > { %v4601_v4 = vpop.eup %4600 }
0x146e   : > { %v3491_v17 = vpop.f32.mrf.mxu1  ;;  %v3263_v10 = vmul.f32 %v4601_v4, %v3239_v24 }
0x146f   : > { %v3492_v31 = vadd.f32 %v3491_v17, %v3424_v41 }
0x1470   : > { %v4432_v39 = vpop.f32.mrf.mxu1  ;;  %v3270_v52 = vmul.f32 %v5759_v55, %v3263_v10 }
0x1471   : > { %v3503_v9 = vadd.f32 %v3492_v31, %v5710_v37 }
0x1472   : > { %v3277_v61 = vadd.f32 %v5764_v40, %v3270_v52 }
0x1473   : > { %v3505_v48 = vsel %vm467_vm2, %v3503_v9, 0.0 }
0x1474   : > { %4393 = vmatmul.mubr.msk.f32.gmra.mxu0 %vm467_vm2, %v3277_v61  ;;  %3506 = vadd.xlane.f32.xlu0 %v3505_v48 }
0x1475   : > { %4395 = vmatprep.mubr.msk.f32.mxu0 %vm4621_vm0, %v4620_v1 }
0x149e   : > { %v3252_v54 = vpop.xlane.xlu0 %3251 }
0x149f   : > { %v3255_v60 = vmul.f32 0.03125, %v3252_v54 }
0x14a1   : > { %v3258_v63 = vadd.f32 1e-06, %v3255_v60 }
0x14a3   : > { %4602 = vrsqrt.f32 %v3258_v63 }
0x14b0   : > { %v4603_v18 = vpop.eup %4602 }
0x14b1   : > { %v3264_v45 = vmul.f32 %v4603_v18, %v3240_v13 }
0x14b3   : > { %v3271_v0 = vmul.f32 %v5759_v55, %v3264_v45  ;;  %v3530_v55 = vld [vmem:[%s5908_s8 + $0x10] sm:$0xff] }
0x14b4   : > { %4442 = vmatpush3.msra.mxu0 %v3530_v55 }
0x14b5   : > { %v3278_v37 = vadd.f32 %v5764_v40, %v3271_v0  ;;  %v3529_v40 = vld [vmem:[%s5908_s8 + $0x8] sm:$0xff]  ;;  %4443 = vmatprep.subr.mxu0 %v4620_v1 }
0x14b6   : > { %4444 = vmatpush3.msra.mxu0 %v3529_v40 }
0x14b7   : > { %4396 = vmatmul.mubr.msk.f32.gmra.mxu0 %vm467_vm2, %v3278_v37  ;;  %4445 = vmatprep.subr.mxu0 %v4620_v1 }
0x14b8   : > { %4447 = vmatprep.mubr.msk.f32.mxu0 %vm4621_vm0, %v4620_v1  ;;  %4446 = vmatpush3.msra.mxu0 %v3528_v47 }
0x14fd   : > { %v3507_v23 = vpop.xlane.xlu0 %3506 }
0x14fe   : > { %v3508_v26 = vmul.f32 0.03125, %v3507_v23 }
0x1500   : > { %v3509_v28 = vsub.f32 %v3503_v9, %v3508_v26 }
0x1502   : > { %v3510_v6 = vmul.f32 %v3509_v28, %v3509_v28 }
0x1504   : > { %v3511_v33 = vsel %vm467_vm2, %v3510_v6, 0.0 }
0x1505   : > { %3512 = vadd.xlane.f32.xlu1 %v3511_v33 }
0x1534   : > { %v3368_v15 = vpop.f32.mrf.mxu0 }
0x1535   : > { %v3369_v42 = vadd.f32 %v3368_v15, %v5845_v22 }
0x1536   : > { %v4394_v19 = vpop.f32.mrf.mxu0 }
0x1537   : > { %v3378_v51 = vmul.f32 %v3369_v42, %v3369_v42 }
0x1539   : > { %v3381_v29 = vmul.f32 %v3378_v51, %v3369_v42 }
0x153b   : > { %v3384_v20 = vmul.f32 0.044715, %v3381_v29 }
0x153d   : > { %v3387_v46 = vadd.f32 %v3384_v20, %v3369_v42 }
0x153f   : > { %v3390_v50 = vmul.f32 0.7978846, %v3387_v46 }
0x1541   : > { %4604 = vtanh.f32 %v3390_v50 }
0x154e   : > { %v4605_v56 = vpop.eup %4604 }
0x154f   : > { %v3396_v58 = vadd.f32 1.0, %v4605_v56 }
0x1551   : > { %v3399_v14 = vmul.f32 0.5, %v3396_v58 }
0x1553   : > { %v3402_v62 = vmul.f32 %v3399_v14, %v3369_v42 }
0x1555   : > { %4434 = vmatmul.mubr.f32.gmra.mxu1 %v3402_v62 }
0x1556   : > { %4436 = vmatprep.mubr.msk.f32.mxu1 %vm4621_vm0, %v4620_v1  ;;  %v3504_v1 = vld [vmem:[%s5909_s9] sm:$0xff] }
0x1557   : > { %v3526_v11 = vrot.slane %v3504_v1, %v4805_v59  ;;  %v3533_v17 = vrot.slane %v3504_v1, 2 }
0x1577   : > { %v3373_v3 = vpop.f32.mrf.mxu0 }
0x1578   : > { %v3374_v53 = vadd.f32 %v3373_v3, %v5845_v22  ;;  %v3521_v22 = vrot.slane %v3504_v1, %v4797_v57 }
0x1579   : > { %v4397_v27 = vpop.f32.mrf.mxu0 }
0x157a   : > { %v3379_v5 = vmul.f32 %v3374_v53, %v3374_v53 }
0x157c   : > { %v3382_v2 = vmul.f32 %v3379_v5, %v3374_v53 }
0x157e   : > { %v3385_v7 = vmul.f32 0.044715, %v3382_v2 }
0x1580   : > { %v3388_v32 = vadd.f32 %v3385_v7, %v3374_v53 }
0x1582   : > { %v3391_v8 = vmul.f32 0.7978846, %v3388_v32 }
0x1584   : > { %4606 = vtanh.f32 %v3391_v8 }
0x158e   : > { %v3513_v12 = vpop.xlane.xlu1 %3512 }
0x158f   : > { %v3514_v44 = vmul.f32 0.03125, %v3513_v12 }
0x1591   : > { %v4607_v38 = vpop.eup %4606  ;;  %v3515_v24 = vadd.f32 1e-06, %v3514_v44 }
0x1592   : > { %v3397_v30 = vadd.f32 1.0, %v4607_v38 }
0x1593   : > { %4608 = vrsqrt.f32 %v3515_v24 }
0x1594   : > { %v3400_v49 = vmul.f32 0.5, %v3397_v30 }
0x1596   : > { %v3403_v34 = vmul.f32 %v3400_v49, %v3374_v53 }
0x1598   : > { %4437 = vmatmul.mubr.f32.gmra.mxu1 %v3403_v34 }
0x15a0   : > { %v4609_v25 = vpop.eup %4608 }
0x15a1   : > { %v3517_v13 = vmul.f32 %v4609_v25, %v3509_v28 }
0x15a3   : > { %v3522_v36 = vmul.f32 %v3521_v22, %v3517_v13 }
0x15a5   : > { %v3527_v21 = vadd.f32 %v3526_v11, %v3522_v36 }
0x15a7   : > { %4448 = vmatmul.mubr.msk.f32.vlgmr.msra.gmra.mxu0 %vm467_vm2, %v3527_v21 }
0x1615   : > { %v3496_v16 = vpop.f32.mrf.mxu1 }
0x1617   : > { %v4435_v35 = vpop.f32.mrf.mxu1 }
0x1658   : > { %v3500_v41 = vpop.f32.mrf.mxu1 }
0x165a   : > { %v4438_v4 = vpop.f32.mrf.mxu1 }
0x1667   : > { %v3604_v10 = vpop.f32.mrf.mxu0 }
0x1668   : > { %v3605_v31 = vadd.f32 %v3604_v10, %v3533_v17 }
0x1669   : > { %v4449_v39 = vpop.f32.mrf.mxu0 }
0x166a   : > { %v3611_v52 = vrot.slane %v3605_v31, %v4797_v57 }
0x166c   : > { %3612 = vst [vmem:[%s357_s27] sm:$0xff] %v3611_v52 }
0x166d PF: > { %s20_s13 = sadd.s32 1, %s4618_s13  }
0x166e   : > { %p17_p4 = scmp.ge.s32.totalorder %s20_s13, 4  }
0x1670   :  { %19 = sbr.rel (!%p17_p4) target bundleno = 1 (0x1), region = 95 }

</bundles_post_ra>
